<compile_context>
chip_gen: v5e
topology: v5e:2x2
jax: 0.10.0
libtpu: 0.0.40
codegen_flags: <defaults>
</compile_context>

<pallas_src>
import jax
import jax.numpy as jnp
from jax import lax
from jax.experimental import pallas as pl
from jax.experimental.pallas import tpu as pltpu

# ----- problem sizes (small, consistent with the module's forward) -----------
B, T, I = 2, 8, 16          # batch, sequence length, input_size
H = 32                      # hidden_size
NUM_CLASSES = 6
ATTN_HID = 64               # attention hidden width (fixed by the module)
CLS_HID = 128               # classifier hidden width (fixed by the module)

H2 = 2 * H                  # combined fwd|rev hidden width
H8 = 8 * H                  # combined gates width (2 directions x 4 gates)


def gesture_lstm_kernel(x_ref,
                        w0f_ref, w0r_ref, b0_ref, whh0_ref,
                        w1f_ref, w1r_ref, b1_ref, whh1_ref,
                        a1w_ref, a1b_ref, a2w_ref, a2b_ref,
                        c1w_ref, c1b_ref, c2w_ref, c2b_ref,
                        out_ref):
    """Whole forward pass in one kernel invocation (no grid).

    Gate column layout (built by the wrapper) is interleaved by direction:
        [i_f, i_r, f_f, f_r, g_f, g_r, o_f, o_r], each block H wide,
    so the combined state hc/cc = [h_fwd | h_rev] is a single (B, 2H) array.
    """

    def bidi_layer(in2d, wf, wr, b, whh):
        # ---- hoisted input projections: one batched matmul per direction ----
        # wf has zeros in the reverse gate columns (and vice versa), so the two
        # projections can simply be added per lockstep step.
        pf = jnp.dot(in2d, wf, preferred_element_type=jnp.float32) + b   # (T*B, 8H)
        pr = jnp.dot(in2d, wr, preferred_element_type=jnp.float32)       # (T*B, 8H)

        # lockstep gate inputs: forward time s, reverse time T-1-s
        # (independent of the recurrence -> off the serial critical path)
        g_in = [pf[s * B:(s + 1) * B, :] + pr[(T - 1 - s) * B:(T - s) * B, :]
                for s in range(T)]

        hc = jnp.zeros((B, H2), jnp.float32)     # [h_fwd | h_rev]
        cc = jnp.zeros((B, H2), jnp.float32)     # [c_fwd | c_rev]
        steps = []
        for s in range(T):                        # static unrolled (T small)
            # single recurrent matmul for both directions (block-diag weight)
            gates = g_in[s] + jnp.dot(hc, whh,
                                      preferred_element_type=jnp.float32)  # (B, 8H)
            # full-vreg transcendentals, slice afterwards
            sg = jax.nn.sigmoid(gates)
            tg = jnp.tanh(gates)
            i_g = sg[:, 0 * H2:1 * H2]
            f_g = sg[:, 1 * H2:2 * H2]
            g_g = tg[:, 2 * H2:3 * H2]
            o_g = sg[:, 3 * H2:4 * H2]
            cc = f_g * cc + i_g * g_g
            hc = o_g * jnp.tanh(cc)
            steps.append(hc)

        # step s holds fwd(t=s) in cols [:H] and rev(t=T-1-s) in cols [H:].
        fwd = jnp.concatenate(steps, axis=0)[:, :H]         # fwd outputs, time order
        rev = jnp.concatenate(steps[::-1], axis=0)[:, H:]   # rev outputs, time order
        return jnp.concatenate([fwd, rev], axis=1)          # (T*B, 2H) = [f(t)|r(t)]

    x2d = x_ref[...]                                        # (T*B, I)

    # ---- 2-layer bidirectional LSTM ----
    seq0 = bidi_layer(x2d, w0f_ref[...], w0r_ref[...], b0_ref[...], whh0_ref[...])
    seq1 = bidi_layer(seq0, w1f_ref[...], w1r_ref[...], b1_ref[...], whh1_ref[...])

    # ---- attention: Linear(2H->64) -> tanh -> Linear(64->1), softmax over T ----
    hid = jnp.tanh(jnp.dot(seq1, a1w_ref[...],
                           preferred_element_type=jnp.float32) + a1b_ref[...])   # (T*B, 64)
    scores = jnp.dot(hid, a2w_ref[...],
                     preferred_element_type=jnp.float32) + a2b_ref[...]          # (T*B, 1)

    # softmax over T within each batch element (rows are t*B + b -> group = r % B);
    # a single global max shift is constant within each group, so it is valid.
    m = jnp.max(scores, axis=0, keepdims=True)                                   # (1, 1)
    e = jnp.exp(scores - m)                                                      # (T*B, 1)

    TB = T * B
    same_b = (lax.broadcasted_iota(jnp.int32, (TB, TB), 0) % B ==
              lax.broadcasted_iota(jnp.int32, (TB, TB), 1) % B).astype(jnp.float32)
    denom = jnp.dot(same_b, e, preferred_element_type=jnp.float32)               # (T*B, 1)
    attn = e / denom                                                             # (T*B, 1)

    # context[b, :] = sum_t attn[t, b] * seq1[t, b, :]  via a (B, T*B) mask matmul
    reduce_m = (lax.broadcasted_iota(jnp.int32, (B, TB), 1) % B ==
                lax.broadcasted_iota(jnp.int32, (B, TB), 0)).astype(jnp.float32)
    context = jnp.dot(reduce_m, seq1 * attn,
                      preferred_element_type=jnp.float32)                        # (B, 2H)

    # ---- classifier: Linear(2H->128) -> ReLU -> [Dropout] -> Linear(128->C) ----
    # TODO(synk): nn.Dropout(0.5) is identity in eval mode; not modeled here.
    h1 = jnp.maximum(jnp.dot(context, c1w_ref[...],
                             preferred_element_type=jnp.float32) + c1b_ref[...], 0.0)
    out_ref[...] = jnp.dot(h1, c2w_ref[...],
                           preferred_element_type=jnp.float32) + c2b_ref[...]


# ---------------------------- parameters -------------------------------------
def init_params(key):
    """Deterministic synthetic parameters (shapes match the PyTorch module)."""
    def w(k, shape, scale=0.1):
        return (scale * jax.random.normal(k, shape)).astype(jnp.float32)
    ks = jax.random.split(key, 20)
    p = {}
    # LSTM layer 0 (input_size -> H), forward / reverse; biases = b_ih + b_hh folded
    p['wih0f'] = w(ks[0], (I, 4 * H));      p['whh0f'] = w(ks[1], (H, 4 * H));  p['b0f'] = w(ks[2], (1, 4 * H))
    p['wih0r'] = w(ks[3], (I, 4 * H));      p['whh0r'] = w(ks[4], (H, 4 * H));  p['b0r'] = w(ks[5], (1, 4 * H))
    # LSTM layer 1 (2H -> H), forward / reverse
    p['wih1f'] = w(ks[6], (2 * H, 4 * H));  p['whh1f'] = w(ks[7], (H, 4 * H));  p['b1f'] = w(ks[8], (1, 4 * H))
    p['wih1r'] = w(ks[9], (2 * H, 4 * H));  p['whh1r'] = w(ks[10], (H, 4 * H)); p['b1r'] = w(ks[11], (1, 4 * H))
    # attention
    p['a1w'] = w(ks[12], (2 * H, ATTN_HID)); p['a1b'] = w(ks[13], (1, ATTN_HID))
    p['a2w'] = w(ks[14], (1, ATTN_HID));     p['a2b'] = w(ks[15], (1, 1))
    # classifier
    p['c1w'] = w(ks[16], (2 * H, CLS_HID));  p['c1b'] = w(ks[17], (1, CLS_HID))
    p['c2w'] = w(ks[18], (CLS_HID, NUM_CLASSES)); p['c2b'] = w(ks[19], (1, NUM_CLASSES))
    return p


def _interleave(wf, wr):
    """Pack two (K, 4H) gate matrices into (K, 8H) with column blocks
    [i_f, i_r, f_f, f_r, g_f, g_r, o_f, o_r]."""
    K = wf.shape[0]
    wf4 = wf.reshape(K, 4, H)
    wr4 = wr.reshape(K, 4, H)
    return jnp.stack([wf4, wr4], axis=2).reshape(K, H8)


def _pack_layer(wih_f, wih_r, whh_f, whh_r, b_f, b_r):
    """Wrapper-side repacking for one bidirectional LSTM layer."""
    zf = jnp.zeros_like(wih_f)
    zr = jnp.zeros_like(wih_r)
    zh = jnp.zeros_like(whh_f)
    w_fwd = _interleave(wih_f, zr)                       # fwd cols populated, rev cols 0
    w_rev = _interleave(zf, wih_r)                       # rev cols populated, fwd cols 0
    b = _interleave(b_f, b_r)                            # (1, 8H)
    whh = jnp.concatenate([_interleave(whh_f, zh),       # rows 0:H  <- h_fwd
                           _interleave(zh, whh_r)],      # rows H:2H <- h_rev
                          axis=0)                        # (2H, 8H) block-diagonal
    return w_fwd, w_rev, b, whh


@jax.jit
def gesture_lstm_forward(x_bti, params):
    """x_bti: (B, T, I) batch_first, like the PyTorch module."""
    x_tbi = jnp.transpose(x_bti, (1, 0, 2))              # time-major (T, B, I)
    x2d = x_tbi.reshape(T * B, I)                        # row = t*B + b

    w0f, w0r, b0, whh0 = _pack_layer(params['wih0f'], params['wih0r'],
                                     params['whh0f'], params['whh0r'],
                                     params['b0f'], params['b0r'])
    w1f, w1r, b1, whh1 = _pack_layer(params['wih1f'], params['wih1r'],
                                     params['whh1f'], params['whh1r'],
                                     params['b1f'], params['b1r'])
    a2w_col = params['a2w'].T                            # (ATTN_HID, 1)

    args = [x2d,
            w0f, w0r, b0, whh0,
            w1f, w1r, b1, whh1,
            params['a1w'], params['a1b'], a2w_col, params['a2b'],
            params['c1w'], params['c1b'], params['c2w'], params['c2b']]

    return pl.pallas_call(
        gesture_lstm_kernel,
        out_shape=jax.ShapeDtypeStruct((B, NUM_CLASSES), jnp.float32),
        in_specs=[pl.BlockSpec(memory_space=pltpu.MemorySpace.VMEM)] * len(args),
        out_specs=pl.BlockSpec(memory_space=pltpu.MemorySpace.VMEM),
    )(*args)


# ---------------------------- pure-JAX reference ------------------------------
def reference_forward(x, p):
    """Pure-JAX reference with identical semantics (for correctness check)."""
    def run_dir(xs, wih, whh, b, reverse):
        Tn = xs.shape[1]
        h = jnp.zeros((xs.shape[0], H), jnp.float32)
        c = jnp.zeros_like(h)
        outs = [None] * Tn
        order = range(Tn - 1, -1, -1) if reverse else range(Tn)
        for t in order:
            gates = xs[:, t] @ wih + h @ whh + b
            i = jax.nn.sigmoid(gates[:, :H]); f = jax.nn.sigmoid(gates[:, H:2 * H])
            g = jnp.tanh(gates[:, 2 * H:3 * H]); o = jax.nn.sigmoid(gates[:, 3 * H:])
            c = f * c + i * g
            h = o * jnp.tanh(c)
            outs[t] = h
        return jnp.stack(outs, axis=1)              # (B, T, H)

    f0 = run_dir(x, p['wih0f'], p['whh0f'], p['b0f'], False)
    r0 = run_dir(x, p['wih0r'], p['whh0r'], p['b0r'], True)
    seq0 = jnp.concatenate([f0, r0], axis=-1)
    f1 = run_dir(seq0, p['wih1f'], p['whh1f'], p['b1f'], False)
    r1 = run_dir(seq0, p['wih1r'], p['whh1r'], p['b1r'], True)
    seq1 = jnp.concatenate([f1, r1], axis=-1)       # (B, T, 2H)

    hid = jnp.tanh(seq1 @ p['a1w'] + p['a1b'])
    scores = jnp.sum(hid * p['a2w'], axis=-1) + p['a2b'][0, 0]   # (B, T)
    attn = jax.nn.softmax(scores, axis=1)
    context = jnp.sum(seq1 * attn[..., None], axis=1)            # (B, 2H)

    h1 = jnp.maximum(context @ p['c1w'] + p['c1b'], 0.0)
    return h1 @ p['c2w'] + p['c2b']


if __name__ == "__main__":
    key = jax.random.PRNGKey(0)
    k_x, k_p = jax.random.split(key)
    x = jax.random.normal(k_x, (B, T, I), dtype=jnp.float32)
    params = init_params(k_p)

    out = gesture_lstm_forward(x, params)
    out = jax.block_until_ready(out)

    ref = reference_forward(x, params)
    assert out.shape == (B, NUM_CLASSES), out.shape
    assert jnp.allclose(out, ref, rtol=1e-4, atol=1e-4), (out, ref)
    print("KERNEL_OK")
</pallas_src>

<mosaic_0001>
module attributes {stable_mosaic.version = 11 : i64} {
  func.func @gesture_lstm_kernel(%arg0: memref<16x16xf32, #tpu.memory_space<vmem>>, %arg1: memref<16x256xf32, #tpu.memory_space<vmem>>, %arg2: memref<16x256xf32, #tpu.memory_space<vmem>>, %arg3: memref<1x256xf32, #tpu.memory_space<vmem>>, %arg4: memref<64x256xf32, #tpu.memory_space<vmem>>, %arg5: memref<64x256xf32, #tpu.memory_space<vmem>>, %arg6: memref<64x256xf32, #tpu.memory_space<vmem>>, %arg7: memref<1x256xf32, #tpu.memory_space<vmem>>, %arg8: memref<64x256xf32, #tpu.memory_space<vmem>>, %arg9: memref<64x64xf32, #tpu.memory_space<vmem>>, %arg10: memref<1x64xf32, #tpu.memory_space<vmem>>, %arg11: memref<64x1xf32, #tpu.memory_space<vmem>>, %arg12: memref<1x1xf32, #tpu.memory_space<vmem>>, %arg13: memref<64x128xf32, #tpu.memory_space<vmem>>, %arg14: memref<1x128xf32, #tpu.memory_space<vmem>>, %arg15: memref<128x6xf32, #tpu.memory_space<vmem>>, %arg16: memref<1x6xf32, #tpu.memory_space<vmem>>, %arg17: memref<2x6xf32, #tpu.memory_space<vmem>>) attributes {dimension_semantics = [], scalar_prefetch = 0 : i64, scratch_operands = 0 : i64, tpu.core_type = #tpu.core_type<tc>} {
    %c0 = arith.constant 0 : index
    %c0_0 = arith.constant 0 : index
    %0 = vector.load %arg0[%c0, %c0_0] : memref<16x16xf32, #tpu.memory_space<vmem>>, vector<16x16xf32>
    %c0_1 = arith.constant 0 : index
    %c0_2 = arith.constant 0 : index
    %1 = vector.load %arg1[%c0_1, %c0_2] : memref<16x256xf32, #tpu.memory_space<vmem>>, vector<16x256xf32>
    %c0_3 = arith.constant 0 : index
    %c0_4 = arith.constant 0 : index
    %2 = vector.load %arg2[%c0_3, %c0_4] : memref<16x256xf32, #tpu.memory_space<vmem>>, vector<16x256xf32>
    %c0_5 = arith.constant 0 : index
    %c0_6 = arith.constant 0 : index
    %3 = vector.load %arg3[%c0_5, %c0_6] : memref<1x256xf32, #tpu.memory_space<vmem>>, vector<1x256xf32>
    %c0_7 = arith.constant 0 : index
    %c0_8 = arith.constant 0 : index
    %4 = vector.load %arg4[%c0_7, %c0_8] : memref<64x256xf32, #tpu.memory_space<vmem>>, vector<64x256xf32>
    %cst = arith.constant dense<0.000000e+00> : vector<16x256xf32>
    %5 = tpu.matmul %0, %1, %cst {dimension_numbers = #tpu.dot_dimension_numbers<[1], [0], [0], [1], [0, 0, 1, 1], [], []>} : vector<16x16xf32>, vector<16x256xf32>, vector<16x256xf32> -> vector<16x256xf32>
    %6 = vector.broadcast %3 : vector<1x256xf32> to vector<16x256xf32>
    %7 = arith.addf %5, %6 : vector<16x256xf32>
    %cst_9 = arith.constant dense<0.000000e+00> : vector<16x256xf32>
    %8 = tpu.matmul %0, %2, %cst_9 {dimension_numbers = #tpu.dot_dimension_numbers<[1], [0], [0], [1], [0, 0, 1, 1], [], []>} : vector<16x16xf32>, vector<16x256xf32>, vector<16x256xf32> -> vector<16x256xf32>
    %9 = vector.extract_strided_slice %7 {offsets = [0, 0], sizes = [2, 256], strides = [1, 1]} : vector<16x256xf32> to vector<2x256xf32>
    %10 = vector.extract_strided_slice %8 {offsets = [14, 0], sizes = [2, 256], strides = [1, 1]} : vector<16x256xf32> to vector<2x256xf32>
    %11 = arith.addf %9, %10 : vector<2x256xf32>
    %12 = vector.extract_strided_slice %7 {offsets = [2, 0], sizes = [2, 256], strides = [1, 1]} : vector<16x256xf32> to vector<2x256xf32>
    %13 = vector.extract_strided_slice %8 {offsets = [12, 0], sizes = [2, 256], strides = [1, 1]} : vector<16x256xf32> to vector<2x256xf32>
    %14 = arith.addf %12, %13 : vector<2x256xf32>
    %15 = vector.extract_strided_slice %7 {offsets = [4, 0], sizes = [2, 256], strides = [1, 1]} : vector<16x256xf32> to vector<2x256xf32>
    %16 = vector.extract_strided_slice %8 {offsets = [10, 0], sizes = [2, 256], strides = [1, 1]} : vector<16x256xf32> to vector<2x256xf32>
    %17 = arith.addf %15, %16 : vector<2x256xf32>
    %18 = vector.extract_strided_slice %7 {offsets = [6, 0], sizes = [2, 256], strides = [1, 1]} : vector<16x256xf32> to vector<2x256xf32>
    %19 = vector.extract_strided_slice %8 {offsets = [8, 0], sizes = [2, 256], strides = [1, 1]} : vector<16x256xf32> to vector<2x256xf32>
    %20 = arith.addf %18, %19 : vector<2x256xf32>
    %21 = vector.extract_strided_slice %7 {offsets = [8, 0], sizes = [2, 256], strides = [1, 1]} : vector<16x256xf32> to vector<2x256xf32>
    %22 = vector.extract_strided_slice %8 {offsets = [6, 0], sizes = [2, 256], strides = [1, 1]} : vector<16x256xf32> to vector<2x256xf32>
    %23 = arith.addf %21, %22 : vector<2x256xf32>
    %24 = vector.extract_strided_slice %7 {offsets = [10, 0], sizes = [2, 256], strides = [1, 1]} : vector<16x256xf32> to vector<2x256xf32>
    %25 = vector.extract_strided_slice %8 {offsets = [4, 0], sizes = [2, 256], strides = [1, 1]} : vector<16x256xf32> to vector<2x256xf32>
    %26 = arith.addf %24, %25 : vector<2x256xf32>
    %27 = vector.extract_strided_slice %7 {offsets = [12, 0], sizes = [2, 256], strides = [1, 1]} : vector<16x256xf32> to vector<2x256xf32>
    %28 = vector.extract_strided_slice %8 {offsets = [2, 0], sizes = [2, 256], strides = [1, 1]} : vector<16x256xf32> to vector<2x256xf32>
    %29 = arith.addf %27, %28 : vector<2x256xf32>
    %30 = vector.extract_strided_slice %7 {offsets = [14, 0], sizes = [2, 256], strides = [1, 1]} : vector<16x256xf32> to vector<2x256xf32>
    %31 = vector.extract_strided_slice %8 {offsets = [0, 0], sizes = [2, 256], strides = [1, 1]} : vector<16x256xf32> to vector<2x256xf32>
    %32 = arith.addf %30, %31 : vector<2x256xf32>
    %cst_10 = arith.constant 0.000000e+00 : f32
    %33 = vector.broadcast %cst_10 : f32 to vector<2x64xf32>
    %cst_11 = arith.constant 0.000000e+00 : f32
    %34 = vector.broadcast %cst_11 : f32 to vector<2x64xf32>
    %cst_12 = arith.constant dense<0.000000e+00> : vector<2x256xf32>
    %35 = tpu.matmul %33, %4, %cst_12 {dimension_numbers = #tpu.dot_dimension_numbers<[1], [0], [0], [1], [0, 0, 1, 1], [], []>} : vector<2x64xf32>, vector<64x256xf32>, vector<2x256xf32> -> vector<2x256xf32>
    %36 = arith.addf %11, %35 : vector<2x256xf32>
    %37 = arith.negf %36 : vector<2x256xf32>
    %38 = math.exp %37 : vector<2x256xf32>
    %cst_13 = arith.constant 1.000000e+00 : f32
    %39 = vector.broadcast %cst_13 : f32 to vector<2x256xf32>
    %40 = arith.addf %39, %38 : vector<2x256xf32>
    %41 = arith.divf %39, %40 : vector<2x256xf32>
    %42 = math.tanh %36 : vector<2x256xf32>
    %43 = vector.extract_strided_slice %41 {offsets = [0, 0], sizes = [2, 64], strides = [1, 1]} : vector<2x256xf32> to vector<2x64xf32>
    %44 = vector.extract_strided_slice %41 {offsets = [0, 64], sizes = [2, 64], strides = [1, 1]} : vector<2x256xf32> to vector<2x64xf32>
    %45 = vector.extract_strided_slice %42 {offsets = [0, 128], sizes = [2, 64], strides = [1, 1]} : vector<2x256xf32> to vector<2x64xf32>
    %46 = vector.extract_strided_slice %41 {offsets = [0, 192], sizes = [2, 64], strides = [1, 1]} : vector<2x256xf32> to vector<2x64xf32>
    %47 = arith.mulf %44, %34 : vector<2x64xf32>
    %48 = arith.mulf %43, %45 : vector<2x64xf32>
    %49 = arith.addf %47, %48 : vector<2x64xf32>
    %50 = math.tanh %49 : vector<2x64xf32>
    %51 = arith.mulf %46, %50 : vector<2x64xf32>
    %cst_14 = arith.constant dense<0.000000e+00> : vector<2x256xf32>
    %52 = tpu.matmul %51, %4, %cst_14 {dimension_numbers = #tpu.dot_dimension_numbers<[1], [0], [0], [1], [0, 0, 1, 1], [], []>} : vector<2x64xf32>, vector<64x256xf32>, vector<2x256xf32> -> vector<2x256xf32>
    %53 = arith.addf %14, %52 : vector<2x256xf32>
    %54 = arith.negf %53 : vector<2x256xf32>
    %55 = math.exp %54 : vector<2x256xf32>
    %cst_15 = arith.constant 1.000000e+00 : f32
    %56 = vector.broadcast %cst_15 : f32 to vector<2x256xf32>
    %57 = arith.addf %56, %55 : vector<2x256xf32>
    %58 = arith.divf %56, %57 : vector<2x256xf32>
    %59 = math.tanh %53 : vector<2x256xf32>
    %60 = vector.extract_strided_slice %58 {offsets = [0, 0], sizes = [2, 64], strides = [1, 1]} : vector<2x256xf32> to vector<2x64xf32>
    %61 = vector.extract_strided_slice %58 {offsets = [0, 64], sizes = [2, 64], strides = [1, 1]} : vector<2x256xf32> to vector<2x64xf32>
    %62 = vector.extract_strided_slice %59 {offsets = [0, 128], sizes = [2, 64], strides = [1, 1]} : vector<2x256xf32> to vector<2x64xf32>
    %63 = vector.extract_strided_slice %58 {offsets = [0, 192], sizes = [2, 64], strides = [1, 1]} : vector<2x256xf32> to vector<2x64xf32>
    %64 = arith.mulf %61, %49 : vector<2x64xf32>
    %65 = arith.mulf %60, %62 : vector<2x64xf32>
    %66 = arith.addf %64, %65 : vector<2x64xf32>
    %67 = math.tanh %66 : vector<2x64xf32>
    %68 = arith.mulf %63, %67 : vector<2x64xf32>
    %cst_16 = arith.constant dense<0.000000e+00> : vector<2x256xf32>
    %69 = tpu.matmul %68, %4, %cst_16 {dimension_numbers = #tpu.dot_dimension_numbers<[1], [0], [0], [1], [0, 0, 1, 1], [], []>} : vector<2x64xf32>, vector<64x256xf32>, vector<2x256xf32> -> vector<2x256xf32>
    %70 = arith.addf %17, %69 : vector<2x256xf32>
    %71 = arith.negf %70 : vector<2x256xf32>
    %72 = math.exp %71 : vector<2x256xf32>
    %cst_17 = arith.constant 1.000000e+00 : f32
    %73 = vector.broadcast %cst_17 : f32 to vector<2x256xf32>
    %74 = arith.addf %73, %72 : vector<2x256xf32>
    %75 = arith.divf %73, %74 : vector<2x256xf32>
    %76 = math.tanh %70 : vector<2x256xf32>
    %77 = vector.extract_strided_slice %75 {offsets = [0, 0], sizes = [2, 64], strides = [1, 1]} : vector<2x256xf32> to vector<2x64xf32>
    %78 = vector.extract_strided_slice %75 {offsets = [0, 64], sizes = [2, 64], strides = [1, 1]} : vector<2x256xf32> to vector<2x64xf32>
    %79 = vector.extract_strided_slice %76 {offsets = [0, 128], sizes = [2, 64], strides = [1, 1]} : vector<2x256xf32> to vector<2x64xf32>
    %80 = vector.extract_strided_slice %75 {offsets = [0, 192], sizes = [2, 64], strides = [1, 1]} : vector<2x256xf32> to vector<2x64xf32>
    %81 = arith.mulf %78, %66 : vector<2x64xf32>
    %82 = arith.mulf %77, %79 : vector<2x64xf32>
    %83 = arith.addf %81, %82 : vector<2x64xf32>
    %84 = math.tanh %83 : vector<2x64xf32>
    %85 = arith.mulf %80, %84 : vector<2x64xf32>
    %cst_18 = arith.constant dense<0.000000e+00> : vector<2x256xf32>
    %86 = tpu.matmul %85, %4, %cst_18 {dimension_numbers = #tpu.dot_dimension_numbers<[1], [0], [0], [1], [0, 0, 1, 1], [], []>} : vector<2x64xf32>, vector<64x256xf32>, vector<2x256xf32> -> vector<2x256xf32>
    %87 = arith.addf %20, %86 : vector<2x256xf32>
    %88 = arith.negf %87 : vector<2x256xf32>
    %89 = math.exp %88 : vector<2x256xf32>
    %cst_19 = arith.constant 1.000000e+00 : f32
    %90 = vector.broadcast %cst_19 : f32 to vector<2x256xf32>
    %91 = arith.addf %90, %89 : vector<2x256xf32>
    %92 = arith.divf %90, %91 : vector<2x256xf32>
    %93 = math.tanh %87 : vector<2x256xf32>
    %94 = vector.extract_strided_slice %92 {offsets = [0, 0], sizes = [2, 64], strides = [1, 1]} : vector<2x256xf32> to vector<2x64xf32>
    %95 = vector.extract_strided_slice %92 {offsets = [0, 64], sizes = [2, 64], strides = [1, 1]} : vector<2x256xf32> to vector<2x64xf32>
    %96 = vector.extract_strided_slice %93 {offsets = [0, 128], sizes = [2, 64], strides = [1, 1]} : vector<2x256xf32> to vector<2x64xf32>
    %97 = vector.extract_strided_slice %92 {offsets = [0, 192], sizes = [2, 64], strides = [1, 1]} : vector<2x256xf32> to vector<2x64xf32>
    %98 = arith.mulf %95, %83 : vector<2x64xf32>
    %99 = arith.mulf %94, %96 : vector<2x64xf32>
    %100 = arith.addf %98, %99 : vector<2x64xf32>
    %101 = math.tanh %100 : vector<2x64xf32>
    %102 = arith.mulf %97, %101 : vector<2x64xf32>
    %cst_20 = arith.constant dense<0.000000e+00> : vector<2x256xf32>
    %103 = tpu.matmul %102, %4, %cst_20 {dimension_numbers = #tpu.dot_dimension_numbers<[1], [0], [0], [1], [0, 0, 1, 1], [], []>} : vector<2x64xf32>, vector<64x256xf32>, vector<2x256xf32> -> vector<2x256xf32>
    %104 = arith.addf %23, %103 : vector<2x256xf32>
    %105 = arith.negf %104 : vector<2x256xf32>
    %106 = math.exp %105 : vector<2x256xf32>
    %cst_21 = arith.constant 1.000000e+00 : f32
    %107 = vector.broadcast %cst_21 : f32 to vector<2x256xf32>
    %108 = arith.addf %107, %106 : vector<2x256xf32>
    %109 = arith.divf %107, %108 : vector<2x256xf32>
    %110 = math.tanh %104 : vector<2x256xf32>
    %111 = vector.extract_strided_slice %109 {offsets = [0, 0], sizes = [2, 64], strides = [1, 1]} : vector<2x256xf32> to vector<2x64xf32>
    %112 = vector.extract_strided_slice %109 {offsets = [0, 64], sizes = [2, 64], strides = [1, 1]} : vector<2x256xf32> to vector<2x64xf32>
    %113 = vector.extract_strided_slice %110 {offsets = [0, 128], sizes = [2, 64], strides = [1, 1]} : vector<2x256xf32> to vector<2x64xf32>
    %114 = vector.extract_strided_slice %109 {offsets = [0, 192], sizes = [2, 64], strides = [1, 1]} : vector<2x256xf32> to vector<2x64xf32>
    %115 = arith.mulf %112, %100 : vector<2x64xf32>
    %116 = arith.mulf %111, %113 : vector<2x64xf32>
    %117 = arith.addf %115, %116 : vector<2x64xf32>
    %118 = math.tanh %117 : vector<2x64xf32>
    %119 = arith.mulf %114, %118 : vector<2x64xf32>
    %cst_22 = arith.constant dense<0.000000e+00> : vector<2x256xf32>
    %120 = tpu.matmul %119, %4, %cst_22 {dimension_numbers = #tpu.dot_dimension_numbers<[1], [0], [0], [1], [0, 0, 1, 1], [], []>} : vector<2x64xf32>, vector<64x256xf32>, vector<2x256xf32> -> vector<2x256xf32>
    %121 = arith.addf %26, %120 : vector<2x256xf32>
    %122 = arith.negf %121 : vector<2x256xf32>
    %123 = math.exp %122 : vector<2x256xf32>
    %cst_23 = arith.constant 1.000000e+00 : f32
    %124 = vector.broadcast %cst_23 : f32 to vector<2x256xf32>
    %125 = arith.addf %124, %123 : vector<2x256xf32>
    %126 = arith.divf %124, %125 : vector<2x256xf32>
    %127 = math.tanh %121 : vector<2x256xf32>
    %128 = vector.extract_strided_slice %126 {offsets = [0, 0], sizes = [2, 64], strides = [1, 1]} : vector<2x256xf32> to vector<2x64xf32>
    %129 = vector.extract_strided_slice %126 {offsets = [0, 64], sizes = [2, 64], strides = [1, 1]} : vector<2x256xf32> to vector<2x64xf32>
    %130 = vector.extract_strided_slice %127 {offsets = [0, 128], sizes = [2, 64], strides = [1, 1]} : vector<2x256xf32> to vector<2x64xf32>
    %131 = vector.extract_strided_slice %126 {offsets = [0, 192], sizes = [2, 64], strides = [1, 1]} : vector<2x256xf32> to vector<2x64xf32>
    %132 = arith.mulf %129, %117 : vector<2x64xf32>
    %133 = arith.mulf %128, %130 : vector<2x64xf32>
    %134 = arith.addf %132, %133 : vector<2x64xf32>
    %135 = math.tanh %134 : vector<2x64xf32>
    %136 = arith.mulf %131, %135 : vector<2x64xf32>
    %cst_24 = arith.constant dense<0.000000e+00> : vector<2x256xf32>
    %137 = tpu.matmul %136, %4, %cst_24 {dimension_numbers = #tpu.dot_dimension_numbers<[1], [0], [0], [1], [0, 0, 1, 1], [], []>} : vector<2x64xf32>, vector<64x256xf32>, vector<2x256xf32> -> vector<2x256xf32>
    %138 = arith.addf %29, %137 : vector<2x256xf32>
    %139 = arith.negf %138 : vector<2x256xf32>
    %140 = math.exp %139 : vector<2x256xf32>
    %cst_25 = arith.constant 1.000000e+00 : f32
    %141 = vector.broadcast %cst_25 : f32 to vector<2x256xf32>
    %142 = arith.addf %141, %140 : vector<2x256xf32>
    %143 = arith.divf %141, %142 : vector<2x256xf32>
    %144 = math.tanh %138 : vector<2x256xf32>
    %145 = vector.extract_strided_slice %143 {offsets = [0, 0], sizes = [2, 64], strides = [1, 1]} : vector<2x256xf32> to vector<2x64xf32>
    %146 = vector.extract_strided_slice %143 {offsets = [0, 64], sizes = [2, 64], strides = [1, 1]} : vector<2x256xf32> to vector<2x64xf32>
    %147 = vector.extract_strided_slice %144 {offsets = [0, 128], sizes = [2, 64], strides = [1, 1]} : vector<2x256xf32> to vector<2x64xf32>
    %148 = vector.extract_strided_slice %143 {offsets = [0, 192], sizes = [2, 64], strides = [1, 1]} : vector<2x256xf32> to vector<2x64xf32>
    %149 = arith.mulf %146, %134 : vector<2x64xf32>
    %150 = arith.mulf %145, %147 : vector<2x64xf32>
    %151 = arith.addf %149, %150 : vector<2x64xf32>
    %152 = math.tanh %151 : vector<2x64xf32>
    %153 = arith.mulf %148, %152 : vector<2x64xf32>
    %cst_26 = arith.constant dense<0.000000e+00> : vector<2x256xf32>
    %154 = tpu.matmul %153, %4, %cst_26 {dimension_numbers = #tpu.dot_dimension_numbers<[1], [0], [0], [1], [0, 0, 1, 1], [], []>} : vector<2x64xf32>, vector<64x256xf32>, vector<2x256xf32> -> vector<2x256xf32>
    %155 = arith.addf %32, %154 : vector<2x256xf32>
    %156 = arith.negf %155 : vector<2x256xf32>
    %157 = math.exp %156 : vector<2x256xf32>
    %cst_27 = arith.constant 1.000000e+00 : f32
    %158 = vector.broadcast %cst_27 : f32 to vector<2x256xf32>
    %159 = arith.addf %158, %157 : vector<2x256xf32>
    %160 = arith.divf %158, %159 : vector<2x256xf32>
    %161 = math.tanh %155 : vector<2x256xf32>
    %162 = vector.extract_strided_slice %160 {offsets = [0, 0], sizes = [2, 64], strides = [1, 1]} : vector<2x256xf32> to vector<2x64xf32>
    %163 = vector.extract_strided_slice %160 {offsets = [0, 64], sizes = [2, 64], strides = [1, 1]} : vector<2x256xf32> to vector<2x64xf32>
    %164 = vector.extract_strided_slice %161 {offsets = [0, 128], sizes = [2, 64], strides = [1, 1]} : vector<2x256xf32> to vector<2x64xf32>
    %165 = vector.extract_strided_slice %160 {offsets = [0, 192], sizes = [2, 64], strides = [1, 1]} : vector<2x256xf32> to vector<2x64xf32>
    %166 = arith.mulf %163, %151 : vector<2x64xf32>
    %167 = arith.mulf %162, %164 : vector<2x64xf32>
    %168 = arith.addf %166, %167 : vector<2x64xf32>
    %169 = math.tanh %168 : vector<2x64xf32>
    %170 = arith.mulf %165, %169 : vector<2x64xf32>
    %171 = tpu.concatenate %51, %68, %85, %102, %119, %136, %153, %170 in 0 : vector<2x64xf32>, vector<2x64xf32>, vector<2x64xf32>, vector<2x64xf32>, vector<2x64xf32>, vector<2x64xf32>, vector<2x64xf32>, vector<2x64xf32> -> vector<16x64xf32>
    %172 = vector.extract_strided_slice %171 {offsets = [0, 0], sizes = [16, 32], strides = [1, 1]} : vector<16x64xf32> to vector<16x32xf32>
    %173 = tpu.concatenate %170, %153, %136, %119, %102, %85, %68, %51 in 0 : vector<2x64xf32>, vector<2x64xf32>, vector<2x64xf32>, vector<2x64xf32>, vector<2x64xf32>, vector<2x64xf32>, vector<2x64xf32>, vector<2x64xf32> -> vector<16x64xf32>
    %174 = vector.extract_strided_slice %173 {offsets = [0, 32], sizes = [16, 32], strides = [1, 1]} : vector<16x64xf32> to vector<16x32xf32>
    %175 = tpu.concatenate %172, %174 in 1 : vector<16x32xf32>, vector<16x32xf32> -> vector<16x64xf32>
    %c0_28 = arith.constant 0 : index
    %c0_29 = arith.constant 0 : index
    %176 = vector.load %arg5[%c0_28, %c0_29] : memref<64x256xf32, #tpu.memory_space<vmem>>, vector<64x256xf32>
    %c0_30 = arith.constant 0 : index
    %c0_31 = arith.constant 0 : index
    %177 = vector.load %arg6[%c0_30, %c0_31] : memref<64x256xf32, #tpu.memory_space<vmem>>, vector<64x256xf32>
    %c0_32 = arith.constant 0 : index
    %c0_33 = arith.constant 0 : index
    %178 = vector.load %arg7[%c0_32, %c0_33] : memref<1x256xf32, #tpu.memory_space<vmem>>, vector<1x256xf32>
    %c0_34 = arith.constant 0 : index
    %c0_35 = arith.constant 0 : index
    %179 = vector.load %arg8[%c0_34, %c0_35] : memref<64x256xf32, #tpu.memory_space<vmem>>, vector<64x256xf32>
    %cst_36 = arith.constant dense<0.000000e+00> : vector<16x256xf32>
    %180 = tpu.matmul %175, %176, %cst_36 {dimension_numbers = #tpu.dot_dimension_numbers<[1], [0], [0], [1], [0, 0, 1, 1], [], []>} : vector<16x64xf32>, vector<64x256xf32>, vector<16x256xf32> -> vector<16x256xf32>
    %181 = vector.broadcast %178 : vector<1x256xf32> to vector<16x256xf32>
    %182 = arith.addf %180, %181 : vector<16x256xf32>
    %cst_37 = arith.constant dense<0.000000e+00> : vector<16x256xf32>
    %183 = tpu.matmul %175, %177, %cst_37 {dimension_numbers = #tpu.dot_dimension_numbers<[1], [0], [0], [1], [0, 0, 1, 1], [], []>} : vector<16x64xf32>, vector<64x256xf32>, vector<16x256xf32> -> vector<16x256xf32>
    %184 = vector.extract_strided_slice %182 {offsets = [0, 0], sizes = [2, 256], strides = [1, 1]} : vector<16x256xf32> to vector<2x256xf32>
    %185 = vector.extract_strided_slice %183 {offsets = [14, 0], sizes = [2, 256], strides = [1, 1]} : vector<16x256xf32> to vector<2x256xf32>
    %186 = arith.addf %184, %185 : vector<2x256xf32>
    %187 = vector.extract_strided_slice %182 {offsets = [2, 0], sizes = [2, 256], strides = [1, 1]} : vector<16x256xf32> to vector<2x256xf32>
    %188 = vector.extract_strided_slice %183 {offsets = [12, 0], sizes = [2, 256], strides = [1, 1]} : vector<16x256xf32> to vector<2x256xf32>
    %189 = arith.addf %187, %188 : vector<2x256xf32>
    %190 = vector.extract_strided_slice %182 {offsets = [4, 0], sizes = [2, 256], strides = [1, 1]} : vector<16x256xf32> to vector<2x256xf32>
    %191 = vector.extract_strided_slice %183 {offsets = [10, 0], sizes = [2, 256], strides = [1, 1]} : vector<16x256xf32> to vector<2x256xf32>
    %192 = arith.addf %190, %191 : vector<2x256xf32>
    %193 = vector.extract_strided_slice %182 {offsets = [6, 0], sizes = [2, 256], strides = [1, 1]} : vector<16x256xf32> to vector<2x256xf32>
    %194 = vector.extract_strided_slice %183 {offsets = [8, 0], sizes = [2, 256], strides = [1, 1]} : vector<16x256xf32> to vector<2x256xf32>
    %195 = arith.addf %193, %194 : vector<2x256xf32>
    %196 = vector.extract_strided_slice %182 {offsets = [8, 0], sizes = [2, 256], strides = [1, 1]} : vector<16x256xf32> to vector<2x256xf32>
    %197 = vector.extract_strided_slice %183 {offsets = [6, 0], sizes = [2, 256], strides = [1, 1]} : vector<16x256xf32> to vector<2x256xf32>
    %198 = arith.addf %196, %197 : vector<2x256xf32>
    %199 = vector.extract_strided_slice %182 {offsets = [10, 0], sizes = [2, 256], strides = [1, 1]} : vector<16x256xf32> to vector<2x256xf32>
    %200 = vector.extract_strided_slice %183 {offsets = [4, 0], sizes = [2, 256], strides = [1, 1]} : vector<16x256xf32> to vector<2x256xf32>
    %201 = arith.addf %199, %200 : vector<2x256xf32>
    %202 = vector.extract_strided_slice %182 {offsets = [12, 0], sizes = [2, 256], strides = [1, 1]} : vector<16x256xf32> to vector<2x256xf32>
    %203 = vector.extract_strided_slice %183 {offsets = [2, 0], sizes = [2, 256], strides = [1, 1]} : vector<16x256xf32> to vector<2x256xf32>
    %204 = arith.addf %202, %203 : vector<2x256xf32>
    %205 = vector.extract_strided_slice %182 {offsets = [14, 0], sizes = [2, 256], strides = [1, 1]} : vector<16x256xf32> to vector<2x256xf32>
    %206 = vector.extract_strided_slice %183 {offsets = [0, 0], sizes = [2, 256], strides = [1, 1]} : vector<16x256xf32> to vector<2x256xf32>
    %207 = arith.addf %205, %206 : vector<2x256xf32>
    %cst_38 = arith.constant 0.000000e+00 : f32
    %208 = vector.broadcast %cst_38 : f32 to vector<2x64xf32>
    %cst_39 = arith.constant 0.000000e+00 : f32
    %209 = vector.broadcast %cst_39 : f32 to vector<2x64xf32>
    %cst_40 = arith.constant dense<0.000000e+00> : vector<2x256xf32>
    %210 = tpu.matmul %208, %179, %cst_40 {dimension_numbers = #tpu.dot_dimension_numbers<[1], [0], [0], [1], [0, 0, 1, 1], [], []>} : vector<2x64xf32>, vector<64x256xf32>, vector<2x256xf32> -> vector<2x256xf32>
    %211 = arith.addf %186, %210 : vector<2x256xf32>
    %212 = arith.negf %211 : vector<2x256xf32>
    %213 = math.exp %212 : vector<2x256xf32>
    %cst_41 = arith.constant 1.000000e+00 : f32
    %214 = vector.broadcast %cst_41 : f32 to vector<2x256xf32>
    %215 = arith.addf %214, %213 : vector<2x256xf32>
    %216 = arith.divf %214, %215 : vector<2x256xf32>
    %217 = math.tanh %211 : vector<2x256xf32>
    %218 = vector.extract_strided_slice %216 {offsets = [0, 0], sizes = [2, 64], strides = [1, 1]} : vector<2x256xf32> to vector<2x64xf32>
    %219 = vector.extract_strided_slice %216 {offsets = [0, 64], sizes = [2, 64], strides = [1, 1]} : vector<2x256xf32> to vector<2x64xf32>
    %220 = vector.extract_strided_slice %217 {offsets = [0, 128], sizes = [2, 64], strides = [1, 1]} : vector<2x256xf32> to vector<2x64xf32>
    %221 = vector.extract_strided_slice %216 {offsets = [0, 192], sizes = [2, 64], strides = [1, 1]} : vector<2x256xf32> to vector<2x64xf32>
    %222 = arith.mulf %219, %209 : vector<2x64xf32>
    %223 = arith.mulf %218, %220 : vector<2x64xf32>
    %224 = arith.addf %222, %223 : vector<2x64xf32>
    %225 = math.tanh %224 : vector<2x64xf32>
    %226 = arith.mulf %221, %225 : vector<2x64xf32>
    %cst_42 = arith.constant dense<0.000000e+00> : vector<2x256xf32>
    %227 = tpu.matmul %226, %179, %cst_42 {dimension_numbers = #tpu.dot_dimension_numbers<[1], [0], [0], [1], [0, 0, 1, 1], [], []>} : vector<2x64xf32>, vector<64x256xf32>, vector<2x256xf32> -> vector<2x256xf32>
    %228 = arith.addf %189, %227 : vector<2x256xf32>
    %229 = arith.negf %228 : vector<2x256xf32>
    %230 = math.exp %229 : vector<2x256xf32>
    %cst_43 = arith.constant 1.000000e+00 : f32
    %231 = vector.broadcast %cst_43 : f32 to vector<2x256xf32>
    %232 = arith.addf %231, %230 : vector<2x256xf32>
    %233 = arith.divf %231, %232 : vector<2x256xf32>
    %234 = math.tanh %228 : vector<2x256xf32>
    %235 = vector.extract_strided_slice %233 {offsets = [0, 0], sizes = [2, 64], strides = [1, 1]} : vector<2x256xf32> to vector<2x64xf32>
    %236 = vector.extract_strided_slice %233 {offsets = [0, 64], sizes = [2, 64], strides = [1, 1]} : vector<2x256xf32> to vector<2x64xf32>
    %237 = vector.extract_strided_slice %234 {offsets = [0, 128], sizes = [2, 64], strides = [1, 1]} : vector<2x256xf32> to vector<2x64xf32>
    %238 = vector.extract_strided_slice %233 {offsets = [0, 192], sizes = [2, 64], strides = [1, 1]} : vector<2x256xf32> to vector<2x64xf32>
    %239 = arith.mulf %236, %224 : vector<2x64xf32>
    %240 = arith.mulf %235, %237 : vector<2x64xf32>
    %241 = arith.addf %239, %240 : vector<2x64xf32>
    %242 = math.tanh %241 : vector<2x64xf32>
    %243 = arith.mulf %238, %242 : vector<2x64xf32>
    %cst_44 = arith.constant dense<0.000000e+00> : vector<2x256xf32>
    %244 = tpu.matmul %243, %179, %cst_44 {dimension_numbers = #tpu.dot_dimension_numbers<[1], [0], [0], [1], [0, 0, 1, 1], [], []>} : vector<2x64xf32>, vector<64x256xf32>, vector<2x256xf32> -> vector<2x256xf32>
    %245 = arith.addf %192, %244 : vector<2x256xf32>
    %246 = arith.negf %245 : vector<2x256xf32>
    %247 = math.exp %246 : vector<2x256xf32>
    %cst_45 = arith.constant 1.000000e+00 : f32
    %248 = vector.broadcast %cst_45 : f32 to vector<2x256xf32>
    %249 = arith.addf %248, %247 : vector<2x256xf32>
    %250 = arith.divf %248, %249 : vector<2x256xf32>
    %251 = math.tanh %245 : vector<2x256xf32>
    %252 = vector.extract_strided_slice %250 {offsets = [0, 0], sizes = [2, 64], strides = [1, 1]} : vector<2x256xf32> to vector<2x64xf32>
    %253 = vector.extract_strided_slice %250 {offsets = [0, 64], sizes = [2, 64], strides = [1, 1]} : vector<2x256xf32> to vector<2x64xf32>
    %254 = vector.extract_strided_slice %251 {offsets = [0, 128], sizes = [2, 64], strides = [1, 1]} : vector<2x256xf32> to vector<2x64xf32>
    %255 = vector.extract_strided_slice %250 {offsets = [0, 192], sizes = [2, 64], strides = [1, 1]} : vector<2x256xf32> to vector<2x64xf32>
    %256 = arith.mulf %253, %241 : vector<2x64xf32>
    %257 = arith.mulf %252, %254 : vector<2x64xf32>
    %258 = arith.addf %256, %257 : vector<2x64xf32>
    %259 = math.tanh %258 : vector<2x64xf32>
    %260 = arith.mulf %255, %259 : vector<2x64xf32>
    %cst_46 = arith.constant dense<0.000000e+00> : vector<2x256xf32>
    %261 = tpu.matmul %260, %179, %cst_46 {dimension_numbers = #tpu.dot_dimension_numbers<[1], [0], [0], [1], [0, 0, 1, 1], [], []>} : vector<2x64xf32>, vector<64x256xf32>, vector<2x256xf32> -> vector<2x256xf32>
    %262 = arith.addf %195, %261 : vector<2x256xf32>
    %263 = arith.negf %262 : vector<2x256xf32>
    %264 = math.exp %263 : vector<2x256xf32>
    %cst_47 = arith.constant 1.000000e+00 : f32
    %265 = vector.broadcast %cst_47 : f32 to vector<2x256xf32>
    %266 = arith.addf %265, %264 : vector<2x256xf32>
    %267 = arith.divf %265, %266 : vector<2x256xf32>
    %268 = math.tanh %262 : vector<2x256xf32>
    %269 = vector.extract_strided_slice %267 {offsets = [0, 0], sizes = [2, 64], strides = [1, 1]} : vector<2x256xf32> to vector<2x64xf32>
    %270 = vector.extract_strided_slice %267 {offsets = [0, 64], sizes = [2, 64], strides = [1, 1]} : vector<2x256xf32> to vector<2x64xf32>
    %271 = vector.extract_strided_slice %268 {offsets = [0, 128], sizes = [2, 64], strides = [1, 1]} : vector<2x256xf32> to vector<2x64xf32>
    %272 = vector.extract_strided_slice %267 {offsets = [0, 192], sizes = [2, 64], strides = [1, 1]} : vector<2x256xf32> to vector<2x64xf32>
    %273 = arith.mulf %270, %258 : vector<2x64xf32>
    %274 = arith.mulf %269, %271 : vector<2x64xf32>
    %275 = arith.addf %273, %274 : vector<2x64xf32>
    %276 = math.tanh %275 : vector<2x64xf32>
    %277 = arith.mulf %272, %276 : vector<2x64xf32>
    %cst_48 = arith.constant dense<0.000000e+00> : vector<2x256xf32>
    %278 = tpu.matmul %277, %179, %cst_48 {dimension_numbers = #tpu.dot_dimension_numbers<[1], [0], [0], [1], [0, 0, 1, 1], [], []>} : vector<2x64xf32>, vector<64x256xf32>, vector<2x256xf32> -> vector<2x256xf32>
    %279 = arith.addf %198, %278 : vector<2x256xf32>
    %280 = arith.negf %279 : vector<2x256xf32>
    %281 = math.exp %280 : vector<2x256xf32>
    %cst_49 = arith.constant 1.000000e+00 : f32
    %282 = vector.broadcast %cst_49 : f32 to vector<2x256xf32>
    %283 = arith.addf %282, %281 : vector<2x256xf32>
    %284 = arith.divf %282, %283 : vector<2x256xf32>
    %285 = math.tanh %279 : vector<2x256xf32>
    %286 = vector.extract_strided_slice %284 {offsets = [0, 0], sizes = [2, 64], strides = [1, 1]} : vector<2x256xf32> to vector<2x64xf32>
    %287 = vector.extract_strided_slice %284 {offsets = [0, 64], sizes = [2, 64], strides = [1, 1]} : vector<2x256xf32> to vector<2x64xf32>
    %288 = vector.extract_strided_slice %285 {offsets = [0, 128], sizes = [2, 64], strides = [1, 1]} : vector<2x256xf32> to vector<2x64xf32>
    %289 = vector.extract_strided_slice %284 {offsets = [0, 192], sizes = [2, 64], strides = [1, 1]} : vector<2x256xf32> to vector<2x64xf32>
    %290 = arith.mulf %287, %275 : vector<2x64xf32>
    %291 = arith.mulf %286, %288 : vector<2x64xf32>
    %292 = arith.addf %290, %291 : vector<2x64xf32>
    %293 = math.tanh %292 : vector<2x64xf32>
    %294 = arith.mulf %289, %293 : vector<2x64xf32>
    %cst_50 = arith.constant dense<0.000000e+00> : vector<2x256xf32>
    %295 = tpu.matmul %294, %179, %cst_50 {dimension_numbers = #tpu.dot_dimension_numbers<[1], [0], [0], [1], [0, 0, 1, 1], [], []>} : vector<2x64xf32>, vector<64x256xf32>, vector<2x256xf32> -> vector<2x256xf32>
    %296 = arith.addf %201, %295 : vector<2x256xf32>
    %297 = arith.negf %296 : vector<2x256xf32>
    %298 = math.exp %297 : vector<2x256xf32>
    %cst_51 = arith.constant 1.000000e+00 : f32
    %299 = vector.broadcast %cst_51 : f32 to vector<2x256xf32>
    %300 = arith.addf %299, %298 : vector<2x256xf32>
    %301 = arith.divf %299, %300 : vector<2x256xf32>
    %302 = math.tanh %296 : vector<2x256xf32>
    %303 = vector.extract_strided_slice %301 {offsets = [0, 0], sizes = [2, 64], strides = [1, 1]} : vector<2x256xf32> to vector<2x64xf32>
    %304 = vector.extract_strided_slice %301 {offsets = [0, 64], sizes = [2, 64], strides = [1, 1]} : vector<2x256xf32> to vector<2x64xf32>
    %305 = vector.extract_strided_slice %302 {offsets = [0, 128], sizes = [2, 64], strides = [1, 1]} : vector<2x256xf32> to vector<2x64xf32>
    %306 = vector.extract_strided_slice %301 {offsets = [0, 192], sizes = [2, 64], strides = [1, 1]} : vector<2x256xf32> to vector<2x64xf32>
    %307 = arith.mulf %304, %292 : vector<2x64xf32>
    %308 = arith.mulf %303, %305 : vector<2x64xf32>
    %309 = arith.addf %307, %308 : vector<2x64xf32>
    %310 = math.tanh %309 : vector<2x64xf32>
    %311 = arith.mulf %306, %310 : vector<2x64xf32>
    %cst_52 = arith.constant dense<0.000000e+00> : vector<2x256xf32>
    %312 = tpu.matmul %311, %179, %cst_52 {dimension_numbers = #tpu.dot_dimension_numbers<[1], [0], [0], [1], [0, 0, 1, 1], [], []>} : vector<2x64xf32>, vector<64x256xf32>, vector<2x256xf32> -> vector<2x256xf32>
    %313 = arith.addf %204, %312 : vector<2x256xf32>
    %314 = arith.negf %313 : vector<2x256xf32>
    %315 = math.exp %314 : vector<2x256xf32>
    %cst_53 = arith.constant 1.000000e+00 : f32
    %316 = vector.broadcast %cst_53 : f32 to vector<2x256xf32>
    %317 = arith.addf %316, %315 : vector<2x256xf32>
    %318 = arith.divf %316, %317 : vector<2x256xf32>
    %319 = math.tanh %313 : vector<2x256xf32>
    %320 = vector.extract_strided_slice %318 {offsets = [0, 0], sizes = [2, 64], strides = [1, 1]} : vector<2x256xf32> to vector<2x64xf32>
    %321 = vector.extract_strided_slice %318 {offsets = [0, 64], sizes = [2, 64], strides = [1, 1]} : vector<2x256xf32> to vector<2x64xf32>
    %322 = vector.extract_strided_slice %319 {offsets = [0, 128], sizes = [2, 64], strides = [1, 1]} : vector<2x256xf32> to vector<2x64xf32>
    %323 = vector.extract_strided_slice %318 {offsets = [0, 192], sizes = [2, 64], strides = [1, 1]} : vector<2x256xf32> to vector<2x64xf32>
    %324 = arith.mulf %321, %309 : vector<2x64xf32>
    %325 = arith.mulf %320, %322 : vector<2x64xf32>
    %326 = arith.addf %324, %325 : vector<2x64xf32>
    %327 = math.tanh %326 : vector<2x64xf32>
    %328 = arith.mulf %323, %327 : vector<2x64xf32>
    %cst_54 = arith.constant dense<0.000000e+00> : vector<2x256xf32>
    %329 = tpu.matmul %328, %179, %cst_54 {dimension_numbers = #tpu.dot_dimension_numbers<[1], [0], [0], [1], [0, 0, 1, 1], [], []>} : vector<2x64xf32>, vector<64x256xf32>, vector<2x256xf32> -> vector<2x256xf32>
    %330 = arith.addf %207, %329 : vector<2x256xf32>
    %331 = arith.negf %330 : vector<2x256xf32>
    %332 = math.exp %331 : vector<2x256xf32>
    %cst_55 = arith.constant 1.000000e+00 : f32
    %333 = vector.broadcast %cst_55 : f32 to vector<2x256xf32>
    %334 = arith.addf %333, %332 : vector<2x256xf32>
    %335 = arith.divf %333, %334 : vector<2x256xf32>
    %336 = math.tanh %330 : vector<2x256xf32>
    %337 = vector.extract_strided_slice %335 {offsets = [0, 0], sizes = [2, 64], strides = [1, 1]} : vector<2x256xf32> to vector<2x64xf32>
    %338 = vector.extract_strided_slice %335 {offsets = [0, 64], sizes = [2, 64], strides = [1, 1]} : vector<2x256xf32> to vector<2x64xf32>
    %339 = vector.extract_strided_slice %336 {offsets = [0, 128], sizes = [2, 64], strides = [1, 1]} : vector<2x256xf32> to vector<2x64xf32>
    %340 = vector.extract_strided_slice %335 {offsets = [0, 192], sizes = [2, 64], strides = [1, 1]} : vector<2x256xf32> to vector<2x64xf32>
    %341 = arith.mulf %338, %326 : vector<2x64xf32>
    %342 = arith.mulf %337, %339 : vector<2x64xf32>
    %343 = arith.addf %341, %342 : vector<2x64xf32>
    %344 = math.tanh %343 : vector<2x64xf32>
    %345 = arith.mulf %340, %344 : vector<2x64xf32>
    %346 = tpu.concatenate %226, %243, %260, %277, %294, %311, %328, %345 in 0 : vector<2x64xf32>, vector<2x64xf32>, vector<2x64xf32>, vector<2x64xf32>, vector<2x64xf32>, vector<2x64xf32>, vector<2x64xf32>, vector<2x64xf32> -> vector<16x64xf32>
    %347 = vector.extract_strided_slice %346 {offsets = [0, 0], sizes = [16, 32], strides = [1, 1]} : vector<16x64xf32> to vector<16x32xf32>
    %348 = tpu.concatenate %345, %328, %311, %294, %277, %260, %243, %226 in 0 : vector<2x64xf32>, vector<2x64xf32>, vector<2x64xf32>, vector<2x64xf32>, vector<2x64xf32>, vector<2x64xf32>, vector<2x64xf32>, vector<2x64xf32> -> vector<16x64xf32>
    %349 = vector.extract_strided_slice %348 {offsets = [0, 32], sizes = [16, 32], strides = [1, 1]} : vector<16x64xf32> to vector<16x32xf32>
    %350 = tpu.concatenate %347, %349 in 1 : vector<16x32xf32>, vector<16x32xf32> -> vector<16x64xf32>
    %c0_56 = arith.constant 0 : index
    %c0_57 = arith.constant 0 : index
    %351 = vector.load %arg9[%c0_56, %c0_57] : memref<64x64xf32, #tpu.memory_space<vmem>>, vector<64x64xf32>
    %cst_58 = arith.constant dense<0.000000e+00> : vector<16x64xf32>
    %352 = tpu.matmul %350, %351, %cst_58 {dimension_numbers = #tpu.dot_dimension_numbers<[1], [0], [0], [1], [0, 0, 1, 1], [], []>} : vector<16x64xf32>, vector<64x64xf32>, vector<16x64xf32> -> vector<16x64xf32>
    %c0_59 = arith.constant 0 : index
    %c0_60 = arith.constant 0 : index
    %353 = vector.load %arg10[%c0_59, %c0_60] : memref<1x64xf32, #tpu.memory_space<vmem>>, vector<1x64xf32>
    %354 = vector.broadcast %353 : vector<1x64xf32> to vector<16x64xf32>
    %355 = arith.addf %352, %354 : vector<16x64xf32>
    %356 = math.tanh %355 : vector<16x64xf32>
    %c0_61 = arith.constant 0 : index
    %c0_62 = arith.constant 0 : index
    %357 = vector.load %arg11[%c0_61, %c0_62] : memref<64x1xf32, #tpu.memory_space<vmem>>, vector<64x1xf32>
    %cst_63 = arith.constant dense<0.000000e+00> : vector<16x1xf32>
    %358 = tpu.matmul %356, %357, %cst_63 {dimension_numbers = #tpu.dot_dimension_numbers<[1], [0], [0], [1], [0, 0, 1, 1], [], []>} : vector<16x64xf32>, vector<64x1xf32>, vector<16x1xf32> -> vector<16x1xf32>
    %c0_64 = arith.constant 0 : index
    %c0_65 = arith.constant 0 : index
    %359 = vector.load %arg12[%c0_64, %c0_65] : memref<1x1xf32, #tpu.memory_space<vmem>>, vector<1x1xf32>
    %360 = vector.broadcast %359 : vector<1x1xf32> to vector<16x1xf32>
    %361 = arith.addf %358, %360 : vector<16x1xf32>
    %cst_66 = arith.constant dense<0xFF800000> : vector<1xf32>
    %362 = vector.multi_reduction <maximumf>, %361, %cst_66 [0] : vector<16x1xf32> to vector<1xf32>
    %363 = vector.shape_cast %362 : vector<1xf32> to vector<1x1xf32>
    %364 = vector.broadcast %363 : vector<1x1xf32> to vector<16x1xf32>
    %365 = arith.subf %361, %364 : vector<16x1xf32>
    %366 = math.exp %365 : vector<16x1xf32>
    %367 = tpu.iota {dimensions = array<i32: 0>} : vector<16x16xi32>
    %c2_i32 = arith.constant 2 : i32
    %c0_i32 = arith.constant 0 : i32
    %368 = arith.cmpi eq, %c2_i32, %c0_i32 : i32
    %c1_i32 = arith.constant 1 : i32
    %369 = arith.select %368, %c1_i32, %c2_i32 : i32
    %370 = vector.broadcast %369 : i32 to vector<16x16xi32>
    %371 = arith.remsi %367, %370 : vector<16x16xi32>
    %c0_i32_67 = arith.constant 0 : i32
    %372 = vector.broadcast %c0_i32_67 : i32 to vector<16x16xi32>
    %373 = arith.cmpi ne, %371, %372 : vector<16x16xi32>
    %c0_i32_68 = arith.constant 0 : i32
    %374 = vector.broadcast %c0_i32_68 : i32 to vector<16x16xi32>
    %375 = arith.cmpi slt, %371, %374 : vector<16x16xi32>
    %c0_i32_69 = arith.constant 0 : i32
    %376 = arith.cmpi slt, %369, %c0_i32_69 : i32
    %377 = vector.broadcast %376 : i1 to vector<16x16xi1>
    %378 = vector.broadcast %377 : vector<16x16xi1> to vector<16x16xi1>
    %379 = arith.xori %375, %378 : vector<16x16xi1>
    %380 = arith.andi %379, %373 : vector<16x16xi1>
    %381 = vector.broadcast %369 : i32 to vector<16x16xi32>
    %382 = arith.addi %371, %381 : vector<16x16xi32>
    %383 = arith.select %380, %382, %371 : vector<16x16xi1>, vector<16x16xi32>
    %384 = tpu.iota {dimensions = array<i32: 1>} : vector<16x16xi32>
    %c2_i32_70 = arith.constant 2 : i32
    %c0_i32_71 = arith.constant 0 : i32
    %385 = arith.cmpi eq, %c2_i32_70, %c0_i32_71 : i32
    %c1_i32_72 = arith.constant 1 : i32
    %386 = arith.select %385, %c1_i32_72, %c2_i32_70 : i32
    %387 = vector.broadcast %386 : i32 to vector<16x16xi32>
    %388 = arith.remsi %384, %387 : vector<16x16xi32>
    %c0_i32_73 = arith.constant 0 : i32
    %389 = vector.broadcast %c0_i32_73 : i32 to vector<16x16xi32>
    %390 = arith.cmpi ne, %388, %389 : vector<16x16xi32>
    %c0_i32_74 = arith.constant 0 : i32
    %391 = vector.broadcast %c0_i32_74 : i32 to vector<16x16xi32>
    %392 = arith.cmpi slt, %388, %391 : vector<16x16xi32>
    %c0_i32_75 = arith.constant 0 : i32
    %393 = arith.cmpi slt, %386, %c0_i32_75 : i32
    %394 = vector.broadcast %393 : i1 to vector<16x16xi1>
    %395 = vector.broadcast %394 : vector<16x16xi1> to vector<16x16xi1>
    %396 = arith.xori %392, %395 : vector<16x16xi1>
    %397 = arith.andi %396, %390 : vector<16x16xi1>
    %398 = vector.broadcast %386 : i32 to vector<16x16xi32>
    %399 = arith.addi %388, %398 : vector<16x16xi32>
    %400 = arith.select %397, %399, %388 : vector<16x16xi1>, vector<16x16xi32>
    %401 = arith.cmpi eq, %383, %400 : vector<16x16xi32>
    %402 = arith.extui %401 : vector<16x16xi1> to vector<16x16xi32>
    %403 = arith.sitofp %402 : vector<16x16xi32> to vector<16x16xf32>
    %cst_76 = arith.constant dense<0.000000e+00> : vector<16x1xf32>
    %404 = tpu.matmul %403, %366, %cst_76 {dimension_numbers = #tpu.dot_dimension_numbers<[1], [0], [0], [1], [0, 0, 1, 1], [], []>} : vector<16x16xf32>, vector<16x1xf32>, vector<16x1xf32> -> vector<16x1xf32>
    %405 = arith.divf %366, %404 : vector<16x1xf32>
    %406 = tpu.iota {dimensions = array<i32: 1>} : vector<2x16xi32>
    %c2_i32_77 = arith.constant 2 : i32
    %c0_i32_78 = arith.constant 0 : i32
    %407 = arith.cmpi eq, %c2_i32_77, %c0_i32_78 : i32
    %c1_i32_79 = arith.constant 1 : i32
    %408 = arith.select %407, %c1_i32_79, %c2_i32_77 : i32
    %409 = vector.broadcast %408 : i32 to vector<2x16xi32>
    %410 = arith.remsi %406, %409 : vector<2x16xi32>
    %c0_i32_80 = arith.constant 0 : i32
    %411 = vector.broadcast %c0_i32_80 : i32 to vector<2x16xi32>
    %412 = arith.cmpi ne, %410, %411 : vector<2x16xi32>
    %c0_i32_81 = arith.constant 0 : i32
    %413 = vector.broadcast %c0_i32_81 : i32 to vector<2x16xi32>
    %414 = arith.cmpi slt, %410, %413 : vector<2x16xi32>
    %c0_i32_82 = arith.constant 0 : i32
    %415 = arith.cmpi slt, %408, %c0_i32_82 : i32
    %416 = vector.broadcast %415 : i1 to vector<2x16xi1>
    %417 = vector.broadcast %416 : vector<2x16xi1> to vector<2x16xi1>
    %418 = arith.xori %414, %417 : vector<2x16xi1>
    %419 = arith.andi %418, %412 : vector<2x16xi1>
    %420 = vector.broadcast %408 : i32 to vector<2x16xi32>
    %421 = arith.addi %410, %420 : vector<2x16xi32>
    %422 = arith.select %419, %421, %410 : vector<2x16xi1>, vector<2x16xi32>
    %423 = tpu.iota {dimensions = array<i32: 0>} : vector<2x16xi32>
    %424 = arith.cmpi eq, %422, %423 : vector<2x16xi32>
    %425 = arith.extui %424 : vector<2x16xi1> to vector<2x16xi32>
    %426 = arith.sitofp %425 : vector<2x16xi32> to vector<2x16xf32>
    %427 = vector.broadcast %405 : vector<16x1xf32> to vector<16x64xf32>
    %428 = arith.mulf %350, %427 : vector<16x64xf32>
    %cst_83 = arith.constant dense<0.000000e+00> : vector<2x64xf32>
    %429 = tpu.matmul %426, %428, %cst_83 {dimension_numbers = #tpu.dot_dimension_numbers<[1], [0], [0], [1], [0, 0, 1, 1], [], []>} : vector<2x16xf32>, vector<16x64xf32>, vector<2x64xf32> -> vector<2x64xf32>
    %c0_84 = arith.constant 0 : index
    %c0_85 = arith.constant 0 : index
    %430 = vector.load %arg13[%c0_84, %c0_85] : memref<64x128xf32, #tpu.memory_space<vmem>>, vector<64x128xf32>
    %cst_86 = arith.constant dense<0.000000e+00> : vector<2x128xf32>
    %431 = tpu.matmul %429, %430, %cst_86 {dimension_numbers = #tpu.dot_dimension_numbers<[1], [0], [0], [1], [0, 0, 1, 1], [], []>} : vector<2x64xf32>, vector<64x128xf32>, vector<2x128xf32> -> vector<2x128xf32>
    %c0_87 = arith.constant 0 : index
    %c0_88 = arith.constant 0 : index
    %432 = vector.load %arg14[%c0_87, %c0_88] : memref<1x128xf32, #tpu.memory_space<vmem>>, vector<1x128xf32>
    %433 = vector.broadcast %432 : vector<1x128xf32> to vector<2x128xf32>
    %434 = arith.addf %431, %433 : vector<2x128xf32>
    %cst_89 = arith.constant 0.000000e+00 : f32
    %435 = vector.broadcast %cst_89 : f32 to vector<2x128xf32>
    %436 = arith.maximumf %434, %435 : vector<2x128xf32>
    %c0_90 = arith.constant 0 : index
    %c0_91 = arith.constant 0 : index
    %437 = vector.load %arg15[%c0_90, %c0_91] : memref<128x6xf32, #tpu.memory_space<vmem>>, vector<128x6xf32>
    %cst_92 = arith.constant dense<0.000000e+00> : vector<2x6xf32>
    %438 = tpu.matmul %436, %437, %cst_92 {dimension_numbers = #tpu.dot_dimension_numbers<[1], [0], [0], [1], [0, 0, 1, 1], [], []>} : vector<2x128xf32>, vector<128x6xf32>, vector<2x6xf32> -> vector<2x6xf32>
    %c0_93 = arith.constant 0 : index
    %c0_94 = arith.constant 0 : index
    %439 = vector.load %arg16[%c0_93, %c0_94] : memref<1x6xf32, #tpu.memory_space<vmem>>, vector<1x6xf32>
    %440 = vector.broadcast %439 : vector<1x6xf32> to vector<2x6xf32>
    %441 = arith.addf %438, %440 : vector<2x6xf32>
    %c0_95 = arith.constant 0 : index
    %c0_96 = arith.constant 0 : index
    %442 = vector.load %arg17[%c0_95, %c0_96] : memref<2x6xf32, #tpu.memory_space<vmem>>, vector<2x6xf32>
    tpu.vector_store %arg17[%c0_95, %c0_96], %441 {strides = array<i32>} : memref<2x6xf32, #tpu.memory_space<vmem>>, vector<2x6xf32>,
    return
  }
}

</mosaic_0001>

<bundles_post_ra>
// kernel: gesture_lstm_forward.1
= control target key start
LH: loop header
LB: loop body
LE: loop exit
PB: predicated region body
PF: predicated region fallthrough
CT: control target
= control target key end

     0   :  { %s3918_s0 = inlined_call_operand.vmem [shape: f32[16,16], index: 0, kind: input, shape index: {}]   ;;  %s3919_s1 = inlined_call_operand.vmem [shape: f32[16,256], index: 1, kind: input, shape index: {}]   ;;  %s3920_s2 = inlined_call_operand.vmem [shape: f32[16,256], index: 2, kind: input, shape index: {}]   ;;  %s3921_s3 = inlined_call_operand.vmem [shape: f32[1,256], index: 3, kind: input, shape index: {}]   ;;  %s3922_s4 = inlined_call_operand.vmem [shape: f32[64,256], index: 4, kind: input, shape index: {}]   ;;  %s3923_s5 = inlined_call_operand.vmem [shape: f32[64,256], index: 5, kind: input, shape index: {}]   ;;  %s3924_s6 = inlined_call_operand.vmem [shape: f32[64,256], index: 6, kind: input, shape index: {}]   ;;  %s3925_s7 = inlined_call_operand.vmem [shape: f32[1,256], index: 7, kind: input, shape index: {}]   ;;  %s3926_s8 = inlined_call_operand.vmem [shape: f32[64,256], index: 8, kind: input, shape index: {}]   ;;  %s3927_s9 = inlined_call_operand.vmem [shape: f32[64,64], index: 9, kind: input, shape index: {}]   ;;  %s3928_s10 = inlined_call_operand.vmem [shape: f32[1,64], index: 10, kind: input, shape index: {}]   ;;  %s3929_s11 = inlined_call_operand.vmem [shape: f32[64,1], index: 11, kind: input, shape index: {}]   ;;  %s3930_s12 = inlined_call_operand.<no memory space> [shape: f32[1,1], index: 12, kind: input, shape index: {}]   ;;  %s3931_s13 = inlined_call_operand.vmem [shape: f32[64,128], index: 13, kind: input, shape index: {}]   ;;  %s3932_s14 = inlined_call_operand.vmem [shape: f32[1,128], index: 14, kind: input, shape index: {}]   ;;  %s3933_s15 = inlined_call_operand.vmem [shape: f32[128,6], index: 15, kind: input, shape index: {}]   ;;  %s3934_s16 = inlined_call_operand.vmem [shape: f32[1,6], index: 16, kind: input, shape index: {}]   ;;  %s3935_s17 = inlined_call_operand.hbm [shape: f32[2,6], index: 17, kind: output, shape index: {}]  }
   0x1   :  { %3938 = sst [smem:[#allocation6_spill]] %s3918_s0  ;;  %v22_v0 = vstv %s3930_s12 }
   0x2   :  { %3939 = sst [smem:[#allocation7_spill]] %s3919_s1  ;;  %23 = vst [vmem:[#allocation2] sm:$0x1] %v22_v0 }
   0x3   :  { %s3940_s28 = sld [smem:[#allocation7_spill]]  ;;  %v67_v2 = vld [vmem:[%s3920_s2 + $0x10] sm:$0xff]  ;;  %v68_v3 = vld [vmem:[%s3920_s2 + $0x18] sm:$0xff]  ;;  %v65_v6 = vld [vmem:[%s3920_s2] sm:$0xff]  ;;  %vm91_vm0 = vcmask 130048  }
   0x4   :  { %158 = vmatpush.msra.mxu2 %v67_v2  ;;  %181 = vmatpush.msra.mxu3 %v68_v3  ;;  %v66_v7 = vld [vmem:[%s3920_s2 + $0x8] sm:$0xff]  ;;  %s3941_s27 = sld [smem:[#allocation6_spill]]  ;;  %v2924_v10 = vld [vmem:[%s3922_s4 + $0x70] sm:$0xff]  ;;  %v2932_v11 = vld [vmem:[%s3922_s4 + $0x78] sm:$0xff] }
   0x5   :  { %v2937_v12 = vld [vmem:[%s3922_s4 + $0x60] sm:$0xff]  ;;  %v2944_v13 = vld [vmem:[%s3922_s4 + $0x68] sm:$0xff]  ;;  %v2949_v14 = vld [vmem:[%s3922_s4 + $0x50] sm:$0xff] }
   0x6   :  { %159 = vmatpush.msra.mxu2 %v65_v6  ;;  %182 = vmatpush.msra.mxu3 %v66_v7  ;;  %v2957_v15 = vld [vmem:[%s3922_s4 + $0x58] sm:$0xff] }
   0x8   :  { %325 = vmatpush.msrb.mxu2 %v2924_v10  ;;  %345 = vmatpush.msrb.mxu3 %v2932_v11 }
   0x9   :  { %v63_v1 = vld [vmem:[%s3940_s28 + $0x10] sm:$0xff]  ;;  %v61_v4 = vld [vmem:[%s3940_s28] sm:$0xff]  ;;  %v64_v5 = vld [vmem:[%s3940_s28 + $0x18] sm:$0xff] }
   0xa   :  { %112 = vmatpush.msra.mxu0 %v63_v1  ;;  %135 = vmatpush.msra.mxu1 %v64_v5  ;;  %v59_v8 = vld [vmem:[%s3941_s27] sm:$0xff]  ;;  %v62_v9 = vld [vmem:[%s3940_s28 + $0x8] sm:$0xff] }
   0xb   :  { %2474 = vmatmul.msk.f32.vlgmr.msra.gmra.mxu2 %vm91_vm0, %v59_v8  ;;  %2476 = vmatmul.msk.f32.vlgmr.msra.gmra.mxu3 %vm91_vm0, %v59_v8  ;;  %v60_v16 = vld [vmem:[%s3941_s27 + $0x8] sm:$0xff] }
   0xc   :  { %113 = vmatpush.msra.mxu0 %v61_v4  ;;  %136 = vmatpush.msra.mxu1 %v62_v9 }
   0xd   :  { %2470 = vmatmul.msk.f32.vlgmr.msra.gmra.mxu0 %vm91_vm0, %v59_v8  ;;  %2472 = vmatmul.msk.f32.vlgmr.msra.gmra.mxu1 %vm91_vm0, %v59_v8 }
   0xe   :  { %230 = vmatpush.msrb.mxu0 %v2924_v10  ;;  %250 = vmatpush.msrb.mxu1 %v2932_v11 }
   0xf   :  { %326 = vmatpush.msrb.mxu2 %v2937_v12 }
  0x10   :  { %231 = vmatpush.msrb.mxu0 %v2937_v12  ;;  %251 = vmatpush.msrb.mxu1 %v2944_v13 }
  0x12   :  { %232 = vmatpush.msrb.mxu0 %v2949_v14 }
  0x13   :  { %24 = vsyncpa [#allocation4], 0  ;;  %v2969_v17 = vld [vmem:[%s3922_s4 + $0x40] sm:$0xff]  ;;  %v2974_v18 = vld [vmem:[%s3922_s4 + $0x48] sm:$0xff]  ;;  %346 = vmatpush.msrb.mxu3 %v2944_v13  ;;  %327 = vmatpush.msrb.mxu2 %v2949_v14  ;;  %v2797_v27 = vmov 0.0   ;;  %vm218_vm9 = vcmask 523264  }
  0x14   :  { %252 = vmatpush.msrb.mxu1 %v2957_v15  ;;  %2475 = vmatmul.msk.f32.gmra.mxu2 %vm91_vm0, %v60_v16  ;;  %v2985_v19 = vld [vmem:[%s3922_s4 + $0x30] sm:$0xff]  ;;  %v2990_v20 = vld [vmem:[%s3922_s4 + $0x38] sm:$0xff]  ;;  %v2998_v21 = vld [vmem:[%s3922_s4 + $0x20] sm:$0xff]  ;;  %s2800_s24 = smov [#allocation3]   ;;  %s2461_s26 = sshll.u32 %s3935_s17, 4  ;;  %s2462_s26 = int_to_ptr.hbm [resolvable:$true] %s2461_s26 }
  0x15   :  { %2471 = vmatmul.msk.f32.gmra.mxu0 %vm91_vm0, %v60_v16  ;;  %2477 = vmatmul.msk.f32.gmra.mxu3 %vm91_vm0, %v60_v16  ;;  %v3003_v22 = vld [vmem:[%s3922_s4 + $0x28] sm:$0xff]  ;;  %v3011_v23 = vld [vmem:[%s3922_s4 + $0x10] sm:$0xff]  ;;  %v3016_v24 = vld [vmem:[%s3922_s4 + $0x18] sm:$0xff]  ;;  %s2459_s25 = sshll.u32 %s2800_s24, 4  ;;  %s2460_s25 = int_to_ptr.vmem [resolvable:$true] %s2459_s25 }
  0x16   :  { %233 = vmatpush.msrb.mxu0 %v2969_v17  ;;  %253 = vmatpush.msrb.mxu1 %v2974_v18  ;;  %v3025_v25 = vld [vmem:[%s3922_s4] sm:$0xff]  ;;  %v3030_v26 = vld [vmem:[%s3922_s4 + $0x8] sm:$0xff] }
  0x17   :  { %2473 = vmatmul.msk.f32.gmra.mxu1 %vm91_vm0, %v60_v16  ;;  %347 = vmatpush.msrb.mxu3 %v2957_v15  ;;  %v69_v30 = vld [vmem:[%s3921_s3] sm:$0x3]  ;;  %s2798_s3 = smov 64  }
  0x18   :  { %234 = vmatpush.msrb.mxu0 %v2985_v19  ;;  %254 = vmatpush.msrb.mxu1 %v2990_v20  ;;  %v87_v31 = vperm.slane %v69_v30, 0  ;;  %v88_v38 = vperm.slane %v69_v30, 1 }
  0x19   :  { %328 = vmatpush.msrb.mxu2 %v2969_v17  ;;  %348 = vmatpush.msrb.mxu3 %v2974_v18 }
  0x1a   :  { %235 = vmatpush.msrb.mxu0 %v2998_v21  ;;  %255 = vmatpush.msrb.mxu1 %v3003_v22 }
  0x1b   :  { %329 = vmatpush.msrb.mxu2 %v2985_v19  ;;  %349 = vmatpush.msrb.mxu3 %v2990_v20 }
  0x1c   :  { %236 = vmatpush.msrb.mxu0 %v3011_v23  ;;  %256 = vmatpush.msrb.mxu1 %v3016_v24 }
  0x1d   :  { %330 = vmatpush.msrb.mxu2 %v2998_v21  ;;  %350 = vmatpush.msrb.mxu3 %v3003_v22 }
  0x1e   :  { %237 = vmatpush.msrb.mxu0 %v3025_v25  ;;  %257 = vmatpush.msrb.mxu1 %v3030_v26 }
  0x1f   :  { %238 = vmatmul.f32.vlgmr.msrb.gmra.mxu0 %v2797_v27  ;;  %258 = vmatmul.f32.vlgmr.msrb.gmra.mxu1 %v2797_v27 }
  0x20   :  { %331 = vmatpush.msrb.mxu2 %v3011_v23  ;;  %351 = vmatpush.msrb.mxu3 %v3016_v24 }
  0x21   :  { %430 = vmatpush.msra.mxu0 %v2924_v10  ;;  %450 = vmatpush.msra.mxu1 %v2932_v11 }
  0x22   :  { %332 = vmatpush.msrb.mxu2 %v3025_v25  ;;  %352 = vmatpush.msrb.mxu3 %v3030_v26 }
  0x23   :  { %431 = vmatpush.msra.mxu0 %v2937_v12  ;;  %451 = vmatpush.msra.mxu1 %v2944_v13 }
  0x24   :  { %535 = vmatpush.msra.mxu2 %v2924_v10  ;;  %555 = vmatpush.msra.mxu3 %v2932_v11 }
  0x25   :  { %432 = vmatpush.msra.mxu0 %v2949_v14  ;;  %452 = vmatpush.msra.mxu1 %v2957_v15 }
  0x26   :  { %536 = vmatpush.msra.mxu2 %v2937_v12  ;;  %556 = vmatpush.msra.mxu3 %v2944_v13 }
  0x27   :  { %433 = vmatpush.msra.mxu0 %v2969_v17  ;;  %453 = vmatpush.msra.mxu1 %v2974_v18 }
  0x28   :  { %537 = vmatpush.msra.mxu2 %v2949_v14  ;;  %557 = vmatpush.msra.mxu3 %v2957_v15 }
  0x29   :  { %434 = vmatpush.msra.mxu0 %v2985_v19  ;;  %454 = vmatpush.msra.mxu1 %v2990_v20 }
  0x2a   :  { %538 = vmatpush.msra.mxu2 %v2969_v17  ;;  %558 = vmatpush.msra.mxu3 %v2974_v18 }
  0x2b   :  { %435 = vmatpush.msra.mxu0 %v2998_v21  ;;  %455 = vmatpush.msra.mxu1 %v3003_v22 }
  0x2c   :  { %539 = vmatpush.msra.mxu2 %v2985_v19  ;;  %559 = vmatpush.msra.mxu3 %v2990_v20 }
  0x2d   :  { %436 = vmatpush.msra.mxu0 %v3011_v23  ;;  %456 = vmatpush.msra.mxu1 %v3016_v24 }
  0x2e   :  { %540 = vmatpush.msra.mxu2 %v2998_v21  ;;  %560 = vmatpush.msra.mxu3 %v3003_v22 }
  0x2f   :  { %437 = vmatpush.msra.mxu0 %v3025_v25  ;;  %457 = vmatpush.msra.mxu1 %v3030_v26 }
  0x30   :  { %541 = vmatpush.msra.mxu2 %v3011_v23  ;;  %561 = vmatpush.msra.mxu3 %v3016_v24 }
  0x31   :  { %640 = vmatpush.msrb.mxu0 %v2924_v10  ;;  %660 = vmatpush.msrb.mxu1 %v2932_v11 }
  0x32   :  { %542 = vmatpush.msra.mxu2 %v3025_v25  ;;  %562 = vmatpush.msra.mxu3 %v3030_v26 }
  0x33   :  { %641 = vmatpush.msrb.mxu0 %v2937_v12  ;;  %661 = vmatpush.msrb.mxu1 %v2944_v13 }
  0x35   :  { %642 = vmatpush.msrb.mxu0 %v2949_v14  ;;  %662 = vmatpush.msrb.mxu1 %v2957_v15 }
  0x37   :  { %643 = vmatpush.msrb.mxu0 %v2969_v17  ;;  %663 = vmatpush.msrb.mxu1 %v2974_v18 }
  0x39   :  { %644 = vmatpush.msrb.mxu0 %v2985_v19  ;;  %664 = vmatpush.msrb.mxu1 %v2990_v20 }
  0x3b   :  { %645 = vmatpush.msrb.mxu0 %v2998_v21  ;;  %665 = vmatpush.msrb.mxu1 %v3003_v22 }
  0x3d   :  { %646 = vmatpush.msrb.mxu0 %v3011_v23  ;;  %666 = vmatpush.msrb.mxu1 %v3016_v24 }
  0x3f   :  { %647 = vmatpush.msrb.mxu0 %v3025_v25  ;;  %667 = vmatpush.msrb.mxu1 %v3030_v26 }
  0x8a   :  { %v115_v28 = vpop.f32.mrf.mxu0  ;;  %v138_v29 = vpop.f32.mrf.mxu1 }
  0x8b   :  { %v3107_v48 = vadd.f32 %v115_v28, %v87_v31  ;;  %v3116_v57 = vadd.f32 %v138_v29, %v88_v38 }
  0x8e   :  { %v161_v32 = vpop.f32.mrf.mxu2  ;;  %v184_v36 = vpop.f32.mrf.mxu3 }
  0x8f   :  { %v206_v34 = vrot.slane %v161_v32, 6  ;;  %v212_v35 = vrot.slane %v161_v32, 2  ;;  %v207_v39 = vrot.slane %v184_v36, 6  ;;  %v213_v40 = vrot.slane %v184_v36, 2 }
  0x92   :  { %v118_v33 = vpop.f32.mrf.mxu0 }
  0x93   :  { %v119_v37 = vadd.f32 %v118_v33, %v87_v31 }
  0x94   :  { %v141_v42 = vpop.f32.mrf.mxu1 }
  0x95   :  { %v3097_v41 = vadd.f32 %v212_v35, %v119_v37  ;;  %v3099_v43 = vadd.f32 %v206_v34, %v119_v37  ;;  %v142_v44 = vadd.f32 %v141_v42, %v88_v38 }
  0x97   :  { %v3101_v45 = vadd.f32 %v213_v40, %v142_v44  ;;  %v3103_v46 = vadd.f32 %v207_v39, %v142_v44  ;;  %v3105_v47 = vpop.f32.mrf.mxu2 }
  0x98   :  { %v192_v49 = vrot.slane %v3105_v47, 6  ;;  %v3114_v55 = vpop.f32.mrf.mxu3 }
  0x99   :  { %v193_v58 = vrot.slane %v3114_v55, 6 }
  0x9a   :  { %v3111_v50 = vadd.f32 %v192_v49, %v3107_v48 }
  0x9b   :  { %v3120_v59 = vadd.f32 %v193_v58, %v3116_v57 }
  0x9c   :  { %v239_v51 = vpop.f32.mrf.mxu0  ;;  %v259_v60 = vpop.f32.mrf.mxu1 }
  0x9d   :  { %v262_v52 = vadd.f32 %v239_v51, %v3111_v50  ;;  %v263_v63 = vadd.f32 %v259_v60, %v3120_v59 }
  0x9f   :  { %v2478_v53 = vmul.f32 -1.442695, %v262_v52  ;;  %v2479_v16 = vmul.f32 -1.442695, %v263_v63 }
  0xa1   :  { %2567 = vpow2.f32 %v2478_v53  ;;  %v198_v53 = vrot.slane %v3105_v47, 2 }
  0xa7   :  { %v2568_v54 = vpop.eup %2567 }
  0xa8   :  { %v270_v56 = vadd.f32 1.0, %v2568_v54 }
  0xaa   :  { %2569 = vrcp.f32 %v270_v56  ;;  %v283_v1 = vand.u32 2147483648, %v270_v56  ;;  %v281_v3 = vand.u32 2147483647, %v270_v56  ;;  %vm277_vm2 = vweird.f32 %v270_v56 }
  0xab   :  { %2571 = vtanh.f32 %v263_v63 }
  0xac   :  { %v284_v5 = vor.u32 1.1754944e-38, %v283_v1  ;;  %vm282_vm4 = vcmp.eq.f32.partialorder %v281_v3, 8.507059e+37  ;;  %2573 = vpow2.f32 %v2479_v16  ;;  %v199_v1 = vrot.slane %v3114_v55, 2 }
  0xae   :  { %v3156_v3 = vadd.f32 %v199_v1, %v3116_v57 }
  0xb0   :  { %v2570_v61 = vpop.eup %2569 }
  0xb1   :  { %v273_v62 = vmul.f32 %v2570_v61, %v270_v56  ;;  %vm278_vm1 = vweird.f32 %v2570_v61  ;;  %v2572_v7 = vpop.eup %2571  ;;  %v3151_v56 = vadd.f32 %v198_v53, %v3107_v48 }
  0xb2   :  { %vm279_vm3 = vmor %vm277_vm2, %vm278_vm1  ;;  %v2574_v28 = vpop.eup %2573 }
  0xb3   :  { %v274_v0 = vsub.f32 1.0, %v273_v62  ;;  %v271_v29 = vadd.f32 1.0, %v2574_v28 }
  0xb5   :  { %v275_v2 = vmul.f32 %v2570_v61, %v274_v0  ;;  %2575 = vrcp.f32 %v271_v29  ;;  %vm292_vm5 = vweird.f32 %v271_v29  ;;  %v298_v38 = vand.u32 2147483648, %v271_v29 }
  0xb6   :  { %v296_v39 = vand.u32 2147483647, %v271_v29 }
  0xb7   :  { %v276_v4 = vadd.f32 %v2570_v61, %v275_v2  ;;  %v299_v42 = vor.u32 1.1754944e-38, %v298_v38 }
  0xb8   :  { %vm297_vm8 = vcmp.eq.f32.partialorder %v296_v39, 8.507059e+37 }
  0xb9   :  { %v280_v6 = vsel %vm279_vm3, %v2570_v61, %v276_v4 }
  0xba   :  { %v285_v8 = vsel %vm282_vm4, %v284_v5, %v280_v6 }
  0xbb   :  { %v304_v9 = vmul.f32 %v2572_v7, %v285_v8  ;;  %v2576_v30 = vpop.eup %2575  ;;  %v303_v34 = vmul.f32 0.0, %v285_v8 }
  0xbc   :  { %v288_v31 = vmul.f32 %v2576_v30, %v271_v29  ;;  %vm293_vm6 = vweird.f32 %v2576_v30 }
  0xbd   :  { %306 = vrot.lane.b32.xlu0 %v304_v9, %s2798_s3  ;;  %vm294_vm7 = vmor %vm292_vm5, %vm293_vm6 }
  0xbe   :  { %v289_v32 = vsub.f32 1.0, %v288_v31 }
  0xc0   :  { %v290_v33 = vmul.f32 %v2576_v30, %v289_v32 }
  0xc2   :  { %v291_v37 = vadd.f32 %v2576_v30, %v290_v33 }
  0xc4   :  { %v295_v40 = vsel %vm294_vm7, %v2576_v30, %v291_v37 }
  0xc5   :  { %v300_v49 = vsel %vm297_vm8, %v299_v42, %v295_v40 }
 0x12f   :  { %v307_v35 = vpop.permute.xlu0 %306 }
 0x130   :  { %v3124_v36 = vadd.f32 %v307_v35, %v303_v34 }
 0x132   :  { %2577 = vtanh.f32 %v3124_v36  ;;  %v405_v55 = vrot.slane %v3124_v36, 6 }
 0x138   :  { %v2578_v44 = vpop.eup %2577 }
 0x139   :  { %v3127_v51 = vmul.f32 %v2578_v44, %v300_v49 }
 0x13b   :  { %313 = vrot.lane.b32.xlu0 %v3127_v51, %s2798_s3 }
 0x1ad   :  { %v314_v52 = vpop.permute.xlu0 %313 }
 0x1ae   :  { %2480 = vmatmul.msk.f32.vlgmr.msrb.gmra.mxu2 %vm218_vm9, %v314_v52  ;;  %2481 = vmatmul.msk.f32.vlgmr.msrb.gmra.mxu3 %vm218_vm9, %v314_v52 }
 0x1af   :  { %738 = vmatpush.msrb.mxu2 %v2924_v10  ;;  %758 = vmatpush.msrb.mxu3 %v2932_v11 }
 0x1b1   :  { %739 = vmatpush.msrb.mxu2 %v2937_v12  ;;  %759 = vmatpush.msrb.mxu3 %v2944_v13 }
 0x1b3   :  { %740 = vmatpush.msrb.mxu2 %v2949_v14  ;;  %760 = vmatpush.msrb.mxu3 %v2957_v15 }
 0x1b5   :  { %741 = vmatpush.msrb.mxu2 %v2969_v17  ;;  %761 = vmatpush.msrb.mxu3 %v2974_v18 }
 0x1b7   :  { %742 = vmatpush.msrb.mxu2 %v2985_v19  ;;  %762 = vmatpush.msrb.mxu3 %v2990_v20 }
 0x1b9   :  { %743 = vmatpush.msrb.mxu2 %v2998_v21  ;;  %763 = vmatpush.msrb.mxu3 %v3003_v22 }
 0x1bb   :  { %744 = vmatpush.msrb.mxu2 %v3011_v23  ;;  %764 = vmatpush.msrb.mxu3 %v3016_v24 }
 0x1bd   :  { %745 = vmatpush.msrb.mxu2 %v3025_v25  ;;  %765 = vmatpush.msrb.mxu3 %v3030_v26 }
 0x231   :  { %v334_v54 = vpop.f32.mrf.mxu2  ;;  %v354_v0 = vpop.f32.mrf.mxu3 }
 0x232   :  { %v359_v58 = vrot.slane %v334_v54, 6  ;;  %v360_v2 = vrot.slane %v354_v0, 6 }
 0x234   :  { %v363_v60 = vadd.f32 %v359_v58, %v3151_v56  ;;  %v364_v4 = vadd.f32 %v360_v2, %v3156_v3 }
 0x236   :  { %v2482_v61 = vmul.f32 -1.442695, %v363_v60  ;;  %v2483_v32 = vmul.f32 -1.442695, %v364_v4 }
 0x238   :  { %2579 = vpow2.f32 %v2482_v61 }
 0x23e   :  { %v2580_v62 = vpop.eup %2579 }
 0x23f   :  { %v371_v63 = vadd.f32 1.0, %v2580_v62 }
 0x241   :  { %2581 = vrcp.f32 %v371_v63  ;;  %v384_v6 = vand.u32 2147483648, %v371_v63  ;;  %v382_v8 = vand.u32 2147483647, %v371_v63  ;;  %vm378_vm11 = vweird.f32 %v371_v63 }
 0x242   :  { %2583 = vtanh.f32 %v364_v4 }
 0x243   :  { %v385_v16 = vor.u32 1.1754944e-38, %v384_v6  ;;  %vm383_vm13 = vcmp.eq.f32.partialorder %v382_v8, 8.507059e+37  ;;  %2585 = vpow2.f32 %v2483_v32 }
 0x247   :  { %v2582_v47 = vpop.eup %2581 }
 0x248   :  { %v374_v48 = vmul.f32 %v2582_v47, %v371_v63  ;;  %vm379_vm10 = vweird.f32 %v2582_v47  ;;  %v2584_v57 = vpop.eup %2583 }
 0x249   :  { %vm380_vm12 = vmor %vm378_vm11, %vm379_vm10  ;;  %v2586_v33 = vpop.eup %2585 }
 0x24a   :  { %v375_v5 = vsub.f32 1.0, %v374_v48  ;;  %v372_v34 = vadd.f32 1.0, %v2586_v33 }
 0x24c   :  { %v376_v7 = vmul.f32 %v2582_v47, %v375_v5  ;;  %2587 = vrcp.f32 %v372_v34  ;;  %v399_v44 = vand.u32 2147483648, %v372_v34  ;;  %vm393_vm15 = vweird.f32 %v372_v34 }
 0x24d   :  { %v397_v49 = vand.u32 2147483647, %v372_v34 }
 0x24e   :  { %v377_v9 = vadd.f32 %v2582_v47, %v376_v7  ;;  %v400_v53 = vor.u32 1.1754944e-38, %v399_v44 }
 0x24f   :  { %vm398_vm2 = vcmp.eq.f32.partialorder %v397_v49, 8.507059e+37 }
 0x250   :  { %v381_v28 = vsel %vm380_vm12, %v2582_v47, %v377_v9  ;;  %vm1039_vm12 = vcmask 1041408  }
 0x251   :  { %v386_v29 = vsel %vm383_vm13, %v385_v16, %v381_v28  ;;  %vm1041_vm13 = vcmask 1043456  }
 0x252   :  { %v408_v30 = vmul.f32 %v2584_v57, %v386_v29  ;;  %v407_v31 = vmul.f32 %v405_v55, %v386_v29  ;;  %v2588_v35 = vpop.eup %2587 }
 0x253   :  { %v389_v37 = vmul.f32 %v2588_v35, %v372_v34  ;;  %vm394_vm14 = vweird.f32 %v2588_v35 }
 0x254   :  { %410 = vrot.lane.b32.xlu1 %v408_v30, %s2798_s3  ;;  %vm395_vm1 = vmor %vm393_vm15, %vm394_vm14 }
 0x255   :  { %v390_v38 = vsub.f32 1.0, %v389_v37 }
 0x257   :  { %v391_v39 = vmul.f32 %v2588_v35, %v390_v38 }
 0x259   :  { %v392_v36 = vadd.f32 %v2588_v35, %v391_v39 }
 0x25b   :  { %v396_v52 = vsel %vm395_vm1, %v2588_v35, %v392_v36 }
 0x25c   :  { %v401_v58 = vsel %vm398_vm2, %v400_v53, %v396_v52 }
 0x2c6   :  { %v411_v40 = vpop.permute.xlu1 %410 }
 0x2c7   :  { %v3161_v42 = vadd.f32 %v411_v40, %v407_v31 }
 0x2c9   :  { %2589 = vtanh.f32 %v3161_v42  ;;  %v510_v29 = vrot.slane %v3161_v42, 6 }
 0x2cf   :  { %v2590_v54 = vpop.eup %2589 }
 0x2d0   :  { %v3164_v60 = vmul.f32 %v2590_v54, %v401_v58 }
 0x2d2   :  { %v417_v61 = vrot.slane %v3164_v60, 2 }
 0x2d4   :  { %418 = vrot.lane.b32.xlu1 %v417_v61, %s2798_s3 }
 0x346   :  { %v419_v62 = vpop.permute.xlu1 %418 }
 0x347   :  { %2484 = vmatmul.msk.f32.vlgmr.msra.gmra.mxu0 %vm218_vm9, %v419_v62  ;;  %2485 = vmatmul.msk.f32.vlgmr.msra.gmra.mxu1 %vm218_vm9, %v419_v62 }
 0x348   :  { %843 = vmatpush.msra.mxu0 %v2924_v10  ;;  %863 = vmatpush.msra.mxu1 %v2932_v11 }
 0x34a   :  { %844 = vmatpush.msra.mxu0 %v2937_v12  ;;  %864 = vmatpush.msra.mxu1 %v2944_v13 }
 0x34c   :  { %845 = vmatpush.msra.mxu0 %v2949_v14  ;;  %865 = vmatpush.msra.mxu1 %v2957_v15 }
 0x34e   :  { %846 = vmatpush.msra.mxu0 %v2969_v17  ;;  %866 = vmatpush.msra.mxu1 %v2974_v18 }
 0x350   :  { %847 = vmatpush.msra.mxu0 %v2985_v19  ;;  %867 = vmatpush.msra.mxu1 %v2990_v20 }
 0x352   :  { %848 = vmatpush.msra.mxu0 %v2998_v21  ;;  %868 = vmatpush.msra.mxu1 %v3003_v22 }
 0x354   :  { %849 = vmatpush.msra.mxu0 %v3011_v23  ;;  %869 = vmatpush.msra.mxu1 %v3016_v24 }
 0x356   :  { %850 = vmatpush.msra.mxu0 %v3025_v25  ;;  %870 = vmatpush.msra.mxu1 %v3030_v26 }
 0x3c4   :  { %v439_v63 = vpop.f32.mrf.mxu0  ;;  %v459_v48 = vpop.f32.mrf.mxu1 }
 0x3c5   :  { %v464_v0 = vrot.slane %v439_v63, 4  ;;  %v465_v5 = vrot.slane %v459_v48, 4 }
 0x3c7   :  { %v468_v1 = vadd.f32 %v464_v0, %v3111_v50  ;;  %v469_v7 = vadd.f32 %v465_v5, %v3120_v59  ;;  %v1040_v0 = vsel %vm1039_vm12, %v3127_v51, %v3164_v60 }
 0x3c9   :  { %v2486_v2 = vmul.f32 -1.442695, %v468_v1  ;;  %v2487_v59 = vmul.f32 -1.442695, %v469_v7 }
 0x3cb   :  { %2591 = vpow2.f32 %v2486_v2 }
 0x3d1   :  { %v2592_v47 = vpop.eup %2591 }
 0x3d2   :  { %v476_v4 = vadd.f32 1.0, %v2592_v47 }
 0x3d4   :  { %2593 = vrcp.f32 %v476_v4  ;;  %v489_v16 = vand.u32 2147483648, %v476_v4  ;;  %v487_v28 = vand.u32 2147483647, %v476_v4  ;;  %vm483_vm4 = vweird.f32 %v476_v4 }
 0x3d5   :  { %2595 = vtanh.f32 %v469_v7 }
 0x3d6   :  { %v490_v50 = vor.u32 1.1754944e-38, %v489_v16  ;;  %vm488_vm6 = vcmp.eq.f32.partialorder %v487_v28, 8.507059e+37  ;;  %2597 = vpow2.f32 %v2487_v59 }
 0x3da   :  { %v2594_v6 = vpop.eup %2593 }
 0x3db   :  { %v479_v8 = vmul.f32 %v2594_v6, %v476_v4  ;;  %vm484_vm3 = vweird.f32 %v2594_v6  ;;  %v2596_v31 = vpop.eup %2595 }
 0x3dc   :  { %vm485_vm5 = vmor %vm483_vm4, %vm484_vm3  ;;  %v2598_v35 = vpop.eup %2597 }
 0x3dd   :  { %v480_v9 = vsub.f32 1.0, %v479_v8  ;;  %v477_v37 = vadd.f32 1.0, %v2598_v35 }
 0x3df   :  { %v481_v55 = vmul.f32 %v2594_v6, %v480_v9  ;;  %2599 = vrcp.f32 %v477_v37  ;;  %v504_v52 = vand.u32 2147483648, %v477_v37  ;;  %vm498_vm8 = vweird.f32 %v477_v37 }
 0x3e0   :  { %v502_v53 = vand.u32 2147483647, %v477_v37 }
 0x3e1   :  { %v482_v57 = vadd.f32 %v2594_v6, %v481_v55  ;;  %v505_v58 = vor.u32 1.1754944e-38, %v504_v52 }
 0x3e2   :  { %vm503_vm11 = vcmp.eq.f32.partialorder %v502_v53, 8.507059e+37 }
 0x3e3   :  { %v486_v30 = vsel %vm485_vm5, %v2594_v6, %v482_v57 }
 0x3e4   :  { %v491_v32 = vsel %vm488_vm6, %v490_v50, %v486_v30 }
 0x3e5   :  { %v513_v33 = vmul.f32 %v2596_v31, %v491_v32  ;;  %v512_v34 = vmul.f32 %v510_v29, %v491_v32  ;;  %v2600_v38 = vpop.eup %2599 }
 0x3e6   :  { %v494_v39 = vmul.f32 %v2600_v38, %v477_v37  ;;  %vm499_vm7 = vweird.f32 %v2600_v38 }
 0x3e7   :  { %515 = vrot.lane.b32.xlu2 %v513_v33, %s2798_s3  ;;  %vm500_vm10 = vmor %vm498_vm8, %vm499_vm7  ;;  %vm1043_vm7 = vcmask 1045504  }
 0x3e8   :  { %v495_v40 = vsub.f32 1.0, %v494_v39 }
 0x3ea   :  { %v496_v36 = vmul.f32 %v2600_v38, %v495_v40 }
 0x3ec   :  { %v497_v42 = vadd.f32 %v2600_v38, %v496_v36 }
 0x3ee   :  { %v501_v54 = vsel %vm500_vm10, %v2600_v38, %v497_v42 }
 0x3ef   :  { %v506_v62 = vsel %vm503_vm11, %v505_v58, %v501_v54 }
 0x441   :  { %v516_v44 = vpop.permute.xlu2 %515 }
 0x442   :  { %v3190_v49 = vadd.f32 %v516_v44, %v512_v34  ;;  %v1060_v44 = vrot.slane %v3164_v60, 6 }
 0x444   :  { %2601 = vtanh.f32 %v3190_v49  ;;  %v615_v4 = vrot.slane %v3190_v49, 6 }
 0x44a   :  { %v2602_v61 = vpop.eup %2601 }
 0x44b   :  { %v3193_v63 = vmul.f32 %v2602_v61, %v506_v62 }
 0x44d   :  { %v522_v1 = vrot.slane %v3193_v63, 4  ;;  %v3201_v2 = vsel %vm1041_vm13, %v1040_v0, %v3193_v63  ;;  %v1058_v36 = vrot.slane %v3193_v63, 2 }
 0x44f   :  { %523 = vrot.lane.b32.xlu2 %v522_v1, %s2798_s3 }
 0x4a9   :  { %v524_v47 = vpop.permute.xlu2 %523 }
 0x4aa   :  { %2488 = vmatmul.msk.f32.vlgmr.msra.gmra.mxu2 %vm218_vm9, %v524_v47  ;;  %2489 = vmatmul.msk.f32.vlgmr.msra.gmra.mxu3 %vm218_vm9, %v524_v47 }
 0x4ab   :  { %948 = vmatpush.msra.mxu2 %v2924_v10  ;;  %968 = vmatpush.msra.mxu3 %v2932_v11 }
 0x4ad   :  { %949 = vmatpush.msra.mxu2 %v2937_v12  ;;  %969 = vmatpush.msra.mxu3 %v2944_v13 }
 0x4af   :  { %950 = vmatpush.msra.mxu2 %v2949_v14  ;;  %970 = vmatpush.msra.mxu3 %v2957_v15 }
 0x4b1   :  { %951 = vmatpush.msra.mxu2 %v2969_v17  ;;  %971 = vmatpush.msra.mxu3 %v2974_v18 }
 0x4b3   :  { %952 = vmatpush.msra.mxu2 %v2985_v19  ;;  %972 = vmatpush.msra.mxu3 %v2990_v20 }
 0x4b5   :  { %953 = vmatpush.msra.mxu2 %v2998_v21  ;;  %973 = vmatpush.msra.mxu3 %v3003_v22 }
 0x4b7   :  { %954 = vmatpush.msra.mxu2 %v3011_v23  ;;  %974 = vmatpush.msra.mxu3 %v3016_v24 }
 0x4b9   :  { %955 = vmatpush.msra.mxu2 %v3025_v25  ;;  %975 = vmatpush.msra.mxu3 %v3030_v26 }
 0x52d   :  { %v544_v10 = vpop.f32.mrf.mxu2  ;;  %v564_v17 = vpop.f32.mrf.mxu3 }
 0x52e   :  { %v569_v11 = vrot.slane %v544_v10, 2  ;;  %v570_v18 = vrot.slane %v564_v17, 2 }
 0x530   :  { %v573_v12 = vadd.f32 %v569_v11, %v3151_v56  ;;  %v574_v20 = vadd.f32 %v570_v18, %v3156_v3 }
 0x532   :  { %v2490_v13 = vmul.f32 -1.442695, %v573_v12  ;;  %v2491_v3 = vmul.f32 -1.442695, %v574_v20 }
 0x534   :  { %2603 = vpow2.f32 %v2490_v13 }
 0x53a   :  { %v2604_v14 = vpop.eup %2603 }
 0x53b   :  { %v581_v15 = vadd.f32 1.0, %v2604_v14 }
 0x53d   :  { %2605 = vrcp.f32 %v581_v15  ;;  %v594_v23 = vand.u32 2147483648, %v581_v15  ;;  %v592_v25 = vand.u32 2147483647, %v581_v15  ;;  %vm588_vm15 = vweird.f32 %v581_v15 }
 0x53e   :  { %2607 = vtanh.f32 %v574_v20 }
 0x53f   :  { %v595_v56 = vor.u32 1.1754944e-38, %v594_v23  ;;  %vm593_vm2 = vcmp.eq.f32.partialorder %v592_v25, 8.507059e+37  ;;  %2609 = vpow2.f32 %v2491_v3 }
 0x543   :  { %v2606_v19 = vpop.eup %2605 }
 0x544   :  { %v584_v21 = vmul.f32 %v2606_v19, %v581_v15  ;;  %vm589_vm14 = vweird.f32 %v2606_v19  ;;  %v2608_v5 = vpop.eup %2607 }
 0x545   :  { %vm590_vm1 = vmor %vm588_vm15, %vm589_vm14  ;;  %v2610_v9 = vpop.eup %2609 }
 0x546   :  { %v585_v22 = vsub.f32 1.0, %v584_v21  ;;  %v582_v16 = vadd.f32 1.0, %v2610_v9 }
 0x548   :  { %v586_v24 = vmul.f32 %v2606_v19, %v585_v22  ;;  %2611 = vrcp.f32 %v582_v16  ;;  %v609_v32 = vand.u32 2147483648, %v582_v16  ;;  %vm603_vm4 = vweird.f32 %v582_v16 }
 0x549   :  { %v607_v33 = vand.u32 2147483647, %v582_v16 }
 0x54a   :  { %v587_v26 = vadd.f32 %v2606_v19, %v586_v24  ;;  %v610_v59 = vor.u32 1.1754944e-38, %v609_v32 }
 0x54b   :  { %vm608_vm6 = vcmp.eq.f32.partialorder %v607_v33, 8.507059e+37 }
 0x54c   :  { %v591_v48 = vsel %vm590_vm1, %v2606_v19, %v587_v26 }
 0x54d   :  { %v596_v6 = vsel %vm593_vm2, %v595_v56, %v591_v48 }
 0x54e   :  { %v618_v7 = vmul.f32 %v2608_v5, %v596_v6  ;;  %v617_v8 = vmul.f32 %v615_v4, %v596_v6  ;;  %v2612_v55 = vpop.eup %2611 }
 0x54f   :  { %v599_v28 = vmul.f32 %v2612_v55, %v582_v16  ;;  %vm604_vm3 = vweird.f32 %v2612_v55 }
 0x550   :  { %620 = vrot.lane.b32.xlu0 %v618_v7, %s2798_s3  ;;  %vm605_vm5 = vmor %vm603_vm4, %vm604_vm3 }
 0x551   :  { %v600_v57 = vsub.f32 1.0, %v599_v28 }
 0x553   :  { %v601_v50 = vmul.f32 %v2612_v55, %v600_v57 }
 0x555   :  { %v602_v31 = vadd.f32 %v2612_v55, %v601_v50 }
 0x557   :  { %v606_v34 = vsel %vm605_vm5, %v2612_v55, %v602_v31 }
 0x558   :  { %v611_v37 = vsel %vm608_vm6, %v610_v59, %v606_v34 }
 0x5c2   :  { %v621_v29 = vpop.permute.xlu0 %620 }
 0x5c3   :  { %v623_v30 = vadd.f32 %v621_v29, %v617_v8 }
 0x5c5   :  { %2613 = vtanh.f32 %v623_v30  ;;  %v714_v14 = vrot.slane %v623_v30, 6 }
 0x5cb   :  { %v2614_v35 = vpop.eup %2613 }
 0x5cc   :  { %v625_v38 = vmul.f32 %v2614_v35, %v611_v37 }
 0x5ce   :  { %v627_v39 = vrot.slane %v625_v38, 6  ;;  %v3228_v40 = vsel %vm1043_vm7, %v3201_v2, %v625_v38 }
 0x5d0   :  { %628 = vrot.lane.b32.xlu1 %v627_v39, %s2798_s3  ;;  %v1067_v49 = vsel %vm1039_vm12, %v627_v39, %v1058_v36 }
 0x5d1   :  { %v3235_v42 = vsel %vm1041_vm13, %v1067_v49, %v1060_v44 }
 0x642   :  { %v629_v52 = vpop.permute.xlu1 %628 }
 0x643   :  { %2492 = vmatmul.msk.f32.vlgmr.msrb.gmra.mxu0 %vm218_vm9, %v629_v52  ;;  %2493 = vmatmul.msk.f32.vlgmr.msrb.gmra.mxu1 %vm218_vm9, %v629_v52 }
 0x6c0   :  { %v649_v53 = vpop.f32.mrf.mxu0  ;;  %v669_v60 = vpop.f32.mrf.mxu1 }
 0x6c1   :  { %v672_v54 = vadd.f32 %v649_v53, %v3099_v43  ;;  %v673_v0 = vadd.f32 %v669_v60, %v3103_v46 }
 0x6c3   :  { %v2494_v58 = vmul.f32 -1.442695, %v672_v54  ;;  %v2495_v21 = vmul.f32 -1.442695, %v673_v0 }
 0x6c5   :  { %2615 = vpow2.f32 %v2494_v58 }
 0x6cb   :  { %v2616_v61 = vpop.eup %2615 }
 0x6cc   :  { %v680_v62 = vadd.f32 1.0, %v2616_v61 }
 0x6ce   :  { %2617 = vrcp.f32 %v680_v62  ;;  %v693_v47 = vand.u32 2147483648, %v680_v62  ;;  %v691_v11 = vand.u32 2147483647, %v680_v62  ;;  %vm687_vm10 = vweird.f32 %v680_v62 }
 0x6cf   :  { %2619 = vtanh.f32 %v673_v0 }
 0x6d0   :  { %v694_v13 = vor.u32 1.1754944e-38, %v693_v47  ;;  %vm692_vm14 = vcmp.eq.f32.partialorder %v691_v11, 8.507059e+37  ;;  %2621 = vpow2.f32 %v2495_v21 }
 0x6d4   :  { %v2618_v63 = vpop.eup %2617 }
 0x6d5   :  { %v683_v1 = vmul.f32 %v2618_v63, %v680_v62  ;;  %vm688_vm8 = vweird.f32 %v2618_v63  ;;  %v2620_v17 = vpop.eup %2619 }
 0x6d6   :  { %vm689_vm11 = vmor %vm687_vm10, %vm688_vm8  ;;  %v2622_v22 = vpop.eup %2621 }
 0x6d7   :  { %v684_v2 = vsub.f32 1.0, %v683_v1  ;;  %v681_v23 = vadd.f32 1.0, %v2622_v22 }
 0x6d9   :  { %v685_v10 = vmul.f32 %v2618_v63, %v684_v2  ;;  %2623 = vrcp.f32 %v681_v23  ;;  %v708_v6 = vand.u32 2147483648, %v681_v23  ;;  %vm702_vm1 = vweird.f32 %v681_v23 }
 0x6da   :  { %v706_v7 = vand.u32 2147483647, %v681_v23 }
 0x6db   :  { %v686_v12 = vadd.f32 %v2618_v63, %v685_v10  ;;  %v709_v3 = vor.u32 1.1754944e-38, %v708_v6 }
 0x6dc   :  { %vm707_vm3 = vcmp.eq.f32.partialorder %v706_v7, 8.507059e+37 }
 0x6dd   :  { %v690_v15 = vsel %vm689_vm11, %v2618_v63, %v686_v12 }
 0x6de   :  { %v695_v18 = vsel %vm692_vm14, %v694_v13, %v690_v15 }
 0x6df   :  { %v717_v19 = vmul.f32 %v2620_v17, %v695_v18  ;;  %v716_v20 = vmul.f32 %v714_v14, %v695_v18  ;;  %v2624_v24 = vpop.eup %2623 }
 0x6e0   :  { %v698_v25 = vmul.f32 %v2624_v24, %v681_v23  ;;  %vm703_vm15 = vweird.f32 %v2624_v24 }
 0x6e1   :  { %719 = vrot.lane.b32.xlu2 %v717_v19, %s2798_s3  ;;  %vm704_vm2 = vmor %vm702_vm1, %vm703_vm15 }
 0x6e2   :  { %v699_v26 = vsub.f32 1.0, %v698_v25 }
 0x6e4   :  { %v700_v56 = vmul.f32 %v2624_v24, %v699_v26 }
 0x6e6   :  { %v701_v5 = vadd.f32 %v2624_v24, %v700_v56 }
 0x6e8   :  { %v705_v8 = vsel %vm704_vm2, %v2624_v24, %v701_v5 }
 0x6e9   :  { %v710_v16 = vsel %vm707_vm3, %v709_v3, %v705_v8 }
 0x73b   :  { %v720_v4 = vpop.permute.xlu2 %719 }
 0x73c   :  { %v722_v48 = vadd.f32 %v720_v4, %v716_v20 }
 0x73e   :  { %2625 = vtanh.f32 %v722_v48  ;;  %v818_v53 = vrot.slane %v722_v48, 6 }
 0x744   :  { %v2626_v9 = vpop.eup %2625 }
 0x745   :  { %v3242_v55 = vmul.f32 %v2626_v9, %v710_v16 }
 0x747   :  { %726 = vrot.lane.b32.xlu0 %v3242_v55, %s2798_s3 }
 0x7b9   :  { %v727_v28 = vpop.permute.xlu0 %726 }
 0x7ba   :  { %2496 = vmatmul.msk.f32.vlgmr.msrb.gmra.mxu2 %vm218_vm9, %v727_v28  ;;  %2497 = vmatmul.msk.f32.vlgmr.msrb.gmra.mxu3 %vm218_vm9, %v727_v28 }
 0x83d   :  { %v747_v57 = vpop.f32.mrf.mxu2  ;;  %v767_v33 = vpop.f32.mrf.mxu3 }
 0x83e   :  { %v772_v50 = vrot.slane %v747_v57, 6  ;;  %v773_v34 = vrot.slane %v767_v33, 6 }
 0x840   :  { %v776_v29 = vadd.f32 %v772_v50, %v3097_v41  ;;  %v777_v35 = vadd.f32 %v773_v34, %v3101_v45 }
 0x842   :  { %v2498_v30 = vmul.f32 -1.442695, %v776_v29  ;;  %v2499_v63 = vmul.f32 -1.442695, %v777_v35 }
 0x844   :  { %2627 = vpow2.f32 %v2498_v30 }
 0x84a   :  { %v2628_v31 = vpop.eup %2627 }
 0x84b   :  { %v784_v32 = vadd.f32 1.0, %v2628_v31 }
 0x84d   :  { %2629 = vrcp.f32 %v784_v32  ;;  %v797_v39 = vand.u32 2147483648, %v784_v32  ;;  %v795_v44 = vand.u32 2147483647, %v784_v32  ;;  %vm791_vm5 = vweird.f32 %v784_v32 }
 0x84e   :  { %2631 = vtanh.f32 %v777_v35 }
 0x84f   :  { %v798_v52 = vor.u32 1.1754944e-38, %v797_v39  ;;  %vm796_vm8 = vcmp.eq.f32.partialorder %v795_v44, 8.507059e+37  ;;  %2633 = vpow2.f32 %v2499_v63 }
 0x853   :  { %v2630_v59 = vpop.eup %2629 }
 0x854   :  { %v787_v37 = vmul.f32 %v2630_v59, %v784_v32  ;;  %vm792_vm4 = vweird.f32 %v2630_v59  ;;  %v2632_v58 = vpop.eup %2631 }
 0x855   :  { %vm793_vm6 = vmor %vm791_vm5, %vm792_vm4  ;;  %v2634_v0 = vpop.eup %2633 }
 0x856   :  { %v788_v38 = vsub.f32 1.0, %v787_v37  ;;  %v785_v1 = vadd.f32 1.0, %v2634_v0 }
 0x858   :  { %v789_v36 = vmul.f32 %v2630_v59, %v788_v38  ;;  %2635 = vrcp.f32 %v785_v1  ;;  %v812_v15 = vand.u32 2147483648, %v785_v1  ;;  %vm806_vm11 = vweird.f32 %v785_v1 }
 0x859   :  { %v810_v17 = vand.u32 2147483647, %v785_v1 }
 0x85a   :  { %v790_v49 = vadd.f32 %v2630_v59, %v789_v36  ;;  %v813_v19 = vor.u32 1.1754944e-38, %v812_v15 }
 0x85b   :  { %vm811_vm15 = vcmp.eq.f32.partialorder %v810_v17, 8.507059e+37 }
 0x85c   :  { %v794_v54 = vsel %vm793_vm6, %v2630_v59, %v790_v49 }
 0x85d   :  { %v799_v61 = vsel %vm796_vm8, %v798_v52, %v794_v54 }
 0x85e   :  { %v821_v62 = vmul.f32 %v2632_v58, %v799_v61  ;;  %v820_v60 = vmul.f32 %v818_v53, %v799_v61  ;;  %v2636_v2 = vpop.eup %2635 }
 0x85f   :  { %v802_v47 = vmul.f32 %v2636_v2, %v785_v1  ;;  %vm807_vm10 = vweird.f32 %v2636_v2 }
 0x860   :  { %823 = vrot.lane.b32.xlu1 %v821_v62, %s2798_s3  ;;  %vm808_vm14 = vmor %vm806_vm11, %vm807_vm10 }
 0x861   :  { %v803_v10 = vsub.f32 1.0, %v802_v47 }
 0x863   :  { %v804_v11 = vmul.f32 %v2636_v2, %v803_v10 }
 0x865   :  { %v805_v14 = vadd.f32 %v2636_v2, %v804_v11 }
 0x867   :  { %v809_v18 = vsel %vm808_vm14, %v2636_v2, %v805_v14 }
 0x868   :  { %v814_v21 = vsel %vm811_vm15, %v813_v19, %v809_v18 }
 0x8d2   :  { %v824_v12 = vpop.permute.xlu1 %823 }
 0x8d3   :  { %v826_v13 = vadd.f32 %v824_v12, %v820_v60 }
 0x8d5   :  { %2637 = vtanh.f32 %v826_v13  ;;  %v923_v30 = vrot.slane %v826_v13, 6 }
 0x8db   :  { %v2638_v20 = vpop.eup %2637 }
 0x8dc   :  { %v3251_v22 = vmul.f32 %v2638_v20, %v814_v21 }
 0x8de   :  { %v830_v23 = vrot.slane %v3251_v22, 2  ;;  %v1045_v0 = vsel %vm1039_vm12, %v3242_v55, %v3251_v22 }
 0x8e0   :  { %831 = vrot.lane.b32.xlu2 %v830_v23, %s2798_s3 }
 0x93a   :  { %v832_v24 = vpop.permute.xlu2 %831 }
 0x93b   :  { %2500 = vmatmul.msk.f32.vlgmr.msra.gmra.mxu0 %vm218_vm9, %v832_v24  ;;  %2501 = vmatmul.msk.f32.vlgmr.msra.gmra.mxu1 %vm218_vm9, %v832_v24 }
 0x9b8   :  { %v852_v25 = vpop.f32.mrf.mxu0  ;;  %v872_v6 = vpop.f32.mrf.mxu1 }
 0x9b9   :  { %v877_v26 = vrot.slane %v852_v25, 4  ;;  %v878_v7 = vrot.slane %v872_v6, 4 }
 0x9bb   :  { %v881_v56 = vadd.f32 %v877_v26, %v3099_v43  ;;  %v882_v3 = vadd.f32 %v878_v7, %v3103_v46  ;;  %v1062_v46 = vrot.slane %v3127_v51, 2 }
 0x9bd   :  { %v2502_v4 = vmul.f32 -1.442695, %v881_v56  ;;  %v1069_v35 = vsel %vm1043_vm7, %v3235_v42, %v1062_v46  ;;  %v2503_v37 = vmul.f32 -1.442695, %v882_v3 }
 0x9bf   :  { %2639 = vpow2.f32 %v2502_v4 }
 0x9c5   :  { %v2640_v48 = vpop.eup %2639 }
 0x9c6   :  { %v889_v5 = vadd.f32 1.0, %v2640_v48 }
 0x9c8   :  { %2641 = vrcp.f32 %v889_v5  ;;  %v902_v28 = vand.u32 2147483648, %v889_v5  ;;  %v900_v50 = vand.u32 2147483647, %v889_v5  ;;  %vm896_vm2 = vweird.f32 %v889_v5 }
 0x9c9   :  { %2643 = vtanh.f32 %v882_v3 }
 0x9ca   :  { %v903_v43 = vor.u32 1.1754944e-38, %v902_v28  ;;  %vm901_vm4 = vcmp.eq.f32.partialorder %v900_v50, 8.507059e+37  ;;  %2645 = vpow2.f32 %v2503_v37 }
 0x9ce   :  { %v2642_v8 = vpop.eup %2641 }
 0x9cf   :  { %v892_v9 = vmul.f32 %v2642_v8, %v889_v5  ;;  %vm897_vm1 = vweird.f32 %v2642_v8  ;;  %v2644_v32 = vpop.eup %2643 }
 0x9d0   :  { %vm898_vm3 = vmor %vm896_vm2, %vm897_vm1  ;;  %v2646_v38 = vpop.eup %2645 }
 0x9d1   :  { %v893_v16 = vsub.f32 1.0, %v892_v9  ;;  %v890_v39 = vadd.f32 1.0, %v2646_v38 }
 0x9d3   :  { %v894_v57 = vmul.f32 %v2642_v8, %v893_v16  ;;  %2647 = vrcp.f32 %v890_v39  ;;  %v917_v51 = vand.u32 2147483648, %v890_v39  ;;  %vm911_vm6 = vweird.f32 %v890_v39 }
 0x9d5   :  { %v895_v29 = vadd.f32 %v2642_v8, %v894_v57  ;;  %v918_v61 = vor.u32 1.1754944e-38, %v917_v51  ;;  %v1101_v51 = vld [vmem:[%s3923_s5 + $0x60] sm:$0xff] }
 0x9d7   :  { %v899_v31 = vsel %vm898_vm3, %v2642_v8, %v895_v29 }
 0x9d8   :  { %v904_v33 = vsel %vm901_vm4, %v903_v43, %v899_v31 }
 0x9d9   :  { %v926_v34 = vmul.f32 %v2644_v32, %v904_v33  ;;  %v925_v59 = vmul.f32 %v923_v30, %v904_v33  ;;  %v2648_v36 = vpop.eup %2647 }
 0x9da   :  { %v907_v44 = vmul.f32 %v2648_v36, %v890_v39  ;;  %vm912_vm5 = vweird.f32 %v2648_v36 }
 0x9db   :  { %928 = vrot.lane.b32.xlu0 %v926_v34, %s2798_s3  ;;  %vm913_vm8 = vmor %vm911_vm6, %vm912_vm5  ;;  %vm1086_vm6 = vcmask 261120  }
 0x9dc   :  { %v908_v49 = vsub.f32 1.0, %v907_v44  ;;  %v1055_v44 = vrot.slane %v3242_v55, 2  ;;  %v1119_v55 = vld [vmem:[%s3924_s6 + $0x70] sm:$0xff] }
 0x9dd   :  { %1203 = vmatpush.msrb.mxu2 %v1119_v55 }
 0x9de   :  { %v909_v52 = vmul.f32 %v2648_v36, %v908_v49 }
 0x9e0   :  { %v910_v58 = vadd.f32 %v2648_v36, %v909_v52 }
 0x9e2   :  { %v914_v42 = vsel %vm913_vm8, %v2648_v36, %v910_v58  ;;  %v1053_v36 = vrot.slane %v3251_v22, 6  ;;  %v1104_v58 = vld [vmem:[%s3923_s5 + $0x78] sm:$0xff] }
 0x9e3   :  { %1072 = vrot.lane.b32.xlu0 %v3228_v40, %s2798_s3  ;;  %v915_v40 = vand.u32 2147483647, %v890_v39  ;;  %1180 = vmatpush.msrb.mxu1 %v1104_v58  ;;  %v1120_v22 = vld [vmem:[%s3924_s6 + $0x78] sm:$0xff] }
 0x9e4   :  { %1226 = vmatpush.msrb.mxu3 %v1120_v22 }
 0x9e5   :  { %vm916_vm10 = vcmp.eq.f32.partialorder %v915_v40, 8.507059e+37  ;;  %v1102_v40 = vld [vmem:[%s3923_s5 + $0x68] sm:$0xff] }
 0x9e6   :  { %v919_v60 = vsel %vm916_vm10, %v918_v61, %v914_v42  ;;  %v1117_v42 = vld [vmem:[%s3924_s6 + $0x60] sm:$0xff]  ;;  %v1118_v61 = vld [vmem:[%s3924_s6 + $0x68] sm:$0xff]  ;;  %1181 = vmatpush.msrb.mxu1 %v1102_v40 }
 0x9e7   :  { %1204 = vmatpush.msrb.mxu2 %v1117_v42  ;;  %1227 = vmatpush.msrb.mxu3 %v1118_v61 }
 0x9eb   :  { %1082 = vrot.lane.b32.xlu0 %v1069_v35, %s2798_s3 }
 0xa4d   :  { %v929_v53 = vpop.permute.xlu0 %928 }
 0xa4e   :  { %v931_v54 = vadd.f32 %v929_v53, %v925_v59 }
 0xa50   :  { %2649 = vtanh.f32 %v931_v54  ;;  %v1028_v4 = vrot.slane %v931_v54, 6  ;;  %v1103_v54 = vld [vmem:[%s3923_s5 + $0x70] sm:$0xff] }
 0xa51   :  { %1157 = vmatpush.msrb.mxu0 %v1103_v54 }
 0xa53   :  { %1158 = vmatpush.msrb.mxu0 %v1101_v51 }
 0xa56   :  { %v2650_v62 = vpop.eup %2649 }
 0xa57   :  { %v3266_v63 = vmul.f32 %v2650_v62, %v919_v60  ;;  %v1099_v62 = vld [vmem:[%s3923_s5 + $0x50] sm:$0xff]  ;;  %v1100_v60 = vld [vmem:[%s3923_s5 + $0x58] sm:$0xff] }
 0xa58   :  { %1159 = vmatpush.msrb.mxu0 %v1099_v62  ;;  %1182 = vmatpush.msrb.mxu1 %v1100_v60 }
 0xa59   :  { %v935_v1 = vrot.slane %v3266_v63, 4  ;;  %v1046_v2 = vsel %vm1041_vm13, %v1045_v0, %v3266_v63  ;;  %v1051_v39 = vrot.slane %v3266_v63, 2  ;;  %v1115_v63 = vld [vmem:[%s3924_s6 + $0x50] sm:$0xff]  ;;  %v1116_v0 = vld [vmem:[%s3924_s6 + $0x58] sm:$0xff] }
 0xa5a   :  { %1205 = vmatpush.msrb.mxu2 %v1115_v63  ;;  %1228 = vmatpush.msrb.mxu3 %v1116_v0 }
 0xa5b   :  { %936 = vrot.lane.b32.xlu1 %v935_v1, %s2798_s3  ;;  %v1097_v1 = vld [vmem:[%s3923_s5 + $0x40] sm:$0xff] }
 0xa5c   :  { %1160 = vmatpush.msrb.mxu0 %v1097_v1 }
 0xacd   :  { %v937_v47 = vpop.permute.xlu1 %936 }
 0xace   :  { %2504 = vmatmul.msk.f32.vlgmr.msra.gmra.mxu2 %vm218_vm9, %v937_v47  ;;  %2505 = vmatmul.msk.f32.vlgmr.msra.gmra.mxu3 %vm218_vm9, %v937_v47  ;;  %v1113_v47 = vld [vmem:[%s3924_s6 + $0x40] sm:$0xff] }
 0xacf   :  { %1206 = vmatpush.msrb.mxu2 %v1113_v47 }
 0xb51   :  { %v957_v10 = vpop.f32.mrf.mxu2  ;;  %v977_v17 = vpop.f32.mrf.mxu3 }
 0xb52   :  { %v982_v11 = vrot.slane %v957_v10, 2  ;;  %v983_v18 = vrot.slane %v977_v17, 2  ;;  %v1114_v10 = vld [vmem:[%s3924_s6 + $0x48] sm:$0xff] }
 0xb53   :  { %1229 = vmatpush.msrb.mxu3 %v1114_v10  ;;  %v1094_v17 = vld [vmem:[%s3923_s5 + $0x28] sm:$0xff] }
 0xb54   :  { %v986_v12 = vadd.f32 %v982_v11, %v3097_v41  ;;  %v987_v20 = vadd.f32 %v983_v18, %v3101_v45  ;;  %v1095_v11 = vld [vmem:[%s3923_s5 + $0x30] sm:$0xff]  ;;  %v1109_v18 = vld [vmem:[%s3924_s6 + $0x20] sm:$0xff] }
 0xb55   :  { %1161 = vmatpush.msrb.mxu0 %v1095_v11 }
 0xb56   :  { %v2506_v13 = vmul.f32 -1.442695, %v986_v12  ;;  %v2507_v45 = vmul.f32 -1.442695, %v987_v20  ;;  %v1096_v12 = vld [vmem:[%s3923_s5 + $0x38] sm:$0xff] }
 0xb58   :  { %2651 = vpow2.f32 %v2506_v13  ;;  %v1111_v13 = vld [vmem:[%s3924_s6 + $0x30] sm:$0xff] }
 0xb59   :  { %1207 = vmatpush.msrb.mxu2 %v1111_v13 }
 0xb5b   :  { %1208 = vmatpush.msrb.mxu2 %v1109_v18 }
 0xb5e   :  { %v2652_v14 = vpop.eup %2651 }
 0xb5f   :  { %v994_v15 = vadd.f32 1.0, %v2652_v14  ;;  %v1112_v14 = vld [vmem:[%s3924_s6 + $0x38] sm:$0xff] }
 0xb60   :  { %1230 = vmatpush.msrb.mxu3 %v1112_v14 }
 0xb61   :  { %2653 = vrcp.f32 %v994_v15  ;;  %v1007_v24 = vand.u32 2147483648, %v994_v15  ;;  %v1005_v26 = vand.u32 2147483647, %v994_v15  ;;  %vm1001_vm14 = vweird.f32 %v994_v15 }
 0xb62   :  { %2655 = vtanh.f32 %v987_v20  ;;  %v1091_v20 = vld [vmem:[%s3923_s5 + $0x10] sm:$0xff] }
 0xb63   :  { %v1008_v41 = vor.u32 1.1754944e-38, %v1007_v24  ;;  %vm1006_vm1 = vcmp.eq.f32.partialorder %v1005_v26, 8.507059e+37  ;;  %2657 = vpow2.f32 %v2507_v45  ;;  %v1108_v24 = vld [vmem:[%s3924_s6 + $0x18] sm:$0xff]  ;;  %v1090_v26 = vld [vmem:[%s3923_s5 + $0x8] sm:$0xff]  ;;  %v3430_v45 = vld [vmem:[%s3926_s8 + $0x40] sm:$0xff] }
 0xb67   :  { %v2654_v19 = vpop.eup %2653 }
 0xb68   :  { %v997_v21 = vmul.f32 %v2654_v19, %v994_v15  ;;  %vm1002_vm11 = vweird.f32 %v2654_v19  ;;  %v2656_v5 = vpop.eup %2655  ;;  %v1093_v15 = vld [vmem:[%s3923_s5 + $0x20] sm:$0xff] }
 0xb69   :  { %vm1003_vm15 = vmor %vm1001_vm14, %vm1002_vm11  ;;  %v2658_v3 = vpop.eup %2657  ;;  %1162 = vmatpush.msrb.mxu0 %v1093_v15 }
 0xb6a   :  { %v998_v23 = vsub.f32 1.0, %v997_v21  ;;  %v995_v9 = vadd.f32 1.0, %v2658_v3  ;;  %v1092_v21 = vld [vmem:[%s3923_s5 + $0x18] sm:$0xff]  ;;  %v3435_v3 = vld [vmem:[%s3926_s8 + $0x48] sm:$0xff] }
 0xb6b   :  { %1163 = vmatpush.msrb.mxu0 %v1091_v20 }
 0xb6c   :  { %v999_v25 = vmul.f32 %v2654_v19, %v998_v23  ;;  %2659 = vrcp.f32 %v995_v9  ;;  %v1022_v31 = vand.u32 2147483648, %v995_v9  ;;  %vm1016_vm3 = vweird.f32 %v995_v9  ;;  %v1107_v23 = vld [vmem:[%s3924_s6 + $0x10] sm:$0xff] }
 0xb6d   :  { %v1020_v32 = vand.u32 2147483647, %v995_v9  ;;  %1209 = vmatpush.msrb.mxu2 %v1107_v23 }
 0xb6e   :  { %v1000_v56 = vadd.f32 %v2654_v19, %v999_v25  ;;  %v1023_v34 = vor.u32 1.1754944e-38, %v1022_v31  ;;  %v1089_v25 = vld [vmem:[%s3923_s5] sm:$0xff]  ;;  %v1073_v31 = vpop.permute.xlu0 %1072 }
 0xb6f   :  { %vm1021_vm5 = vcmp.eq.f32.partialorder %v1020_v32, 8.507059e+37  ;;  %1164 = vmatpush.msrb.mxu0 %v1089_v25 }
 0xb70   :  { %v1004_v48 = vsel %vm1003_vm15, %v2654_v19, %v1000_v56  ;;  %v1110_v19 = vld [vmem:[%s3924_s6 + $0x28] sm:$0xff]  ;;  %v1105_v56 = vld [vmem:[%s3924_s6] sm:$0xff] }
 0xb71   :  { %v1009_v6 = vsel %vm1006_vm1, %v1008_v41, %v1004_v48  ;;  %1231 = vmatpush.msrb.mxu3 %v1110_v19  ;;  %v1106_v41 = vld [vmem:[%s3924_s6 + $0x8] sm:$0xff]  ;;  %1210 = vmatpush.msrb.mxu2 %v1105_v56  ;;  %v3393_v48 = vld [vmem:[%s3926_s8 + $0x78] sm:$0xff] }
 0xb72   :  { %v1031_v7 = vmul.f32 %v2656_v5, %v1009_v6  ;;  %v1030_v8 = vmul.f32 %v1028_v4, %v1009_v6  ;;  %v2660_v16 = vpop.eup %2659  ;;  %v3388_v4 = vld [vmem:[%s3926_s8 + $0x70] sm:$0xff]  ;;  %v3398_v5 = vld [vmem:[%s3926_s8 + $0x60] sm:$0xff]  ;;  %v3405_v6 = vld [vmem:[%s3926_s8 + $0x68] sm:$0xff] }
 0xb73   :  { %v1012_v28 = vmul.f32 %v2660_v16, %v995_v9  ;;  %vm1017_vm2 = vweird.f32 %v2660_v16  ;;  %1232 = vmatpush.msrb.mxu3 %v1108_v24  ;;  %1277 = vmatpush.msra.mxu0 %v3388_v4  ;;  %v3440_v9 = vld [vmem:[%s3926_s8 + $0x30] sm:$0xff] }
 0xb74   :  { %1033 = vrot.lane.b32.xlu2 %v1031_v7, %s2798_s3  ;;  %vm1018_vm4 = vmor %vm1016_vm3, %vm1017_vm2  ;;  %v3410_v7 = vld [vmem:[%s3926_s8 + $0x50] sm:$0xff]  ;;  %1372 = vmatpush.msra.mxu2 %v3388_v4 }
 0xb75   :  { %v1013_v57 = vsub.f32 1.0, %v1012_v28  ;;  %1233 = vmatpush.msrb.mxu3 %v1106_v41  ;;  %1278 = vmatpush.msra.mxu0 %v3398_v5  ;;  %v3452_v28 = vld [vmem:[%s3926_s8 + $0x20] sm:$0xff] }
 0xb76   :  { %1373 = vmatpush.msra.mxu2 %v3398_v5 }
 0xb77   :  { %v1014_v50 = vmul.f32 %v2660_v16, %v1013_v57  ;;  %1392 = vmatpush.msra.mxu3 %v3393_v48  ;;  %1279 = vmatpush.msra.mxu0 %v3410_v7  ;;  %v3457_v57 = vld [vmem:[%s3926_s8 + $0x28] sm:$0xff] }
 0xb78   :  { %1374 = vmatpush.msra.mxu2 %v3410_v7 }
 0xb79   :  { %v1015_v30 = vadd.f32 %v2660_v16, %v1014_v50  ;;  %1393 = vmatpush.msra.mxu3 %v3405_v6  ;;  %1280 = vmatpush.msra.mxu0 %v3430_v45  ;;  %v3466_v50 = vld [vmem:[%s3926_s8 + $0x10] sm:$0xff] }
 0xb7a   :  { %1375 = vmatpush.msra.mxu2 %v3430_v45 }
 0xb7b   :  { %v1019_v33 = vsel %vm1018_vm4, %v2660_v16, %v1015_v30  ;;  %v3447_v16 = vld [vmem:[%s3926_s8 + $0x38] sm:$0xff]  ;;  %1281 = vmatpush.msra.mxu0 %v3440_v9  ;;  %v3485_v30 = vld [vmem:[%s3926_s8 + $0x8] sm:$0xff] }
 0xb7c   :  { %v1024_v46 = vsel %vm1021_vm5, %v1023_v34, %v1019_v33  ;;  %1376 = vmatpush.msra.mxu2 %v3440_v9 }
 0xb7d   :  { %1282 = vmatpush.msra.mxu0 %v3452_v28 }
 0xb7e   :  { %1377 = vmatpush.msra.mxu2 %v3452_v28 }
 0xb7f   :  { %1283 = vmatpush.msra.mxu0 %v3466_v50 }
 0xb80   :  { %1378 = vmatpush.msra.mxu2 %v3466_v50 }
 0xbce   :  { %v1034_v29 = vpop.permute.xlu2 %1033 }
 0xbcf   :  { %v1036_v43 = vadd.f32 %v1034_v29, %v1030_v8  ;;  %v3415_v8 = vld [vmem:[%s3926_s8 + $0x58] sm:$0xff] }
 0xbd0   :  { %1394 = vmatpush.msra.mxu3 %v3415_v8  ;;  %v3471_v29 = vld [vmem:[%s3926_s8 + $0x18] sm:$0xff] }
 0xbd1   :  { %2661 = vtanh.f32 %v1036_v43  ;;  %v3480_v43 = vld [vmem:[%s3926_s8] sm:$0xff] }
 0xbd2   :  { %1395 = vmatpush.msra.mxu3 %v3435_v3  ;;  %1284 = vmatpush.msra.mxu0 %v3480_v43 }
 0xbd3   :  { %1379 = vmatpush.msra.mxu2 %v3480_v43 }
 0xbd4   :  { %1396 = vmatpush.msra.mxu3 %v3447_v16 }
 0xbd6   :  { %1397 = vmatpush.msra.mxu3 %v3457_v57 }
 0xbd7   :  { %v2662_v59 = vpop.eup %2661 }
 0xbd8   :  { %v1038_v35 = vmul.f32 %v2662_v59, %v1024_v46  ;;  %1398 = vmatpush.msra.mxu3 %v3471_v29  ;;  %v1083_v59 = vpop.permute.xlu0 %1082 }
 0xbda   :  { %v1047_v37 = vsel %vm1043_vm7, %v1046_v2, %v1038_v35  ;;  %v1049_v38 = vrot.slane %v1038_v35, 6  ;;  %v1098_v2 = vld [vmem:[%s3923_s5 + $0x48] sm:$0xff]  ;;  %1399 = vmatpush.msra.mxu3 %v3485_v30 }
 0xbdb   :  { %1074 = vrot.lane.b32.xlu2 %v1047_v37, %s2798_s3  ;;  %1183 = vmatpush.msrb.mxu1 %v1098_v2 }
 0xbdc   :  { %v1064_v49 = vsel %vm1039_vm12, %v1049_v38, %v1051_v39  ;;  %v1121_v38 = vld [vmem:[%s3925_s7] sm:$0x3] }
 0xbdd   :  { %v1065_v52 = vsel %vm1041_vm13, %v1064_v49, %v1053_v36  ;;  %1184 = vmatpush.msrb.mxu1 %v1096_v12  ;;  %v1139_v39 = vperm.slane %v1121_v38, 0  ;;  %v1140_v36 = vperm.slane %v1121_v38, 1 }
 0xbde   :  { %v1066_v53 = vsel %vm1043_vm7, %v1065_v52, %v1055_v44 }
 0xbdf   :  { %1080 = vrot.lane.b32.xlu1 %v1066_v53, %s2798_s3  ;;  %1185 = vmatpush.msrb.mxu1 %v1094_v17 }
 0xbe1   :  { %1186 = vmatpush.msrb.mxu1 %v1092_v21 }
 0xbe3   :  { %1187 = vmatpush.msrb.mxu1 %v1090_v26 }
 0xbe5   :  { %1297 = vmatpush.msra.mxu1 %v3393_v48 }
 0xbe7   :  { %1298 = vmatpush.msra.mxu1 %v3405_v6 }
 0xbe9   :  { %1299 = vmatpush.msra.mxu1 %v3415_v8 }
 0xbeb   :  { %1300 = vmatpush.msra.mxu1 %v3435_v3 }
 0xbed   :  { %1301 = vmatpush.msra.mxu1 %v3447_v16 }
 0xbef   :  { %1302 = vmatpush.msra.mxu1 %v3457_v57 }
 0xbf1   :  { %1303 = vmatpush.msra.mxu1 %v3471_v29 }
 0xbf3   :  { %1304 = vmatpush.msra.mxu1 %v3485_v30 }
 0xc35   :  { %v1075_v34 = vpop.permute.xlu2 %1074 }
 0xc36   :  { %v1088_v46 = vsel %vm1086_vm6, %v1075_v34, %v1083_v59 }
 0xc51   :  { %v1081_v32 = vpop.permute.xlu1 %1080 }
 0xc52   :  { %v1087_v33 = vsel %vm1086_vm6, %v1073_v31, %v1081_v32 }
 0xc53   :  { %2508 = vmatmul.msk.f32.vlgmr.msrb.gmra.mxu0 %vm218_vm9, %v1087_v33  ;;  %2510 = vmatmul.msk.f32.vlgmr.msrb.gmra.mxu1 %vm218_vm9, %v1087_v33 }
 0xc54   :  { %2512 = vmatmul.msk.f32.vlgmr.msrb.gmra.mxu2 %vm218_vm9, %v1087_v33  ;;  %2514 = vmatmul.msk.f32.vlgmr.msrb.gmra.mxu3 %vm218_vm9, %v1087_v33 }
 0xc55   :  { %1477 = vmatpush.msrb.mxu0 %v3388_v4  ;;  %1497 = vmatpush.msrb.mxu1 %v3393_v48 }
 0xc56   :  { %1582 = vmatpush.msrb.mxu2 %v3388_v4  ;;  %1602 = vmatpush.msrb.mxu3 %v3393_v48 }
 0xc57   :  { %1478 = vmatpush.msrb.mxu0 %v3398_v5  ;;  %1498 = vmatpush.msrb.mxu1 %v3405_v6 }
 0xc58   :  { %1583 = vmatpush.msrb.mxu2 %v3398_v5  ;;  %1603 = vmatpush.msrb.mxu3 %v3405_v6 }
 0xc59   :  { %1479 = vmatpush.msrb.mxu0 %v3410_v7  ;;  %1499 = vmatpush.msrb.mxu1 %v3415_v8 }
 0xc5a   :  { %1584 = vmatpush.msrb.mxu2 %v3410_v7  ;;  %1604 = vmatpush.msrb.mxu3 %v3415_v8 }
 0xc5b   :  { %2509 = vmatmul.msk.f32.gmra.mxu0 %vm218_vm9, %v1088_v46  ;;  %2511 = vmatmul.msk.f32.gmra.mxu1 %vm218_vm9, %v1088_v46 }
 0xc5c   :  { %2513 = vmatmul.msk.f32.gmra.mxu2 %vm218_vm9, %v1088_v46  ;;  %2515 = vmatmul.msk.f32.gmra.mxu3 %vm218_vm9, %v1088_v46 }
 0xc5d   :  { %1480 = vmatpush.msrb.mxu0 %v3430_v45  ;;  %1500 = vmatpush.msrb.mxu1 %v3435_v3 }
 0xc5e   :  { %1585 = vmatpush.msrb.mxu2 %v3430_v45  ;;  %1605 = vmatpush.msrb.mxu3 %v3435_v3 }
 0xc5f   :  { %1481 = vmatpush.msrb.mxu0 %v3440_v9  ;;  %1501 = vmatpush.msrb.mxu1 %v3447_v16 }
 0xc60   :  { %1586 = vmatpush.msrb.mxu2 %v3440_v9  ;;  %1606 = vmatpush.msrb.mxu3 %v3447_v16 }
 0xc61   :  { %1482 = vmatpush.msrb.mxu0 %v3452_v28  ;;  %1502 = vmatpush.msrb.mxu1 %v3457_v57 }
 0xc62   :  { %1587 = vmatpush.msrb.mxu2 %v3452_v28  ;;  %1607 = vmatpush.msrb.mxu3 %v3457_v57 }
 0xc63   :  { %1285 = vmatmul.f32.vlgmr.msra.gmra.mxu0 %v2797_v27  ;;  %1305 = vmatmul.f32.vlgmr.msra.gmra.mxu1 %v2797_v27 }
 0xc64   :  { %1483 = vmatpush.msrb.mxu0 %v3466_v50  ;;  %1503 = vmatpush.msrb.mxu1 %v3471_v29 }
 0xc65   :  { %1588 = vmatpush.msrb.mxu2 %v3466_v50  ;;  %1608 = vmatpush.msrb.mxu3 %v3471_v29 }
 0xc66   :  { %1484 = vmatpush.msrb.mxu0 %v3480_v43  ;;  %1504 = vmatpush.msrb.mxu1 %v3485_v30 }
 0xc67   :  { %1589 = vmatpush.msrb.mxu2 %v3480_v43  ;;  %1609 = vmatpush.msrb.mxu3 %v3485_v30 }
 0xc68   :  { %1687 = vmatpush.msra.mxu0 %v3388_v4  ;;  %1707 = vmatpush.msra.mxu1 %v3393_v48 }
 0xc6a   :  { %1688 = vmatpush.msra.mxu0 %v3398_v5  ;;  %1708 = vmatpush.msra.mxu1 %v3405_v6 }
 0xc6c   :  { %1689 = vmatpush.msra.mxu0 %v3410_v7  ;;  %1709 = vmatpush.msra.mxu1 %v3415_v8 }
 0xc6e   :  { %1690 = vmatpush.msra.mxu0 %v3430_v45  ;;  %1710 = vmatpush.msra.mxu1 %v3435_v3 }
 0xc70   :  { %1691 = vmatpush.msra.mxu0 %v3440_v9  ;;  %1711 = vmatpush.msra.mxu1 %v3447_v16 }
 0xc72   :  { %1692 = vmatpush.msra.mxu0 %v3452_v28  ;;  %1712 = vmatpush.msra.mxu1 %v3457_v57 }
 0xc74   :  { %1693 = vmatpush.msra.mxu0 %v3466_v50  ;;  %1713 = vmatpush.msra.mxu1 %v3471_v29 }
 0xc76   :  { %1694 = vmatpush.msra.mxu0 %v3480_v43  ;;  %1714 = vmatpush.msra.mxu1 %v3485_v30 }
 0xcd0   :  { %v1166_v35 = vpop.f32.mrf.mxu0  ;;  %v1189_v37 = vpop.f32.mrf.mxu1 }
 0xcd1   :  { %v3570_v0 = vadd.f32 %v1166_v35, %v1139_v39  ;;  %v3580_v17 = vadd.f32 %v1189_v37, %v1140_v36 }
 0xcd7   :  { %v1212_v44 = vpop.f32.mrf.mxu2  ;;  %v1235_v49 = vpop.f32.mrf.mxu3 }
 0xcd8   :  { %v1257_v52 = vrot.slane %v1212_v44, 6  ;;  %v1263_v53 = vrot.slane %v1212_v44, 2  ;;  %v1169_v54 = vpop.f32.mrf.mxu0  ;;  %v1192_v58 = vpop.f32.mrf.mxu1  ;;  %v1258_v55 = vrot.slane %v1235_v49, 6  ;;  %v1264_v22 = vrot.slane %v1235_v49, 2 }
 0xcd9   :  { %v1170_v51 = vadd.f32 %v1169_v54, %v1139_v39  ;;  %v1193_v40 = vadd.f32 %v1192_v58, %v1140_v36 }
 0xcdb   :  { %v3560_v42 = vadd.f32 %v1263_v53, %v1170_v51  ;;  %v3562_v61 = vadd.f32 %v1264_v22, %v1193_v40  ;;  %v3564_v62 = vadd.f32 %v1257_v52, %v1170_v51  ;;  %v3566_v60 = vadd.f32 %v1258_v55, %v1193_v40 }
 0xcdf   :  { %v3568_v63 = vpop.f32.mrf.mxu2  ;;  %v3577_v12 = vpop.f32.mrf.mxu3 }
 0xce0   :  { %v1243_v1 = vrot.slane %v3568_v63, 6  ;;  %v1286_v2 = vpop.f32.mrf.mxu0  ;;  %v1244_v14 = vrot.slane %v3577_v12, 6  ;;  %v1306_v19 = vpop.f32.mrf.mxu1 }
 0xce2   :  { %v3574_v47 = vadd.f32 %v1243_v1, %v3570_v0  ;;  %v3583_v18 = vadd.f32 %v1244_v14, %v3580_v17 }
 0xce4   :  { %v1309_v10 = vadd.f32 %v1286_v2, %v3574_v47  ;;  %v1310_v21 = vadd.f32 %v1306_v19, %v3583_v18 }
 0xce6   :  { %v2516_v11 = vmul.f32 -1.442695, %v1309_v10  ;;  %v2517_v46 = vmul.f32 -1.442695, %v1310_v21 }
 0xce8   :  { %2663 = vpow2.f32 %v2516_v11  ;;  %v1249_v11 = vrot.slane %v3568_v63, 2 }
 0xcea   :  { %v3614_v14 = vadd.f32 %v1249_v11, %v3570_v0 }
 0xcee   :  { %v2664_v13 = vpop.eup %2663 }
 0xcef   :  { %v1317_v15 = vadd.f32 1.0, %v2664_v13 }
 0xcf1   :  { %2665 = vrcp.f32 %v1317_v15  ;;  %v1330_v25 = vand.u32 2147483648, %v1317_v15  ;;  %v1328_v56 = vand.u32 2147483647, %v1317_v15  ;;  %vm1324_vm10 = vweird.f32 %v1317_v15 }
 0xcf2   :  { %2667 = vtanh.f32 %v1310_v21 }
 0xcf3   :  { %v1331_v31 = vor.u32 1.1754944e-38, %v1330_v25  ;;  %vm1329_vm14 = vcmp.eq.f32.partialorder %v1328_v56, 8.507059e+37  ;;  %2669 = vpow2.f32 %v2517_v46  ;;  %v1250_v25 = vrot.slane %v3577_v12, 2 }
 0xcf5   :  { %v3619_v56 = vadd.f32 %v1250_v25, %v3580_v17 }
 0xcf7   :  { %v2666_v20 = vpop.eup %2665 }
 0xcf8   :  { %v1320_v23 = vmul.f32 %v2666_v20, %v1317_v15  ;;  %vm1325_vm8 = vweird.f32 %v2666_v20  ;;  %v2668_v33 = vpop.eup %2667 }
 0xcf9   :  { %vm1326_vm11 = vmor %vm1324_vm10, %vm1325_vm8  ;;  %v2670_v35 = vpop.eup %2669 }
 0xcfa   :  { %v1321_v24 = vsub.f32 1.0, %v1320_v23  ;;  %v1318_v37 = vadd.f32 1.0, %v2670_v35 }
 0xcfc   :  { %v1322_v26 = vmul.f32 %v2666_v20, %v1321_v24  ;;  %2671 = vrcp.f32 %v1318_v37  ;;  %v1345_v58 = vand.u32 2147483648, %v1318_v37  ;;  %vm1339_vm1 = vweird.f32 %v1318_v37 }
 0xcfd   :  { %v1343_v55 = vand.u32 2147483647, %v1318_v37 }
 0xcfe   :  { %v1323_v41 = vadd.f32 %v2666_v20, %v1322_v26  ;;  %v1346_v51 = vor.u32 1.1754944e-38, %v1345_v58 }
 0xcff   :  { %vm1344_vm3 = vcmp.eq.f32.partialorder %v1343_v55, 8.507059e+37 }
 0xd00   :  { %v1327_v32 = vsel %vm1326_vm11, %v2666_v20, %v1323_v41 }
 0xd01   :  { %v1332_v34 = vsel %vm1329_vm14, %v1331_v31, %v1327_v32 }
 0xd02   :  { %v1351_v59 = vmul.f32 %v2668_v33, %v1332_v34  ;;  %v2672_v38 = vpop.eup %2671  ;;  %v1350_v49 = vmul.f32 0.0, %v1332_v34 }
 0xd03   :  { %v1335_v39 = vmul.f32 %v2672_v38, %v1318_v37  ;;  %vm1340_vm15 = vweird.f32 %v2672_v38 }
 0xd04   :  { %1353 = vrot.lane.b32.xlu1 %v1351_v59, %s2798_s3  ;;  %vm1341_vm2 = vmor %vm1339_vm1, %vm1340_vm15 }
 0xd05   :  { %v1336_v36 = vsub.f32 1.0, %v1335_v39 }
 0xd07   :  { %v1337_v44 = vmul.f32 %v2672_v38, %v1336_v36 }
 0xd09   :  { %v1338_v54 = vadd.f32 %v2672_v38, %v1337_v44 }
 0xd0b   :  { %v1342_v22 = vsel %vm1341_vm2, %v2672_v38, %v1338_v54 }
 0xd0c   :  { %v1347_v1 = vsel %vm1344_vm3, %v1346_v51, %v1342_v22 }
 0xd76   :  { %v1354_v52 = vpop.permute.xlu1 %1353 }
 0xd77   :  { %v3587_v53 = vadd.f32 %v1354_v52, %v1350_v49 }
 0xd79   :  { %2673 = vtanh.f32 %v3587_v53  ;;  %v1452_v12 = vrot.slane %v3587_v53, 6 }
 0xd7f   :  { %v2674_v40 = vpop.eup %2673 }
 0xd80   :  { %v3590_v2 = vmul.f32 %v2674_v40, %v1347_v1 }
 0xd82   :  { %1360 = vrot.lane.b32.xlu2 %v3590_v2, %s2798_s3 }
 0xddc   :  { %v1361_v10 = vpop.permute.xlu2 %1360 }
 0xddd   :  { %2518 = vmatmul.msk.f32.vlgmr.msra.gmra.mxu2 %vm218_vm9, %v1361_v10  ;;  %2519 = vmatmul.msk.f32.vlgmr.msra.gmra.mxu3 %vm218_vm9, %v1361_v10 }
 0xdde   :  { %1785 = vmatpush.msra.mxu2 %v3388_v4  ;;  %1805 = vmatpush.msra.mxu3 %v3393_v48 }
 0xde0   :  { %1786 = vmatpush.msra.mxu2 %v3398_v5  ;;  %1806 = vmatpush.msra.mxu3 %v3405_v6 }
 0xde2   :  { %1787 = vmatpush.msra.mxu2 %v3410_v7  ;;  %1807 = vmatpush.msra.mxu3 %v3415_v8 }
 0xde4   :  { %1788 = vmatpush.msra.mxu2 %v3430_v45  ;;  %1808 = vmatpush.msra.mxu3 %v3435_v3 }
 0xde6   :  { %1789 = vmatpush.msra.mxu2 %v3440_v9  ;;  %1809 = vmatpush.msra.mxu3 %v3447_v16 }
 0xde8   :  { %1790 = vmatpush.msra.mxu2 %v3452_v28  ;;  %1810 = vmatpush.msra.mxu3 %v3457_v57 }
 0xdea   :  { %1791 = vmatpush.msra.mxu2 %v3466_v50  ;;  %1811 = vmatpush.msra.mxu3 %v3471_v29 }
 0xdec   :  { %1792 = vmatpush.msra.mxu2 %v3480_v43  ;;  %1812 = vmatpush.msra.mxu3 %v3485_v30 }
 0xe60   :  { %v1381_v13 = vpop.f32.mrf.mxu2  ;;  %v1401_v24 = vpop.f32.mrf.mxu3 }
 0xe61   :  { %v1406_v15 = vrot.slane %v1381_v13, 6  ;;  %v1407_v26 = vrot.slane %v1401_v24, 6 }
 0xe63   :  { %v1410_v19 = vadd.f32 %v1406_v15, %v3614_v14  ;;  %v1411_v41 = vadd.f32 %v1407_v26, %v3619_v56 }
 0xe65   :  { %v2520_v20 = vmul.f32 -1.442695, %v1410_v19  ;;  %v2521_v36 = vmul.f32 -1.442695, %v1411_v41 }
 0xe67   :  { %2675 = vpow2.f32 %v2520_v20 }
 0xe6d   :  { %v2676_v21 = vpop.eup %2675 }
 0xe6e   :  { %v1418_v23 = vadd.f32 1.0, %v2676_v21 }
 0xe70   :  { %2677 = vrcp.f32 %v1418_v23  ;;  %v1431_v32 = vand.u32 2147483648, %v1418_v23  ;;  %v1429_v34 = vand.u32 2147483647, %v1418_v23  ;;  %vm1425_vm5 = vweird.f32 %v1418_v23 }
 0xe71   :  { %2679 = vtanh.f32 %v1411_v41 }
 0xe72   :  { %v1432_v46 = vor.u32 1.1754944e-38, %v1431_v32  ;;  %vm1430_vm10 = vcmp.eq.f32.partialorder %v1429_v34, 8.507059e+37  ;;  %2681 = vpow2.f32 %v2521_v36 }
 0xe76   :  { %v2678_v63 = vpop.eup %2677 }
 0xe77   :  { %v1421_v0 = vmul.f32 %v2678_v63, %v1418_v23  ;;  %vm1426_vm4 = vweird.f32 %v2678_v63  ;;  %v2680_v17 = vpop.eup %2679 }
 0xe78   :  { %vm1427_vm8 = vmor %vm1425_vm5, %vm1426_vm4  ;;  %v2682_v44 = vpop.eup %2681 }
 0xe79   :  { %v1422_v31 = vsub.f32 1.0, %v1421_v0  ;;  %v1419_v49 = vadd.f32 1.0, %v2682_v44 }
 0xe7b   :  { %v1423_v33 = vmul.f32 %v2678_v63, %v1422_v31  ;;  %2683 = vrcp.f32 %v1419_v49  ;;  %v1446_v40 = vand.u32 2147483648, %v1419_v49  ;;  %vm1440_vm14 = vweird.f32 %v1419_v49 }
 0xe7c   :  { %v1444_v1 = vand.u32 2147483647, %v1419_v49 }
 0xe7d   :  { %v1424_v59 = vadd.f32 %v2678_v63, %v1423_v33  ;;  %v1447_v11 = vor.u32 1.1754944e-38, %v1446_v40 }
 0xe7e   :  { %vm1445_vm1 = vcmp.eq.f32.partialorder %v1444_v1, 8.507059e+37 }
 0xe7f   :  { %v1428_v35 = vsel %vm1427_vm8, %v2678_v63, %v1424_v59 }
 0xe80   :  { %v1433_v37 = vsel %vm1430_vm10, %v1432_v46, %v1428_v35 }
 0xe81   :  { %v1455_v38 = vmul.f32 %v2680_v17, %v1433_v37  ;;  %v1454_v39 = vmul.f32 %v1452_v12, %v1433_v37  ;;  %v2684_v52 = vpop.eup %2683 }
 0xe82   :  { %v1436_v54 = vmul.f32 %v2684_v52, %v1419_v49  ;;  %vm1441_vm11 = vweird.f32 %v2684_v52 }
 0xe83   :  { %1457 = vrot.lane.b32.xlu0 %v1455_v38, %s2798_s3  ;;  %vm1442_vm15 = vmor %vm1440_vm14, %vm1441_vm11 }
 0xe84   :  { %v1437_v58 = vsub.f32 1.0, %v1436_v54 }
 0xe86   :  { %v1438_v55 = vmul.f32 %v2684_v52, %v1437_v58 }
 0xe88   :  { %v1439_v53 = vadd.f32 %v2684_v52, %v1438_v55 }
 0xe8a   :  { %v1443_v10 = vsel %vm1442_vm15, %v2684_v52, %v1439_v53 }
 0xe8b   :  { %v1448_v15 = vsel %vm1445_vm1, %v1447_v11, %v1443_v10 }
 0xef5   :  { %v1458_v22 = vpop.permute.xlu0 %1457 }
 0xef6   :  { %v3624_v51 = vadd.f32 %v1458_v22, %v1454_v39 }
 0xef8   :  { %2685 = vtanh.f32 %v3624_v51  ;;  %v1557_v37 = vrot.slane %v3624_v51, 6 }
 0xefe   :  { %v2686_v13 = vpop.eup %2685 }
 0xeff   :  { %v3627_v19 = vmul.f32 %v2686_v13, %v1448_v15 }
 0xf01   :  { %v1464_v20 = vrot.slane %v3627_v19, 2 }
 0xf03   :  { %1465 = vrot.lane.b32.xlu1 %v1464_v20, %s2798_s3 }
 0xf75   :  { %v1466_v21 = vpop.permute.xlu1 %1465 }
 0xf76   :  { %2522 = vmatmul.msk.f32.vlgmr.msrb.gmra.mxu0 %vm218_vm9, %v1466_v21  ;;  %2523 = vmatmul.msk.f32.vlgmr.msrb.gmra.mxu1 %vm218_vm9, %v1466_v21 }
 0xf77   :  { %1890 = vmatpush.msrb.mxu0 %v3388_v4  ;;  %1910 = vmatpush.msrb.mxu1 %v3393_v48 }
 0xf79   :  { %1891 = vmatpush.msrb.mxu0 %v3398_v5  ;;  %1911 = vmatpush.msrb.mxu1 %v3405_v6 }
 0xf7b   :  { %1892 = vmatpush.msrb.mxu0 %v3410_v7  ;;  %1912 = vmatpush.msrb.mxu1 %v3415_v8 }
 0xf7d   :  { %1893 = vmatpush.msrb.mxu0 %v3430_v45  ;;  %1913 = vmatpush.msrb.mxu1 %v3435_v3 }
 0xf7f   :  { %1894 = vmatpush.msrb.mxu0 %v3440_v9  ;;  %1914 = vmatpush.msrb.mxu1 %v3447_v16 }
 0xf81   :  { %1895 = vmatpush.msrb.mxu0 %v3452_v28  ;;  %1915 = vmatpush.msrb.mxu1 %v3457_v57 }
 0xf83   :  { %1896 = vmatpush.msrb.mxu0 %v3466_v50  ;;  %1916 = vmatpush.msrb.mxu1 %v3471_v29 }
 0xf85   :  { %1897 = vmatpush.msrb.mxu0 %v3480_v43  ;;  %1917 = vmatpush.msrb.mxu1 %v3485_v30 }
 0xff3   :  { %v1486_v23 = vpop.f32.mrf.mxu0  ;;  %v1506_v0 = vpop.f32.mrf.mxu1 }
 0xff4   :  { %v1511_v24 = vrot.slane %v1486_v23, 4  ;;  %v1512_v31 = vrot.slane %v1506_v0, 4 }
 0xff6   :  { %v1515_v25 = vadd.f32 %v1511_v24, %v3574_v47  ;;  %v1516_v33 = vadd.f32 %v1512_v31, %v3583_v18  ;;  %v2086_v24 = vsel %vm1039_vm12, %v3590_v2, %v3627_v19 }
 0xff8   :  { %v2524_v26 = vmul.f32 -1.442695, %v1515_v25  ;;  %v2525_v18 = vmul.f32 -1.442695, %v1516_v33 }
 0xffa   :  { %2687 = vpow2.f32 %v2524_v26 }
0x1000   :  { %v2688_v63 = vpop.eup %2687 }
0x1001   :  { %v1523_v41 = vadd.f32 1.0, %v2688_v63 }
0x1003   :  { %2689 = vrcp.f32 %v1523_v41  ;;  %v1536_v46 = vand.u32 2147483648, %v1523_v41  ;;  %v1534_v35 = vand.u32 2147483647, %v1523_v41  ;;  %vm1530_vm3 = vweird.f32 %v1523_v41 }
0x1004   :  { %2691 = vtanh.f32 %v1516_v33 }
0x1005   :  { %v1537_v47 = vor.u32 1.1754944e-38, %v1536_v46  ;;  %vm1535_vm5 = vcmp.eq.f32.partialorder %v1534_v35, 8.507059e+37  ;;  %2693 = vpow2.f32 %v2525_v18 }
0x1009   :  { %v2690_v32 = vpop.eup %2689 }
0x100a   :  { %v1526_v34 = vmul.f32 %v2690_v32, %v1523_v41  ;;  %vm1531_vm2 = vweird.f32 %v2690_v32  ;;  %v2692_v39 = vpop.eup %2691 }
0x100b   :  { %vm1532_vm4 = vmor %vm1530_vm3, %vm1531_vm2  ;;  %v2694_v52 = vpop.eup %2693 }
0x100c   :  { %v1527_v59 = vsub.f32 1.0, %v1526_v34  ;;  %v1524_v54 = vadd.f32 1.0, %v2694_v52 }
0x100e   :  { %v1528_v12 = vmul.f32 %v2690_v32, %v1527_v59  ;;  %2695 = vrcp.f32 %v1524_v54  ;;  %v1551_v10 = vand.u32 2147483648, %v1524_v54  ;;  %vm1545_vm10 = vweird.f32 %v1524_v54 }
0x100f   :  { %v1549_v11 = vand.u32 2147483647, %v1524_v54 }
0x1010   :  { %v1529_v17 = vadd.f32 %v2690_v32, %v1528_v12  ;;  %v1552_v15 = vor.u32 1.1754944e-38, %v1551_v10 }
0x1011   :  { %vm1550_vm14 = vcmp.eq.f32.partialorder %v1549_v11, 8.507059e+37 }
0x1012   :  { %v1533_v38 = vsel %vm1532_vm4, %v2690_v32, %v1529_v17 }
0x1013   :  { %v1538_v36 = vsel %vm1535_vm5, %v1537_v47, %v1533_v38 }
0x1014   :  { %v1560_v44 = vmul.f32 %v2692_v39, %v1538_v36  ;;  %v1559_v49 = vmul.f32 %v1557_v37, %v1538_v36  ;;  %v2696_v58 = vpop.eup %2695 }
0x1015   :  { %v1541_v55 = vmul.f32 %v2696_v58, %v1524_v54  ;;  %vm1546_vm8 = vweird.f32 %v2696_v58 }
0x1016   :  { %1562 = vrot.lane.b32.xlu2 %v1560_v44, %s2798_s3  ;;  %vm1547_vm11 = vmor %vm1545_vm10, %vm1546_vm8 }
0x1017   :  { %v1542_v22 = vsub.f32 1.0, %v1541_v55 }
0x1019   :  { %v1543_v53 = vmul.f32 %v2696_v58, %v1542_v22 }
0x101b   :  { %v1544_v51 = vadd.f32 %v2696_v58, %v1543_v53 }
0x101d   :  { %v1548_v13 = vsel %vm1547_vm11, %v2696_v58, %v1544_v51 }
0x101e   :  { %v1553_v21 = vsel %vm1550_vm14, %v1552_v15, %v1548_v13 }
0x1070   :  { %v1563_v40 = vpop.permute.xlu2 %1562 }
0x1071   :  { %v3653_v1 = vadd.f32 %v1563_v40, %v1559_v49  ;;  %v2104_v40 = vrot.slane %v3627_v19, 6 }
0x1073   :  { %2697 = vtanh.f32 %v3653_v1  ;;  %v1662_v41 = vrot.slane %v3653_v1, 6 }
0x1079   :  { %v2698_v20 = vpop.eup %2697 }
0x107a   :  { %v3656_v23 = vmul.f32 %v2698_v20, %v1553_v21 }
0x107c   :  { %v1569_v25 = vrot.slane %v3656_v23, 4  ;;  %v3664_v26 = vsel %vm1041_vm13, %v2086_v24, %v3656_v23  ;;  %v2102_v53 = vrot.slane %v3656_v23, 2 }
0x107e   :  { %1570 = vrot.lane.b32.xlu0 %v1569_v25, %s2798_s3 }
0x10f0   :  { %v1571_v63 = vpop.permute.xlu0 %1570 }
0x10f1   :  { %2526 = vmatmul.msk.f32.vlgmr.msrb.gmra.mxu2 %vm218_vm9, %v1571_v63  ;;  %2527 = vmatmul.msk.f32.vlgmr.msrb.gmra.mxu3 %vm218_vm9, %v1571_v63 }
0x10f2   :  { %1995 = vmatpush.msrb.mxu2 %v3388_v4  ;;  %2015 = vmatpush.msrb.mxu3 %v3393_v48 }
0x10f4   :  { %1996 = vmatpush.msrb.mxu2 %v3398_v5  ;;  %2016 = vmatpush.msrb.mxu3 %v3405_v6 }
0x10f6   :  { %1997 = vmatpush.msrb.mxu2 %v3410_v7  ;;  %2017 = vmatpush.msrb.mxu3 %v3415_v8 }
0x10f8   :  { %1998 = vmatpush.msrb.mxu2 %v3430_v45  ;;  %2018 = vmatpush.msrb.mxu3 %v3435_v3 }
0x10fa   :  { %1999 = vmatpush.msrb.mxu2 %v3440_v9  ;;  %2019 = vmatpush.msrb.mxu3 %v3447_v16 }
0x10fc   :  { %2000 = vmatpush.msrb.mxu2 %v3452_v28  ;;  %2020 = vmatpush.msrb.mxu3 %v3457_v57 }
0x10fe   :  { %2001 = vmatpush.msrb.mxu2 %v3466_v50  ;;  %2021 = vmatpush.msrb.mxu3 %v3471_v29 }
0x1100   :  { %2002 = vmatpush.msrb.mxu2 %v3480_v43  ;;  %2022 = vmatpush.msrb.mxu3 %v3485_v30 }
0x1174   :  { %v1591_v4 = vpop.f32.mrf.mxu2  ;;  %v1611_v45 = vpop.f32.mrf.mxu3 }
0x1175   :  { %v1616_v48 = vrot.slane %v1591_v4, 2  ;;  %v1617_v3 = vrot.slane %v1611_v45, 2 }
0x1177   :  { %v1620_v5 = vadd.f32 %v1616_v48, %v3614_v14  ;;  %v1621_v16 = vadd.f32 %v1617_v3, %v3619_v56 }
0x1179   :  { %v2528_v6 = vmul.f32 -1.442695, %v1620_v5  ;;  %v2529_v56 = vmul.f32 -1.442695, %v1621_v16 }
0x117b   :  { %2699 = vpow2.f32 %v2528_v6 }
0x1181   :  { %v2700_v7 = vpop.eup %2699 }
0x1182   :  { %v1628_v8 = vadd.f32 1.0, %v2700_v7 }
0x1184   :  { %2701 = vrcp.f32 %v1628_v8  ;;  %v1641_v50 = vand.u32 2147483648, %v1628_v8  ;;  %v1639_v43 = vand.u32 2147483647, %v1628_v8  ;;  %vm1635_vm1 = vweird.f32 %v1628_v8 }
0x1185   :  { %2703 = vtanh.f32 %v1621_v16 }
0x1186   :  { %v1642_v14 = vor.u32 1.1754944e-38, %v1641_v50  ;;  %vm1640_vm3 = vcmp.eq.f32.partialorder %v1639_v43, 8.507059e+37  ;;  %2705 = vpow2.f32 %v2529_v56 }
0x118a   :  { %v2702_v9 = vpop.eup %2701 }
0x118b   :  { %v1631_v28 = vmul.f32 %v2702_v9, %v1628_v8  ;;  %vm1636_vm15 = vweird.f32 %v2702_v9  ;;  %v2704_v31 = vpop.eup %2703 }
0x118c   :  { %vm1637_vm2 = vmor %vm1635_vm1, %vm1636_vm15  ;;  %v2706_v59 = vpop.eup %2705 }
0x118d   :  { %v1632_v57 = vsub.f32 1.0, %v1631_v28  ;;  %v1629_v46 = vadd.f32 1.0, %v2706_v59 }
0x118f   :  { %v1633_v29 = vmul.f32 %v2702_v9, %v1632_v57  ;;  %2707 = vrcp.f32 %v1629_v46  ;;  %v1656_v36 = vand.u32 2147483648, %v1629_v46  ;;  %vm1650_vm5 = vweird.f32 %v1629_v46 }
0x1190   :  { %v1654_v44 = vand.u32 2147483647, %v1629_v46 }
0x1191   :  { %v1634_v30 = vadd.f32 %v2702_v9, %v1633_v29  ;;  %v1657_v18 = vor.u32 1.1754944e-38, %v1656_v36 }
0x1192   :  { %vm1655_vm10 = vcmp.eq.f32.partialorder %v1654_v44, 8.507059e+37 }
0x1193   :  { %v1638_v0 = vsel %vm1637_vm2, %v2702_v9, %v1634_v30 }
0x1194   :  { %v1643_v32 = vsel %vm1640_vm3, %v1642_v14, %v1638_v0 }
0x1195   :  { %v1665_v33 = vmul.f32 %v2704_v31, %v1643_v32  ;;  %v1664_v34 = vmul.f32 %v1662_v41, %v1643_v32  ;;  %v2708_v12 = vpop.eup %2707 }
0x1196   :  { %v1646_v35 = vmul.f32 %v2708_v12, %v1629_v46  ;;  %vm1651_vm4 = vweird.f32 %v2708_v12 }
0x1197   :  { %1667 = vrot.lane.b32.xlu1 %v1665_v33, %s2798_s3  ;;  %vm1652_vm8 = vmor %vm1650_vm5, %vm1651_vm4 }
0x1198   :  { %v1647_v17 = vsub.f32 1.0, %v1646_v35 }
0x119a   :  { %v1648_v47 = vmul.f32 %v2708_v12, %v1647_v17 }
0x119c   :  { %v1649_v39 = vadd.f32 %v2708_v12, %v1648_v47 }
0x119e   :  { %v1653_v49 = vsel %vm1652_vm8, %v2708_v12, %v1649_v39 }
0x119f   :  { %v1658_v54 = vsel %vm1655_vm10, %v1657_v18, %v1653_v49 }
0x1209   :  { %v1668_v37 = vpop.permute.xlu1 %1667 }
0x120a   :  { %v1670_v38 = vadd.f32 %v1668_v37, %v1664_v34 }
0x120c   :  { %2709 = vtanh.f32 %v1670_v38  ;;  %v1761_v7 = vrot.slane %v1670_v38, 6 }
0x1212   :  { %v2710_v52 = vpop.eup %2709 }
0x1213   :  { %v1672_v58 = vmul.f32 %v2710_v52, %v1658_v54 }
0x1215   :  { %v1674_v55 = vrot.slane %v1672_v58, 6  ;;  %v3691_v22 = vsel %vm1043_vm7, %v3664_v26, %v1672_v58 }
0x1217   :  { %1675 = vrot.lane.b32.xlu2 %v1674_v55, %s2798_s3  ;;  %v2111_v1 = vsel %vm1039_vm12, %v1674_v55, %v2102_v53 }
0x1218   :  { %v3698_v51 = vsel %vm1041_vm13, %v2111_v1, %v2104_v40 }
0x1271   :  { %v1676_v10 = vpop.permute.xlu2 %1675 }
0x1272   :  { %2530 = vmatmul.msk.f32.vlgmr.msra.gmra.mxu0 %vm218_vm9, %v1676_v10  ;;  %2531 = vmatmul.msk.f32.vlgmr.msra.gmra.mxu1 %vm218_vm9, %v1676_v10 }
0x12ef   :  { %v1696_v11 = vpop.f32.mrf.mxu0  ;;  %v1716_v19 = vpop.f32.mrf.mxu1 }
0x12f0   :  { %v1719_v13 = vadd.f32 %v1696_v11, %v3564_v62  ;;  %v1720_v24 = vadd.f32 %v1716_v19, %v3566_v60 }
0x12f2   :  { %v2532_v15 = vmul.f32 -1.442695, %v1719_v13  ;;  %v2533_v28 = vmul.f32 -1.442695, %v1720_v24 }
0x12f4   :  { %2711 = vpow2.f32 %v2532_v15 }
0x12fa   :  { %v2712_v20 = vpop.eup %2711 }
0x12fb   :  { %v1727_v21 = vadd.f32 1.0, %v2712_v20 }
0x12fd   :  { %2713 = vrcp.f32 %v1727_v21  ;;  %v1740_v63 = vand.u32 2147483648, %v1727_v21  ;;  %v1738_v48 = vand.u32 2147483647, %v1727_v21  ;;  %vm1734_vm14 = vweird.f32 %v1727_v21 }
0x12fe   :  { %2715 = vtanh.f32 %v1720_v24 }
0x12ff   :  { %v1741_v6 = vor.u32 1.1754944e-38, %v1740_v63  ;;  %vm1739_vm1 = vcmp.eq.f32.partialorder %v1738_v48, 8.507059e+37  ;;  %2717 = vpow2.f32 %v2533_v28 }
0x1303   :  { %v2714_v23 = vpop.eup %2713 }
0x1304   :  { %v1730_v25 = vmul.f32 %v2714_v23, %v1727_v21  ;;  %vm1735_vm11 = vweird.f32 %v2714_v23  ;;  %v2716_v45 = vpop.eup %2715 }
0x1305   :  { %vm1736_vm15 = vmor %vm1734_vm14, %vm1735_vm11  ;;  %v2718_v57 = vpop.eup %2717 }
0x1306   :  { %v1731_v26 = vsub.f32 1.0, %v1730_v25  ;;  %v1728_v50 = vadd.f32 1.0, %v2718_v57 }
0x1308   :  { %v1732_v4 = vmul.f32 %v2714_v23, %v1731_v26  ;;  %2719 = vrcp.f32 %v1728_v50  ;;  %v1755_v32 = vand.u32 2147483648, %v1728_v50  ;;  %vm1749_vm3 = vweird.f32 %v1728_v50 }
0x1309   :  { %v1753_v33 = vand.u32 2147483647, %v1728_v50 }
0x130a   :  { %v1733_v5 = vadd.f32 %v2714_v23, %v1732_v4  ;;  %v1756_v56 = vor.u32 1.1754944e-38, %v1755_v32 }
0x130b   :  { %vm1754_vm5 = vcmp.eq.f32.partialorder %v1753_v33, 8.507059e+37 }
0x130c   :  { %v1737_v8 = vsel %vm1736_vm15, %v2714_v23, %v1733_v5 }
0x130d   :  { %v1742_v3 = vsel %vm1739_vm1, %v1741_v6, %v1737_v8 }
0x130e   :  { %v1764_v9 = vmul.f32 %v2716_v45, %v1742_v3  ;;  %v1763_v16 = vmul.f32 %v1761_v7, %v1742_v3  ;;  %v2720_v29 = vpop.eup %2719 }
0x130f   :  { %v1745_v43 = vmul.f32 %v2720_v29, %v1728_v50  ;;  %vm1750_vm2 = vweird.f32 %v2720_v29 }
0x1310   :  { %1766 = vrot.lane.b32.xlu0 %v1764_v9, %s2798_s3  ;;  %vm1751_vm4 = vmor %vm1749_vm3, %vm1750_vm2 }
0x1311   :  { %v1746_v30 = vsub.f32 1.0, %v1745_v43 }
0x1313   :  { %v1747_v14 = vmul.f32 %v2720_v29, %v1746_v30 }
0x1315   :  { %v1748_v31 = vadd.f32 %v2720_v29, %v1747_v14 }
0x1317   :  { %v1752_v34 = vsel %vm1751_vm4, %v2720_v29, %v1748_v31 }
0x1318   :  { %v1757_v46 = vsel %vm1754_vm5, %v1756_v56, %v1752_v34 }
0x1382   :  { %v1767_v41 = vpop.permute.xlu0 %1766 }
0x1383   :  { %v1769_v0 = vadd.f32 %v1767_v41, %v1763_v16 }
0x1385   :  { %2721 = vtanh.f32 %v1769_v0  ;;  %v1865_v11 = vrot.slane %v1769_v0, 6 }
0x138b   :  { %v2722_v59 = vpop.eup %2721 }
0x138c   :  { %v3705_v12 = vmul.f32 %v2722_v59, %v1757_v46 }
0x138e   :  { %1773 = vrot.lane.b32.xlu1 %v3705_v12, %s2798_s3 }
0x1400   :  { %v1774_v35 = vpop.permute.xlu1 %1773 }
0x1401   :  { %2534 = vmatmul.msk.f32.vlgmr.msra.gmra.mxu2 %vm218_vm9, %v1774_v35  ;;  %2535 = vmatmul.msk.f32.vlgmr.msra.gmra.mxu3 %vm218_vm9, %v1774_v35 }
0x1484   :  { %v1794_v17 = vpop.f32.mrf.mxu2  ;;  %v1814_v44 = vpop.f32.mrf.mxu3 }
0x1485   :  { %v1819_v47 = vrot.slane %v1794_v17, 6  ;;  %v1820_v49 = vrot.slane %v1814_v44, 6 }
0x1487   :  { %v1823_v37 = vadd.f32 %v1819_v47, %v3560_v42  ;;  %v1824_v52 = vadd.f32 %v1820_v49, %v3562_v61 }
0x1489   :  { %v2536_v38 = vmul.f32 -1.442695, %v1823_v37  ;;  %v2537_v23 = vmul.f32 -1.442695, %v1824_v52 }
0x148b   :  { %2723 = vpow2.f32 %v2536_v38 }
0x1491   :  { %v2724_v39 = vpop.eup %2723 }
0x1492   :  { %v1831_v36 = vadd.f32 1.0, %v2724_v39 }
0x1494   :  { %2725 = vrcp.f32 %v1831_v36  ;;  %v1844_v55 = vand.u32 2147483648, %v1831_v36  ;;  %v1842_v40 = vand.u32 2147483647, %v1831_v36  ;;  %vm1838_vm10 = vweird.f32 %v1831_v36 }
0x1495   :  { %2727 = vtanh.f32 %v1824_v52 }
0x1496   :  { %v1845_v10 = vor.u32 1.1754944e-38, %v1844_v55  ;;  %vm1843_vm14 = vcmp.eq.f32.partialorder %v1842_v40, 8.507059e+37  ;;  %2729 = vpow2.f32 %v2537_v23 }
0x149a   :  { %v2726_v18 = vpop.eup %2725 }
0x149b   :  { %v1834_v54 = vmul.f32 %v2726_v18, %v1831_v36  ;;  %vm1839_vm8 = vweird.f32 %v2726_v18  ;;  %v2728_v15 = vpop.eup %2727 }
0x149c   :  { %vm1840_vm11 = vmor %vm1838_vm10, %vm1839_vm8  ;;  %v2730_v24 = vpop.eup %2729 }
0x149d   :  { %v1835_v58 = vsub.f32 1.0, %v1834_v54  ;;  %v1832_v25 = vadd.f32 1.0, %v2730_v24 }
0x149f   :  { %v1836_v53 = vmul.f32 %v2726_v18, %v1835_v58  ;;  %2731 = vrcp.f32 %v1832_v25  ;;  %v1859_v8 = vand.u32 2147483648, %v1832_v25  ;;  %vm1853_vm1 = vweird.f32 %v1832_v25 }
0x14a0   :  { %v1857_v45 = vand.u32 2147483647, %v1832_v25 }
0x14a1   :  { %v1837_v1 = vadd.f32 %v2726_v18, %v1836_v53  ;;  %v1860_v9 = vor.u32 1.1754944e-38, %v1859_v8 }
0x14a2   :  { %vm1858_vm3 = vcmp.eq.f32.partialorder %v1857_v45, 8.507059e+37 }
0x14a3   :  { %v1841_v13 = vsel %vm1840_vm11, %v2726_v18, %v1837_v1 }
0x14a4   :  { %v1846_v20 = vsel %vm1843_vm14, %v1845_v10, %v1841_v13 }
0x14a5   :  { %v1868_v21 = vmul.f32 %v2728_v15, %v1846_v20  ;;  %v1867_v19 = vmul.f32 %v1865_v11, %v1846_v20  ;;  %v2732_v26 = vpop.eup %2731 }
0x14a6   :  { %v1849_v63 = vmul.f32 %v2732_v26, %v1832_v25  ;;  %vm1854_vm15 = vweird.f32 %v2732_v26 }
0x14a7   :  { %1870 = vrot.lane.b32.xlu2 %v1868_v21, %s2798_s3  ;;  %vm1855_vm2 = vmor %vm1853_vm1, %vm1854_vm15 }
0x14a8   :  { %v1850_v4 = vsub.f32 1.0, %v1849_v63 }
0x14aa   :  { %v1851_v48 = vmul.f32 %v2732_v26, %v1850_v4 }
0x14ac   :  { %v1852_v7 = vadd.f32 %v2732_v26, %v1851_v48 }
0x14ae   :  { %v1856_v3 = vsel %vm1855_vm2, %v2732_v26, %v1852_v7 }
0x14af   :  { %v1861_v28 = vsel %vm1858_vm3, %v1860_v9, %v1856_v3 }
0x1501   :  { %v1871_v5 = vpop.permute.xlu2 %1870 }
0x1502   :  { %v1873_v6 = vadd.f32 %v1871_v5, %v1867_v19 }
0x1504   :  { %2733 = vtanh.f32 %v1873_v6  ;;  %v1970_v38 = vrot.slane %v1873_v6, 6 }
0x150a   :  { %v2734_v16 = vpop.eup %2733 }
0x150b   :  { %v3714_v57 = vmul.f32 %v2734_v16, %v1861_v28 }
0x150d   :  { %v1877_v50 = vrot.slane %v3714_v57, 2  ;;  %v2089_v24 = vsel %vm1039_vm12, %v3705_v12, %v3714_v57 }
0x150f   :  { %1878 = vrot.lane.b32.xlu0 %v1877_v50, %s2798_s3 }
0x1581   :  { %v1879_v29 = vpop.permute.xlu0 %1878 }
0x1582   :  { %2538 = vmatmul.msk.f32.vlgmr.msrb.gmra.mxu0 %vm218_vm9, %v1879_v29  ;;  %2539 = vmatmul.msk.f32.vlgmr.msrb.gmra.mxu1 %vm218_vm9, %v1879_v29 }
0x15ff   :  { %v1899_v43 = vpop.f32.mrf.mxu0  ;;  %v1919_v32 = vpop.f32.mrf.mxu1 }
0x1600   :  { %v1924_v30 = vrot.slane %v1899_v43, 4  ;;  %v1925_v33 = vrot.slane %v1919_v32, 4 }
0x1602   :  { %v1928_v14 = vadd.f32 %v1924_v30, %v3564_v62  ;;  %v1929_v56 = vadd.f32 %v1925_v33, %v3566_v60  ;;  %v2106_v60 = vrot.slane %v3590_v2, 2 }
0x1604   :  { %v2540_v41 = vmul.f32 -1.442695, %v1928_v14  ;;  %v2113_v52 = vsel %vm1043_vm7, %v3698_v51, %v2106_v60  ;;  %v2541_v54 = vmul.f32 -1.442695, %v1929_v56 }
0x1606   :  { %2735 = vpow2.f32 %v2540_v41 }
0x160c   :  { %v2736_v0 = vpop.eup %2735 }
0x160d   :  { %v1936_v31 = vadd.f32 1.0, %v2736_v0 }
0x160f   :  { %2737 = vrcp.f32 %v1936_v31  ;;  %v1949_v35 = vand.u32 2147483648, %v1936_v31  ;;  %v1947_v47 = vand.u32 2147483647, %v1936_v31  ;;  %vm1943_vm5 = vweird.f32 %v1936_v31 }
0x1610   :  { %2739 = vtanh.f32 %v1929_v56 }
0x1611   :  { %v1950_v62 = vor.u32 1.1754944e-38, %v1949_v35  ;;  %vm1948_vm10 = vcmp.eq.f32.partialorder %v1947_v47, 8.507059e+37  ;;  %2741 = vpow2.f32 %v2541_v54  ;;  %v2138_v35 = vld [vmem:[%s3927_s9 + $0x30] sm:$0xff]  ;;  %v2137_v47 = vld [vmem:[%s3927_s9 + $0x28] sm:$0xff] }
0x1615   :  { %v2738_v34 = vpop.eup %2737 }
0x1616   :  { %v1939_v59 = vmul.f32 %v2738_v34, %v1936_v31  ;;  %vm1944_vm4 = vweird.f32 %v2738_v34  ;;  %v2740_v36 = vpop.eup %2739 }
0x1617   :  { %vm1945_vm8 = vmor %vm1943_vm5, %vm1944_vm4  ;;  %v2742_v58 = vpop.eup %2741 }
0x1618   :  { %v1940_v46 = vsub.f32 1.0, %v1939_v59  ;;  %v1937_v55 = vadd.f32 1.0, %v2742_v58 }
0x161a   :  { %v1941_v17 = vmul.f32 %v2738_v34, %v1940_v46  ;;  %2743 = vrcp.f32 %v1937_v55  ;;  %v1964_v2 = vand.u32 2147483648, %v1937_v55  ;;  %vm1958_vm14 = vweird.f32 %v1937_v55  ;;  %v2139_v46 = vld [vmem:[%s3927_s9 + $0x38] sm:$0xff] }
0x161b   :  { %2158 = vmatpush.msra.mxu0 %v2139_v46 }
0x161c   :  { %v1942_v37 = vadd.f32 %v2738_v34, %v1941_v17  ;;  %v1965_v20 = vor.u32 1.1754944e-38, %v1964_v2  ;;  %v2097_v2 = vrot.slane %v3714_v57, 6  ;;  %v2180_v57 = vld [vmem:[%s3929_s11 + $0x28] sm:$0xff] }
0x161d   :  { %2159 = vmatpush.msra.mxu0 %v2138_v35  ;;  %v2232_v35 = vlaneseq }
0x161e   :  { %v1946_v39 = vsel %vm1945_vm8, %v2738_v34, %v1942_v37  ;;  %v2136_v37 = vld [vmem:[%s3927_s9 + $0x20] sm:$0xff] }
0x161f   :  { %v1951_v44 = vsel %vm1948_vm10, %v1950_v62, %v1946_v39  ;;  %2160 = vmatpush.msra.mxu0 %v2137_v47  ;;  %v2134_v39 = vld [vmem:[%s3927_s9 + $0x10] sm:$0xff] }
0x1620   :  { %v1973_v49 = vmul.f32 %v2740_v36, %v1951_v44  ;;  %v1972_v18 = vmul.f32 %v1970_v38, %v1951_v44  ;;  %v2744_v53 = vpop.eup %2743  ;;  %v2135_v38 = vld [vmem:[%s3927_s9 + $0x18] sm:$0xff]  ;;  %v2133_v44 = vld [vmem:[%s3927_s9 + $0x8] sm:$0xff] }
0x1621   :  { %v1954_v40 = vmul.f32 %v2744_v53, %v1937_v55  ;;  %vm1959_vm11 = vweird.f32 %v2744_v53  ;;  %2161 = vmatpush.msra.mxu0 %v2136_v37 }
0x1622   :  { %1975 = vrot.lane.b32.xlu1 %v1973_v49, %s2798_s3  ;;  %vm1960_vm15 = vmor %vm1958_vm14, %vm1959_vm11 }
0x1623   :  { %v1955_v1 = vsub.f32 1.0, %v1954_v40  ;;  %2162 = vmatpush.msra.mxu0 %v2135_v38  ;;  %v2260_v38 = vand.u32 127, %v2232_v35 }
0x1625   :  { %v1956_v10 = vmul.f32 %v2744_v53, %v1955_v1  ;;  %2163 = vmatpush.msra.mxu0 %v2134_v39 }
0x1627   :  { %v1957_v15 = vadd.f32 %v2744_v53, %v1956_v10  ;;  %2164 = vmatpush.msra.mxu0 %v2133_v44 }
0x1629   :  { %v1961_v51 = vsel %vm1960_vm15, %v2744_v53, %v1957_v15 }
0x162a   :  { %2116 = vrot.lane.b32.xlu1 %v3691_v22, %s2798_s3  ;;  %v1962_v22 = vand.u32 2147483647, %v1937_v55 }
0x162c   :  { %vm1963_vm1 = vcmp.eq.f32.partialorder %v1962_v22, 8.507059e+37  ;;  %v2099_v22 = vrot.slane %v3705_v12, 2  ;;  %v2181_v12 = vld [vmem:[%s3929_s11 + $0x30] sm:$0xff] }
0x162d   :  { %v1966_v19 = vsel %vm1963_vm1, %v1965_v20, %v1961_v51 }
0x1632   :  { %2126 = vrot.lane.b32.xlu1 %v2113_v52, %s2798_s3 }
0x1694   :  { %v1976_v11 = vpop.permute.xlu1 %1975 }
0x1695   :  { %v1978_v13 = vadd.f32 %v1976_v11, %v1972_v18 }
0x1697   :  { %2745 = vtanh.f32 %v1978_v13  ;;  %v2075_v41 = vrot.slane %v1978_v13, 6 }
0x169d   :  { %v2746_v21 = vpop.eup %2745 }
0x169e   :  { %v3729_v23 = vmul.f32 %v2746_v21, %v1966_v19  ;;  %v2132_v19 = vld [vmem:[%s3927_s9] sm:$0xff] }
0x169f   :  { %2165 = vmatpush.msra.mxu0 %v2132_v19 }
0x16a0   :  { %v1982_v25 = vrot.slane %v3729_v23, 4  ;;  %v3737_v26 = vsel %vm1041_vm13, %v2089_v24, %v3729_v23  ;;  %v2095_v15 = vrot.slane %v3729_v23, 2  ;;  %v2182_v23 = vld [vmem:[%s3929_s11 + $0x38] sm:$0xff]  ;;  %v2117_v24 = vpop.permute.xlu1 %2116 }
0x16a1   :  { %2201 = vmatpush.msra.mxu1 %v2182_v23 }
0x16a2   :  { %1983 = vrot.lane.b32.xlu2 %v1982_v25, %s2798_s3 }
0x16a3   :  { %2202 = vmatpush.msra.mxu1 %v2181_v12 }
0x16a5   :  { %2203 = vmatpush.msra.mxu1 %v2180_v57 }
0x16fc   :  { %v1984_v63 = vpop.permute.xlu2 %1983 }
0x16fd   :  { %2542 = vmatmul.msk.f32.vlgmr.msrb.gmra.mxu2 %vm218_vm9, %v1984_v63  ;;  %2543 = vmatmul.msk.f32.vlgmr.msrb.gmra.mxu3 %vm218_vm9, %v1984_v63  ;;  %v2127_v63 = vpop.permute.xlu1 %2126 }
0x1780   :  { %v2004_v4 = vpop.f32.mrf.mxu2  ;;  %v2024_v45 = vpop.f32.mrf.mxu3 }
0x1781   :  { %v2029_v48 = vrot.slane %v2004_v4, 2  ;;  %v2030_v3 = vrot.slane %v2024_v45, 2  ;;  %v2175_v45 = vld [vmem:[%s3929_s11] sm:$0xff] }
0x1783   :  { %v2033_v5 = vadd.f32 %v2029_v48, %v3560_v42  ;;  %v2034_v16 = vadd.f32 %v2030_v3, %v3562_v61  ;;  %v2563_v3 = vld [vmem:[%s3928_s10] ss:$0 sm:$0xff] }
0x1785   :  { %v2544_v6 = vmul.f32 -1.442695, %v2033_v5  ;;  %v2545_v61 = vmul.f32 -1.442695, %v2034_v16  ;;  %v2179_v5 = vld [vmem:[%s3929_s11 + $0x20] sm:$0xff] }
0x1786   :  { %2204 = vmatpush.msra.mxu1 %v2179_v5 }
0x1787   :  { %2747 = vpow2.f32 %v2544_v6  ;;  %v2178_v6 = vld [vmem:[%s3929_s11 + $0x18] sm:$0xff] }
0x1788   :  { %2205 = vmatpush.msra.mxu1 %v2178_v6 }
0x178d   :  { %v2748_v7 = vpop.eup %2747 }
0x178e   :  { %v2041_v8 = vadd.f32 1.0, %v2748_v7  ;;  %v2177_v7 = vld [vmem:[%s3929_s11 + $0x10] sm:$0xff] }
0x178f   :  { %2206 = vmatpush.msra.mxu1 %v2177_v7 }
0x1790   :  { %2749 = vrcp.f32 %v2041_v8  ;;  %v2054_v29 = vand.u32 2147483648, %v2041_v8  ;;  %v2052_v30 = vand.u32 2147483647, %v2041_v8  ;;  %vm2048_vm3 = vweird.f32 %v2041_v8 }
0x1791   :  { %2751 = vtanh.f32 %v2034_v16 }
0x1792   :  { %v2055_v42 = vor.u32 1.1754944e-38, %v2054_v29  ;;  %vm2053_vm5 = vcmp.eq.f32.partialorder %v2052_v30, 8.507059e+37  ;;  %2753 = vpow2.f32 %v2545_v61 }
0x1796   :  { %v2750_v9 = vpop.eup %2749 }
0x1797   :  { %v2044_v28 = vmul.f32 %v2750_v9, %v2041_v8  ;;  %vm2049_vm2 = vweird.f32 %v2750_v9  ;;  %v2752_v31 = vpop.eup %2751  ;;  %v2176_v8 = vld [vmem:[%s3929_s11 + $0x8] sm:$0xff] }
0x1798   :  { %vm2050_vm4 = vmor %vm2048_vm3, %vm2049_vm2  ;;  %v2754_v56 = vpop.eup %2753  ;;  %2207 = vmatpush.msra.mxu1 %v2176_v8 }
0x1799   :  { %v2045_v50 = vsub.f32 1.0, %v2044_v28  ;;  %v2042_v59 = vadd.f32 1.0, %v2754_v56 }
0x179a   :  { %2208 = vmatpush.msra.mxu1 %v2175_v45 }
0x179b   :  { %v2046_v43 = vmul.f32 %v2750_v9, %v2045_v50  ;;  %2755 = vrcp.f32 %v2042_v59  ;;  %v2069_v54 = vand.u32 2147483648, %v2042_v59  ;;  %vm2063_vm10 = vweird.f32 %v2042_v59 }
0x179c   :  { %v2067_v58 = vand.u32 2147483647, %v2042_v59 }
0x179d   :  { %v2047_v14 = vadd.f32 %v2750_v9, %v2046_v43  ;;  %v2070_v53 = vor.u32 1.1754944e-38, %v2069_v54 }
0x179e   :  { %vm2068_vm14 = vcmp.eq.f32.partialorder %v2067_v58, 8.507059e+37 }
0x179f   :  { %v2051_v0 = vsel %vm2050_vm4, %v2750_v9, %v2047_v14  ;;  %v2564_v14 = vld [vmem:[#allocation2] ss:$0 sm:$0xff] }
0x17a0   :  { %v2056_v32 = vsel %vm2053_vm5, %v2055_v42, %v2051_v0 }
0x17a1   :  { %v2078_v33 = vmul.f32 %v2752_v31, %v2056_v32  ;;  %v2077_v34 = vmul.f32 %v2075_v41, %v2056_v32  ;;  %v2756_v17 = vpop.eup %2755 }
0x17a2   :  { %v2059_v62 = vmul.f32 %v2756_v17, %v2042_v59  ;;  %vm2064_vm8 = vweird.f32 %v2756_v17 }
0x17a3   :  { %2080 = vrot.lane.b32.xlu0 %v2078_v33, %s2798_s3  ;;  %vm2065_vm11 = vmor %vm2063_vm10, %vm2064_vm8 }
0x17a4   :  { %v2060_v36 = vsub.f32 1.0, %v2059_v62  ;;  %v3818_v62 = vshrl.u32 %v2232_v35, 7  ;;  %v2417_v35 = vld [vmem:[%s3933_s15 + $0x28] sm:$0xff] }
0x17a6   :  { %v2061_v49 = vmul.f32 %v2756_v17, %v2060_v36  ;;  %v2239_v44 = vand.u32 1, %v3818_v62 }
0x17a8   :  { %v2062_v52 = vadd.f32 %v2756_v17, %v2061_v49  ;;  %v3821_v49 = vand.u32 1, %v2260_v38  ;;  %v2413_v38 = vld [vmem:[%s3933_s15 + $0x8] sm:$0xff] }
0x17aa   :  { %v2066_v55 = vsel %vm2065_vm11, %v2756_v17, %v2062_v52  ;;  %vm2338_vm10 = vcmp.eq.s32.totalorder %v3821_v49, %v3818_v62 }
0x17ab   :  { %v2071_v1 = vsel %vm2068_vm14, %v2070_v53, %v2066_v55  ;;  %v2799_v53 = vmov 0  }
0x17ac   :  { %2562 = vset.pattern.permute.xlu0 %v2799_v53  ;;  %2561 = vset.pattern.permute.xlu2 %v2799_v53 }
0x1815   :  { %v2081_v18 = vpop.permute.xlu0 %2080 }
0x1816   :  { %v2083_v60 = vadd.f32 %v2081_v18, %v2077_v34  ;;  %v2234_v18 = vadd.s32 8, %v3818_v62  ;;  %v2414_v62 = vld [vmem:[%s3933_s15 + $0x10] sm:$0xff] }
0x1818   :  { %2757 = vtanh.f32 %v2083_v60  ;;  %v2246_v58 = vand.u32 1, %v2234_v18 }
0x181e   :  { %v2758_v40 = vpop.eup %2757 }
0x181f   :  { %v2085_v10 = vmul.f32 %v2758_v40, %v2071_v1 }
0x1821   :  { %v2091_v11 = vsel %vm1043_vm7, %v3737_v26, %v2085_v10  ;;  %v2093_v13 = vrot.slane %v2085_v10, 6 }
0x1822   :  { %2118 = vrot.lane.b32.xlu0 %v2091_v11, %s2798_s3 }
0x1823   :  { %v2108_v51 = vsel %vm1039_vm12, %v2093_v13, %v2095_v15  ;;  %vm2216_vm12 = vcmask 7168  }
0x1824   :  { %v2109_v20 = vsel %vm1041_vm13, %v2108_v51, %v2097_v2  ;;  %vm2273_vm13 = vcmp.eq.s32.totalorder %v2239_v44, %v3821_v49 }
0x1825   :  { %v2110_v21 = vsel %vm1043_vm7, %v2109_v20, %v2099_v22  ;;  %v2550_v52 = vsel %vm2273_vm13, 1.0, %v2797_v27  ;;  %vm2274_vm7 = vcmp.eq.s32.totalorder %v2246_v58, %v3821_v49 }
0x1826   :  { %2124 = vrot.lane.b32.xlu2 %v2110_v21, %s2798_s3  ;;  %v2551_v55 = vsel %vm2274_vm7, 1.0, %v2797_v27 }
0x1880   :  { %v2125_v25 = vpop.permute.xlu2 %2124 }
0x1881   :  { %v3789_v26 = vsel %vm1086_vm6, %v2117_v24, %v2125_v25 }
0x1882   :  { %2546 = vmatmul.msk.f32.vlgmr.msra.gmra.mxu0 %vm218_vm9, %v3789_v26 }
0x1894   :  { %v2119_v4 = vpop.permute.xlu0 %2118 }
0x1895   :  { %v3794_v48 = vsel %vm1086_vm6, %v2119_v4, %v2127_v63 }
0x1896   :  { %2547 = vmatmul.msk.f32.gmra.mxu0 %vm218_vm9, %v3794_v48 }
0x18ff   :  { %v2167_v9 = vpop.f32.mrf.mxu0 }
0x1900   :  { %v2168_v16 = vadd.f32 %v2563_v3, %v2167_v9  ;;  %v2382_v9 = vld [vmem:[%s3931_s13 + $0x30] sm:$0xff] }
0x1902   :  { %2759 = vtanh.f32 %v2168_v16  ;;  %v2381_v16 = vld [vmem:[%s3931_s13 + $0x28] sm:$0xff] }
0x1908   :  { %v2760_v28 = vpop.eup %2759 }
0x1909   :  { %2548 = vmatmul.msk.f32.vlgmr.msra.gmra.mxu1 %vm218_vm9, %v2760_v28  ;;  %v2380_v28 = vld [vmem:[%s3931_s13 + $0x20] sm:$0xff] }
0x1913   :  { %v2170_v50 = vpop.f32.mrf.mxu0 }
0x1914   :  { %v2171_v29 = vadd.f32 %v2563_v3, %v2170_v50  ;;  %v2383_v3 = vld [vmem:[%s3931_s13 + $0x38] sm:$0xff] }
0x1915   :  { %v2379_v50 = vld [vmem:[%s3931_s13 + $0x18] sm:$0xff] }
0x1916   :  { %2761 = vtanh.f32 %v2171_v29  ;;  %v2378_v29 = vld [vmem:[%s3931_s13 + $0x10] sm:$0xff] }
0x191c   :  { %v2762_v43 = vpop.eup %2761 }
0x191d   :  { %2549 = vmatmul.msk.f32.gmra.mxu1 %vm218_vm9, %v2762_v43  ;;  %v2377_v43 = vld [vmem:[%s3931_s13 + $0x8] sm:$0xff] }
0x1986   :  { %v2210_v30 = vpop.f32.mrf.mxu1 }
0x1987   :  { %v2211_v42 = vadd.f32 %v2564_v14, %v2210_v30 }
0x1989   :  { %v2217_v31 = vsel %vm2216_vm12, %v2211_v42, -inf }
0x199a   :  { %v2213_v41 = vpop.f32.mrf.mxu1 }
0x199b   :  { %v2214_v0 = vadd.f32 %v2564_v14, %v2213_v41  ;;  %v2376_v14 = vld [vmem:[%s3931_s13] sm:$0xff] }
0x199d   :  { %v2218_v32 = vsel %vm2216_vm12, %v2214_v0, -inf }
0x199e   :  { %v2219_v33 = vmax.f32 %v2217_v31, %v2218_v32  ;;  %v2554_v31 = vsel %vm2338_vm10, 1.0, %v2797_v27  ;;  %v2427_v32 = vld [vmem:[%s3933_s15 + $0x78] sm:$0xff]  ;;  %v2424_v27 = vld [vmem:[%s3933_s15 + $0x60] sm:$0xff] }
0x199f   :  { %2432 = vmatpush.msra.mxu3 %v2427_v32 }
0x19a0   :  { %v2220_v34 = vrot.slane %v2219_v33, 4 }
0x19a2   :  { %v2221_v61 = vmax.f32 %v2219_v33, %v2220_v34  ;;  %v2425_v33 = vld [vmem:[%s3933_s15 + $0x68] sm:$0xff]  ;;  %v2422_v34 = vld [vmem:[%s3933_s15 + $0x50] sm:$0xff] }
0x19a4   :  { %v2222_v56 = vrot.slane %v2221_v61, 2 }
0x19a6   :  { %v2223_v59 = vmax.f32 %v2221_v61, %v2222_v56  ;;  %v2421_v61 = vld [vmem:[%s3933_s15 + $0x48] sm:$0xff]  ;;  %v2420_v56 = vld [vmem:[%s3933_s15 + $0x40] sm:$0xff] }
0x19a8   :  { %v2224_v46 = vrot.slane %v2223_v59, 1 }
0x19aa   :  { %v2225_v17 = vmax.f32 %v2223_v59, %v2224_v46  ;;  %v2419_v59 = vld [vmem:[%s3933_s15 + $0x38] sm:$0xff]  ;;  %v2418_v46 = vld [vmem:[%s3933_s15 + $0x30] sm:$0xff] }
0x19ac   :  { %v2226_v47 = vsub.f32 %v2211_v42, %v2225_v17  ;;  %v2227_v37 = vsub.f32 %v2214_v0, %v2225_v17  ;;  %v2416_v17 = vld [vmem:[%s3933_s15 + $0x20] sm:$0xff] }
0x19ae   :  { %v2230_v39 = vmul.f32 1.442695, %v2227_v37  ;;  %v2228_v36 = vmul.f32 1.442695, %v2226_v47  ;;  %v2415_v47 = vld [vmem:[%s3933_s15 + $0x18] sm:$0xff] }
0x19b0   :  { %2763 = vpow2.f32 %v2230_v39  ;;  %v2412_v39 = vld [vmem:[%s3933_s15] sm:$0xff] }
0x19b1   :  { %2765 = vpow2.f32 %v2228_v36  ;;  %v2565_v36 = vld [vmem:[%s3932_s14] ss:$0 sm:$0xff] }
0x19b6   :  { %v2764_v60 = vpop.eup %2763 }
0x19b7   :  { %2299 = vmatpush.msra.mxu2 %v2764_v60  ;;  %v2766_v54 = vpop.eup %2765 }
0x19b9   :  { %2300 = vmatpush.msra.mxu2 %v2766_v54 }
0x19ba   :  { %2552 = vmatmul.msk.f32.vlgmr.msra.gmra.mxu2 %vm91_vm0, %v2550_v52 }
0x19bb   :  { %2399 = vmatpush.msrb.mxu2 %v2383_v3 }
0x19bd   :  { %2400 = vmatpush.msrb.mxu2 %v2382_v9 }
0x19bf   :  { %2401 = vmatpush.msrb.mxu2 %v2381_v16 }
0x19c1   :  { %2402 = vmatpush.msrb.mxu2 %v2380_v28 }
0x19c2   :  { %2553 = vmatmul.msk.f32.gmra.mxu2 %vm91_vm0, %v2551_v55 }
0x19c3   :  { %2403 = vmatpush.msrb.mxu2 %v2379_v50 }
0x19c5   :  { %2404 = vmatpush.msrb.mxu2 %v2378_v29 }
0x19c7   :  { %2405 = vmatpush.msrb.mxu2 %v2377_v43 }
0x19c9   :  { %2406 = vmatpush.msrb.mxu2 %v2376_v14 }
0x1a3d   :  { %v2302_v40 = vpop.f32.mrf.mxu2 }
0x1a3e   :  { %2767 = vrcp.f32 %v2302_v40  ;;  %v2319_v15 = vand.u32 2147483648, %v2302_v40  ;;  %v2317_v22 = vand.u32 2147483647, %v2302_v40  ;;  %vm2313_vm15 = vweird.f32 %v2302_v40 }
0x1a40   :  { %v2320_v21 = vor.u32 1.1754944e-38, %v2319_v15  ;;  %vm2318_vm2 = vcmp.eq.f32.partialorder %v2317_v22, 8.507059e+37 }
0x1a44   :  { %v2768_v1 = vpop.eup %2767 }
0x1a45   :  { %v2309_v10 = vmul.f32 %v2768_v1, %v2302_v40  ;;  %v2305_v11 = vpop.f32.mrf.mxu2  ;;  %vm2314_vm6 = vweird.f32 %v2768_v1 }
0x1a46   :  { %2769 = vrcp.f32 %v2305_v11  ;;  %vm2315_vm1 = vmor %vm2313_vm15, %vm2314_vm6  ;;  %vm2328_vm3 = vweird.f32 %v2305_v11  ;;  %v2334_v12 = vand.u32 2147483648, %v2305_v11  ;;  %v2332_v63 = vand.u32 2147483647, %v2305_v11 }
0x1a47   :  { %v2310_v13 = vsub.f32 1.0, %v2309_v10 }
0x1a48   :  { %v2335_v5 = vor.u32 1.1754944e-38, %v2334_v12  ;;  %vm2333_vm8 = vcmp.eq.f32.partialorder %v2332_v63, 8.507059e+37 }
0x1a49   :  { %v2311_v2 = vmul.f32 %v2768_v1, %v2310_v13 }
0x1a4b   :  { %v2312_v51 = vadd.f32 %v2768_v1, %v2311_v2 }
0x1a4c   :  { %v2770_v20 = vpop.eup %2769 }
0x1a4d   :  { %v2324_v19 = vmul.f32 %v2770_v20, %v2305_v11  ;;  %v2316_v23 = vsel %vm2315_vm1, %v2768_v1, %v2312_v51  ;;  %vm2329_vm4 = vweird.f32 %v2770_v20 }
0x1a4e   :  { %v2321_v57 = vsel %vm2318_vm2, %v2320_v21, %v2316_v23  ;;  %vm2330_vm5 = vmor %vm2328_vm3, %vm2329_vm4 }
0x1a4f   :  { %v2325_v24 = vsub.f32 1.0, %v2324_v19  ;;  %v2322_v25 = vmul.f32 %v2766_v54, %v2321_v57 }
0x1a51   :  { %v2326_v4 = vmul.f32 %v2770_v20, %v2325_v24  ;;  %2343 = vperm.xlu0 %2562, %v2322_v25  }
0x1a53   :  { %v2327_v6 = vadd.f32 %v2770_v20, %v2326_v4 }
0x1a55   :  { %v2331_v7 = vsel %vm2330_vm5, %v2770_v20, %v2327_v6 }
0x1a56   :  { %v2336_v8 = vsel %vm2333_vm8, %v2335_v5, %v2331_v7 }
0x1a57   :  { %v2337_v45 = vmul.f32 %v2764_v60, %v2336_v8  ;;  %v2566_v60 = vld [vmem:[%s3934_s16] ss:$0 sm:$0xff] }
0x1a59   :  { %2348 = vperm.xlu2 %2561, %v2337_v45  }
0x1ab3   :  { %v2349_v30 = vpop.permute.xlu2 %2348 }
0x1ab4   :  { %v2352_v42 = vmul.f32 %v2349_v30, %v3794_v48  ;;  %v2426_v48 = vld [vmem:[%s3933_s15 + $0x70] sm:$0xff] }
0x1ab5   :  { %2433 = vmatpush.msra.mxu3 %v2426_v48 }
0x1ab6   :  { %2370 = vmatpush.msrb.mxu0 %v2352_v42 }
0x1ab7   :  { %2434 = vmatpush.msra.mxu3 %v2425_v33 }
0x1ab9   :  { %2435 = vmatpush.msra.mxu3 %v2424_v27 }
0x1ac3   :  { %v2344_v41 = vpop.permute.xlu0 %2343 }
0x1ac4   :  { %v2351_v0 = vmul.f32 %v2344_v41, %v3789_v26  ;;  %v2423_v26 = vld [vmem:[%s3933_s15 + $0x58] sm:$0xff] }
0x1ac5   :  { %2436 = vmatpush.msra.mxu3 %v2423_v26 }
0x1ac6   :  { %2371 = vmatpush.msrb.mxu0 %v2351_v0 }
0x1ac7   :  { %2555 = vmatmul.msk.f32.vlgmr.msrb.gmra.mxu0 %vm91_vm0, %v2554_v31  ;;  %2437 = vmatpush.msra.mxu3 %v2422_v34  ;;  %vm2452_vm0 = vcmask 41984  }
0x1ac9   :  { %2438 = vmatpush.msra.mxu3 %v2421_v61 }
0x1acb   :  { %2439 = vmatpush.msra.mxu3 %v2420_v56 }
0x1acd   :  { %2440 = vmatpush.msra.mxu3 %v2419_v59 }
0x1acf   :  { %2441 = vmatpush.msra.mxu3 %v2418_v46 }
0x1ad1   :  { %2442 = vmatpush.msra.mxu3 %v2417_v35 }
0x1ad3   :  { %2443 = vmatpush.msra.mxu3 %v2416_v17 }
0x1ad5   :  { %2444 = vmatpush.msra.mxu3 %v2415_v47 }
0x1ad7   :  { %2445 = vmatpush.msra.mxu3 %v2414_v62 }
0x1ad9   :  { %2446 = vmatpush.msra.mxu3 %v2413_v38 }
0x1adb   :  { %2447 = vmatpush.msra.mxu3 %v2412_v39 }
0x1b44   :  { %v2373_v37 = vpop.f32.mrf.mxu0 }
0x1b45   :  { %2556 = vmatmul.msk.f32.vlgmr.msrb.gmra.mxu2 %vm218_vm9, %v2373_v37 }
0x1bc8   :  { %v2408_v44 = vpop.f32.mrf.mxu2 }
0x1bc9   :  { %v2409_v49 = vadd.f32 %v2565_v36, %v2408_v44 }
0x1bcb   :  { %v2411_v18 = vmax.f32 %v2409_v49, 0.0 }
0x1bcd   :  { %2448 = vmatmul.f32.vlgmr.msra.gmra.mxu3 %v2411_v18 }
0x1c50   :  { %v2449_v52 = vpop.f32.mrf.mxu3 }
0x1c51   :  { %v2450_v54 = vadd.f32 %v2566_v60, %v2449_v52 }
0x1c53   :  { %2453 = vst.msk [vmem:[#allocation3] sm:$0x3] %vm2452_vm0, %v2450_v54 }
0x1c54   :  { %2464 = dma.vmem_to_hbm [thread:$0]  %s2460_s25, 32, %s2462_s26, [#allocation4]  }
0x1c55   :  { %2795 = dma.done.wait [#allocation4], 32  }
0x1c56   :  { %2796 = vsyncadd [#allocation4], 4294967264 }
0x1c57   :  { %2469 = vsyncpa [#allocation4], 1 }

</bundles_post_ra>
